<compile_context>
chip_gen: v6e
topology: v6e:2x2x1
jax: 0.10.0
libtpu: 0.0.40
codegen_flags: <defaults>
</compile_context>

<pallas_src>
import jax
import jax.numpy as jnp
from jax.experimental import pallas as pl
from jax.experimental.pallas import tpu as pltpu

_VMEM_LIMIT_BYTES = 48 * 1024 * 1024
_BLOCK_TARGET_BYTES = 4 * 1024 * 1024


def _dwconv_kernel(x_ref, w_ref, b_ref, o_ref, xp_ref):
    # x_ref : (TB, H, W, TC)    input tile (batch tile x channel tile)
    # w_ref : (3, 3, TC)        depthwise 3x3 filters (one per channel)
    # b_ref : (1, TC)           bias
    # o_ref : (TB, H, W, TC)    output tile
    # xp_ref: (TB, H+2, W, TC)  f32 scratch slab (H-halo only, no W-halo)
    TB, H, W, C = o_ref.shape
    f32 = jnp.float32

    # Build the H-halo slab. The single input->f32 cast happens here (once, not
    # per tap); every slab access below is an aligned leading-dim slice.
    xp_ref[:, 0:1, :, :] = jnp.zeros((TB, 1, W, C), f32)
    xp_ref[:, H + 1:H + 2, :, :] = jnp.zeros((TB, 1, W, C), f32)
    xp_ref[:, 1:H + 1, :, :] = x_ref[...].astype(f32)

    w = w_ref[...].astype(f32)          # (3, 3, C), hoisted load + cast
    bias = b_ref[0, :].astype(f32)      # (C,)

    # Edge masks for the W-rolled taps (the wrapped column must be zeroed).
    # Shape (1, W, 1): broadcast along H (leading) and lanes is cheap/replicated.
    col = jax.lax.broadcasted_iota(jnp.int32, (1, W, 1), 1)
    mask_l = (col > 0).astype(f32)       # kills wrapped column 0 of the (w-1) tap
    mask_r = (col < W - 1).astype(f32)   # kills wrapped column W-1 of the (w+1) tap

    for b in range(TB):                  # static unroll over the batch tile
        # Per-dw column sums over the three row taps:
        #   s_d[h, w] = sum_dh x[h+dh-1, w] * weight[dh, d]
        # -> 3 aligned plane loads + 9 MACs; the W shift is applied once per side
        #    afterwards instead of per (dh, dw) tap.
        s_l = jnp.zeros((H, W, C), f32)
        s_c = jnp.broadcast_to(bias, (H, W, C))   # bias folded into the center sum
        s_r = jnp.zeros((H, W, C), f32)
        for dh in range(3):
            plane = xp_ref[b, dh:dh + H, :, :]    # aligned (H, W, C) slice
            s_l = s_l + plane * w[dh, 0]
            s_c = s_c + plane * w[dh, 1]
            s_r = s_r + plane * w[dh, 2]

        # W-direction shifts ride the XLU (roll), edges re-zeroed by the masks:
        #   out[., w] = s_c[., w] + s_l[., w-1] + s_r[., w+1]
        left = pltpu.roll(s_l, shift=1, axis=1) * mask_l
        right = pltpu.roll(s_r, shift=W - 1, axis=1) * mask_r
        o_ref[b, :, :, :] = (s_c + left + right).astype(o_ref.dtype)


def _pick_tiles(N, H, W, C, itemsize, target_bytes=_BLOCK_TARGET_BYTES):
    """Choose (batch_tile, channel_tile).

    Prefers channel_tile == C (contiguous NHWC DMA) when the per-batch block
    fits the ~4 MiB target, otherwise the largest lane-dense (multiple-of-128)
    divisor of C that fits. The batch tile then grows the block toward the
    target so per-step HBM time stays above the grid-step overhead.
    """
    per_channel = H * W * itemsize
    if C % 128 != 0:
        tc = C                    # lane-density requires tc == C in this case
    elif per_channel * C <= target_bytes:
        tc = C                    # whole channel dim: fully contiguous DMA rows
    else:
        divisors = [d for d in range(128, C + 1, 128) if C % d == 0]
        fitting = [d for d in divisors if per_channel * d <= target_bytes]
        tc = max(fitting) if fitting else min(divisors)

    blk = per_channel * tc
    tb = 1
    for d in range(N, 0, -1):
        if N % d == 0 and d * blk <= target_bytes:
            tb = d
            break
    return tb, tc


def dwconv_nhwc(x_nhwc, weight_hwc, bias, *, channel_tile=None, batch_tile=None):
    """Depthwise 3x3, stride 1, pad 1 (preferred, transpose-free entry point).

    x_nhwc: (N, H, W, C), weight_hwc: (3, 3, C), bias: (C,) -> (N, H, W, C).
    Pass bf16 inputs/outputs to halve HBM traffic; accumulation stays f32.
    """
    N, H, W, C = x_nhwc.shape
    itemsize = x_nhwc.dtype.itemsize
    tb, tc = _pick_tiles(N, H, W, C, itemsize)
    if channel_tile is not None:
        tc = channel_tile
    if batch_tile is not None:
        tb = batch_tile
    assert C % tc == 0 and N % tb == 0, (N, C, tb, tc)
    assert tc % 128 == 0 or tc == C, ("channel tile must be lane-dense", tc, C)

    # VMEM footprint guard: double-buffered in/out blocks + the f32 slab.
    blk = tb * H * W * tc * itemsize
    slab = tb * (H + 2) * W * tc * 4
    if 4 * blk + slab > _VMEM_LIMIT_BYTES - (4 << 20):
        raise ValueError(
            f"dwconv tile too large for VMEM (~{(4 * blk + slab) >> 20} MiB with "
            f"H={H}, W={W}, C={C}, tb={tb}, tc={tc}); pass a smaller "
            f"channel_tile/batch_tile.")

    b2 = bias.reshape(1, C)
    return pl.pallas_call(
        _dwconv_kernel,
        out_shape=jax.ShapeDtypeStruct((N, H, W, C), x_nhwc.dtype),
        grid_spec=pltpu.PrefetchScalarGridSpec(
            num_scalar_prefetch=0,
            # Channel tile outermost, batch innermost: the weight/bias block
            # indices stay constant across consecutive steps (no per-step re-DMA).
            grid=(C // tc, N // tb),
            in_specs=[
                pl.BlockSpec((tb, H, W, tc), lambda c, n: (n, 0, 0, c)),
                pl.BlockSpec((3, 3, tc), lambda c, n: (0, 0, c)),
                pl.BlockSpec((1, tc), lambda c, n: (0, c)),
            ],
            out_specs=pl.BlockSpec((tb, H, W, tc), lambda c, n: (n, 0, 0, c)),
            scratch_shapes=[pltpu.VMEM((tb, H + 2, W, tc), jnp.float32)],
        ),
        compiler_params=pltpu.CompilerParams(
            dimension_semantics=("parallel", "parallel"),
            vmem_limit_bytes=_VMEM_LIMIT_BYTES,
        ),
    )(x_nhwc, weight_hwc, b2)


def dwconv_nchw(x_nchw, weight_oihw, bias, *, channel_tile=None, batch_tile=None):
    """PyTorch-parity entry point (NCHW in/out, nn.Conv2d weight layout).

    Prefer dwconv_nhwc in an NHWC end-to-end model: each transpose below is a
    full HBM read+write pass on a memory-bound op.
    """
    # TODO(synk): fold the NCHW<->NHWC relayout into the kernel (einshape on
    # (1, tc, H, W) blocks) to remove the two host-side transpose passes.
    x_nhwc = jnp.transpose(x_nchw, (0, 2, 3, 1))
    w_hwc = jnp.transpose(weight_oihw[:, 0, :, :], (1, 2, 0))   # (3, 3, C)
    out_nhwc = dwconv_nhwc(x_nhwc, w_hwc, bias,
                           channel_tile=channel_tile, batch_tile=batch_tile)
    return jnp.transpose(out_nhwc, (0, 3, 1, 2))


if __name__ == "__main__":
    # DWConv forward at small shapes; C is a multiple of 128 so stores stay
    # lane-dense. Two runs: default tiling (one big block) and explicit smaller
    # tiles that exercise the multi-step (C//tc, N//tb) grid.
    N, C, H, W = 2, 256, 16, 16
    key = jax.random.PRNGKey(0)
    kx, kw, kb = jax.random.split(key, 3)

    x = jax.random.normal(kx, (N, C, H, W), dtype=jnp.float32)
    # nn.Conv2d(dim, dim, 3, groups=dim) weight shape: (dim, 1, 3, 3); bias: (dim,)
    weight = jax.random.normal(kw, (C, 1, 3, 3), dtype=jnp.float32) * 0.1
    bias = jax.random.normal(kb, (C,), dtype=jnp.float32) * 0.1

    # Reference: XLA grouped conv == PyTorch depthwise conv semantics.
    ref = jax.lax.conv_general_dilated(
        x, weight, window_strides=(1, 1), padding=((1, 1), (1, 1)),
        dimension_numbers=("NCHW", "OIHW", "NCHW"), feature_group_count=C,
    ) + bias.reshape(1, C, 1, 1)

    # 1) Default tiling: picker folds the whole (N, C) extent into one block.
    out = jax.block_until_ready(dwconv_nchw(x, weight, bias))
    assert out.shape == (N, C, H, W)
    assert jnp.allclose(out, ref, atol=1e-5, rtol=1e-5)

    # 2) Explicit smaller tiles: exercises the channel-outer / batch-inner grid.
    out_tiled = jax.block_until_ready(
        dwconv_nchw(x, weight, bias, channel_tile=128, batch_tile=1))
    assert jnp.allclose(out_tiled, ref, atol=1e-5, rtol=1e-5)

    print("KERNEL_OK")
</pallas_src>

<mosaic_0001>
module attributes {stable_mosaic.version = 11 : i64} {
  func.func @_dwconv_kernel(%arg0: i32, %arg1: i32, %arg2: memref<2x16x16x256xf32, #tpu.memory_space<vmem>>, %arg3: memref<3x3x256xf32, #tpu.memory_space<vmem>>, %arg4: memref<1x256xf32, #tpu.memory_space<vmem>>, %arg5: memref<2x16x16x256xf32, #tpu.memory_space<vmem>>, %arg6: memref<2x18x16x256xf32, #tpu.memory_space<vmem>>) attributes {dimension_semantics = [#tpu.dimension_semantics<parallel>, #tpu.dimension_semantics<parallel>], iteration_bounds = array<i64: 1, 1>, scalar_prefetch = 0 : i64, scratch_operands = 1 : i64, tpu.core_type = #tpu.core_type<tc>, window_params = [{transform_indices = @transform_0, window_bounds = array<i64: 2, 16, 16, 256>}, {transform_indices = @transform_1, window_bounds = array<i64: 3, 3, 256>}, {transform_indices = @transform_2, window_bounds = array<i64: 1, 256>}, {transform_indices = @transform_3, window_bounds = array<i64: 2, 16, 16, 256>}]} {
    %cst = arith.constant 0.000000e+00 : f32
    %0 = vector.broadcast %cst : f32 to vector<2x1x16x256xf32>
    %c0 = arith.constant 0 : index
    %c0_0 = arith.constant 0 : index
    %c0_1 = arith.constant 0 : index
    %c0_2 = arith.constant 0 : index
    %1 = vector.load %arg6[%c0, %c0_0, %c0_1, %c0_2] : memref<2x18x16x256xf32, #tpu.memory_space<vmem>>, vector<2x1x16x256xf32>
    tpu.vector_store %arg6[%c0, %c0_0, %c0_1, %c0_2], %0 {strides = array<i32>} : memref<2x18x16x256xf32, #tpu.memory_space<vmem>>, vector<2x1x16x256xf32>,
    %cst_3 = arith.constant 0.000000e+00 : f32
    %2 = vector.broadcast %cst_3 : f32 to vector<2x1x16x256xf32>
    %c0_4 = arith.constant 0 : index
    %c17 = arith.constant 17 : index
    %c0_5 = arith.constant 0 : index
    %c0_6 = arith.constant 0 : index
    %3 = vector.load %arg6[%c0_4, %c17, %c0_5, %c0_6] : memref<2x18x16x256xf32, #tpu.memory_space<vmem>>, vector<2x1x16x256xf32>
    tpu.vector_store %arg6[%c0_4, %c17, %c0_5, %c0_6], %2 {strides = array<i32>} : memref<2x18x16x256xf32, #tpu.memory_space<vmem>>, vector<2x1x16x256xf32>,
    %c0_7 = arith.constant 0 : index
    %c0_8 = arith.constant 0 : index
    %c0_9 = arith.constant 0 : index
    %c0_10 = arith.constant 0 : index
    %4 = vector.load %arg2[%c0_7, %c0_8, %c0_9, %c0_10] : memref<2x16x16x256xf32, #tpu.memory_space<vmem>>, vector<2x16x16x256xf32>
    %c0_11 = arith.constant 0 : index
    %c1 = arith.constant 1 : index
    %c0_12 = arith.constant 0 : index
    %c0_13 = arith.constant 0 : index
    %5 = vector.load %arg6[%c0_11, %c1, %c0_12, %c0_13] : memref<2x18x16x256xf32, #tpu.memory_space<vmem>>, vector<2x16x16x256xf32>
    tpu.vector_store %arg6[%c0_11, %c1, %c0_12, %c0_13], %4 {strides = array<i32>} : memref<2x18x16x256xf32, #tpu.memory_space<vmem>>, vector<2x16x16x256xf32>,
    %c0_14 = arith.constant 0 : index
    %c0_15 = arith.constant 0 : index
    %c0_16 = arith.constant 0 : index
    %6 = vector.load %arg3[%c0_14, %c0_15, %c0_16] : memref<3x3x256xf32, #tpu.memory_space<vmem>>, vector<3x3x256xf32>
    %c0_17 = arith.constant 0 : index
    %c0_18 = arith.constant 0 : index
    %7 = vector.load %arg4[%c0_17, %c0_18] : memref<1x256xf32, #tpu.memory_space<vmem>>, vector<1x256xf32>
    %8 = vector.shape_cast %7 : vector<1x256xf32> to vector<256xf32>
    %9 = tpu.iota {dimensions = array<i32: 1>} : vector<1x16x1xi32>
    %c0_i32 = arith.constant 0 : i32
    %10 = vector.broadcast %c0_i32 : i32 to vector<1x16x1xi32>
    %11 = arith.cmpi sgt, %9, %10 : vector<1x16x1xi32>
    %12 = arith.extui %11 : vector<1x16x1xi1> to vector<1x16x1xi32>
    %13 = arith.sitofp %12 : vector<1x16x1xi32> to vector<1x16x1xf32>
    %c15_i32 = arith.constant 15 : i32
    %14 = vector.broadcast %c15_i32 : i32 to vector<1x16x1xi32>
    %15 = arith.cmpi slt, %9, %14 : vector<1x16x1xi32>
    %16 = arith.extui %15 : vector<1x16x1xi1> to vector<1x16x1xi32>
    %17 = arith.sitofp %16 : vector<1x16x1xi32> to vector<1x16x1xf32>
    %cst_19 = arith.constant 0.000000e+00 : f32
    %18 = vector.broadcast %cst_19 : f32 to vector<16x16x256xf32>
    %19 = vector.shape_cast %8 : vector<256xf32> to vector<1x1x256xf32>
    %20 = vector.broadcast %19 : vector<1x1x256xf32> to vector<16x16x256xf32>
    %cst_20 = arith.constant 0.000000e+00 : f32
    %21 = vector.broadcast %cst_20 : f32 to vector<16x16x256xf32>
    %c0_21 = arith.constant 0 : index
    %c0_22 = arith.constant 0 : index
    %c0_23 = arith.constant 0 : index
    %c0_24 = arith.constant 0 : index
    %22 = vector.load %arg6[%c0_21, %c0_22, %c0_23, %c0_24] : memref<2x18x16x256xf32, #tpu.memory_space<vmem>>, vector<1x16x16x256xf32>
    %23 = vector.shape_cast %22 : vector<1x16x16x256xf32> to vector<16x16x256xf32>
    %24 = vector.extract_strided_slice %6 {offsets = [0, 0, 0], sizes = [1, 1, 256], strides = [1, 1, 1]} : vector<3x3x256xf32> to vector<1x1x256xf32>
    %25 = vector.shape_cast %24 : vector<1x1x256xf32> to vector<256xf32>
    %26 = vector.shape_cast %25 : vector<256xf32> to vector<1x1x256xf32>
    %27 = vector.broadcast %26 : vector<1x1x256xf32> to vector<16x16x256xf32>
    %28 = arith.mulf %23, %27 : vector<16x16x256xf32>
    %29 = arith.addf %18, %28 : vector<16x16x256xf32>
    %30 = vector.extract_strided_slice %6 {offsets = [0, 1, 0], sizes = [1, 1, 256], strides = [1, 1, 1]} : vector<3x3x256xf32> to vector<1x1x256xf32>
    %31 = vector.shape_cast %30 : vector<1x1x256xf32> to vector<256xf32>
    %32 = vector.shape_cast %31 : vector<256xf32> to vector<1x1x256xf32>
    %33 = vector.broadcast %32 : vector<1x1x256xf32> to vector<16x16x256xf32>
    %34 = arith.mulf %23, %33 : vector<16x16x256xf32>
    %35 = arith.addf %20, %34 : vector<16x16x256xf32>
    %36 = vector.extract_strided_slice %6 {offsets = [0, 2, 0], sizes = [1, 1, 256], strides = [1, 1, 1]} : vector<3x3x256xf32> to vector<1x1x256xf32>
    %37 = vector.shape_cast %36 : vector<1x1x256xf32> to vector<256xf32>
    %38 = vector.shape_cast %37 : vector<256xf32> to vector<1x1x256xf32>
    %39 = vector.broadcast %38 : vector<1x1x256xf32> to vector<16x16x256xf32>
    %40 = arith.mulf %23, %39 : vector<16x16x256xf32>
    %41 = arith.addf %21, %40 : vector<16x16x256xf32>
    %c0_25 = arith.constant 0 : index
    %c1_26 = arith.constant 1 : index
    %c0_27 = arith.constant 0 : index
    %c0_28 = arith.constant 0 : index
    %42 = vector.load %arg6[%c0_25, %c1_26, %c0_27, %c0_28] : memref<2x18x16x256xf32, #tpu.memory_space<vmem>>, vector<1x16x16x256xf32>
    %43 = vector.shape_cast %42 : vector<1x16x16x256xf32> to vector<16x16x256xf32>
    %44 = vector.extract_strided_slice %6 {offsets = [1, 0, 0], sizes = [1, 1, 256], strides = [1, 1, 1]} : vector<3x3x256xf32> to vector<1x1x256xf32>
    %45 = vector.shape_cast %44 : vector<1x1x256xf32> to vector<256xf32>
    %46 = vector.shape_cast %45 : vector<256xf32> to vector<1x1x256xf32>
    %47 = vector.broadcast %46 : vector<1x1x256xf32> to vector<16x16x256xf32>
    %48 = arith.mulf %43, %47 : vector<16x16x256xf32>
    %49 = arith.addf %29, %48 : vector<16x16x256xf32>
    %50 = vector.extract_strided_slice %6 {offsets = [1, 1, 0], sizes = [1, 1, 256], strides = [1, 1, 1]} : vector<3x3x256xf32> to vector<1x1x256xf32>
    %51 = vector.shape_cast %50 : vector<1x1x256xf32> to vector<256xf32>
    %52 = vector.shape_cast %51 : vector<256xf32> to vector<1x1x256xf32>
    %53 = vector.broadcast %52 : vector<1x1x256xf32> to vector<16x16x256xf32>
    %54 = arith.mulf %43, %53 : vector<16x16x256xf32>
    %55 = arith.addf %35, %54 : vector<16x16x256xf32>
    %56 = vector.extract_strided_slice %6 {offsets = [1, 2, 0], sizes = [1, 1, 256], strides = [1, 1, 1]} : vector<3x3x256xf32> to vector<1x1x256xf32>
    %57 = vector.shape_cast %56 : vector<1x1x256xf32> to vector<256xf32>
    %58 = vector.shape_cast %57 : vector<256xf32> to vector<1x1x256xf32>
    %59 = vector.broadcast %58 : vector<1x1x256xf32> to vector<16x16x256xf32>
    %60 = arith.mulf %43, %59 : vector<16x16x256xf32>
    %61 = arith.addf %41, %60 : vector<16x16x256xf32>
    %c0_29 = arith.constant 0 : index
    %c2 = arith.constant 2 : index
    %c0_30 = arith.constant 0 : index
    %c0_31 = arith.constant 0 : index
    %62 = vector.load %arg6[%c0_29, %c2, %c0_30, %c0_31] : memref<2x18x16x256xf32, #tpu.memory_space<vmem>>, vector<1x16x16x256xf32>
    %63 = vector.shape_cast %62 : vector<1x16x16x256xf32> to vector<16x16x256xf32>
    %64 = vector.extract_strided_slice %6 {offsets = [2, 0, 0], sizes = [1, 1, 256], strides = [1, 1, 1]} : vector<3x3x256xf32> to vector<1x1x256xf32>
    %65 = vector.shape_cast %64 : vector<1x1x256xf32> to vector<256xf32>
    %66 = vector.shape_cast %65 : vector<256xf32> to vector<1x1x256xf32>
    %67 = vector.broadcast %66 : vector<1x1x256xf32> to vector<16x16x256xf32>
    %68 = arith.mulf %63, %67 : vector<16x16x256xf32>
    %69 = arith.addf %49, %68 : vector<16x16x256xf32>
    %70 = vector.extract_strided_slice %6 {offsets = [2, 1, 0], sizes = [1, 1, 256], strides = [1, 1, 1]} : vector<3x3x256xf32> to vector<1x1x256xf32>
    %71 = vector.shape_cast %70 : vector<1x1x256xf32> to vector<256xf32>
    %72 = vector.shape_cast %71 : vector<256xf32> to vector<1x1x256xf32>
    %73 = vector.broadcast %72 : vector<1x1x256xf32> to vector<16x16x256xf32>
    %74 = arith.mulf %63, %73 : vector<16x16x256xf32>
    %75 = arith.addf %55, %74 : vector<16x16x256xf32>
    %76 = vector.extract_strided_slice %6 {offsets = [2, 2, 0], sizes = [1, 1, 256], strides = [1, 1, 1]} : vector<3x3x256xf32> to vector<1x1x256xf32>
    %77 = vector.shape_cast %76 : vector<1x1x256xf32> to vector<256xf32>
    %78 = vector.shape_cast %77 : vector<256xf32> to vector<1x1x256xf32>
    %79 = vector.broadcast %78 : vector<1x1x256xf32> to vector<16x16x256xf32>
    %80 = arith.mulf %63, %79 : vector<16x16x256xf32>
    %81 = arith.addf %61, %80 : vector<16x16x256xf32>
    %c1_i32 = arith.constant 1 : i32
    %82 = tpu.dynamic_rotate %69 by %c1_i32 dim 1 : vector<16x16x256xf32>, i32 -> vector<16x16x256xf32>
    %83 = vector.broadcast %13 : vector<1x16x1xf32> to vector<16x16x256xf32>
    %84 = arith.mulf %82, %83 : vector<16x16x256xf32>
    %c15_i32_32 = arith.constant 15 : i32
    %85 = tpu.dynamic_rotate %81 by %c15_i32_32 dim 1 : vector<16x16x256xf32>, i32 -> vector<16x16x256xf32>
    %86 = vector.broadcast %17 : vector<1x16x1xf32> to vector<16x16x256xf32>
    %87 = arith.mulf %85, %86 : vector<16x16x256xf32>
    %88 = arith.addf %75, %84 : vector<16x16x256xf32>
    %89 = arith.addf %88, %87 : vector<16x16x256xf32>
    %c0_33 = arith.constant 0 : index
    %c0_34 = arith.constant 0 : index
    %c0_35 = arith.constant 0 : index
    %c0_36 = arith.constant 0 : index
    %90 = vector.load %arg5[%c0_33, %c0_34, %c0_35, %c0_36] : memref<2x16x16x256xf32, #tpu.memory_space<vmem>>, vector<1x16x16x256xf32>
    %91 = vector.shape_cast %90 : vector<1x16x16x256xf32> to vector<16x16x256xf32>
    %92 = vector.shape_cast %89 : vector<16x16x256xf32> to vector<1x16x16x256xf32>
    tpu.vector_store %arg5[%c0_33, %c0_34, %c0_35, %c0_36], %92 {strides = array<i32>} : memref<2x16x16x256xf32, #tpu.memory_space<vmem>>, vector<1x16x16x256xf32>,
    %cst_37 = arith.constant 0.000000e+00 : f32
    %93 = vector.broadcast %cst_37 : f32 to vector<16x16x256xf32>
    %94 = vector.shape_cast %8 : vector<256xf32> to vector<1x1x256xf32>
    %95 = vector.broadcast %94 : vector<1x1x256xf32> to vector<16x16x256xf32>
    %cst_38 = arith.constant 0.000000e+00 : f32
    %96 = vector.broadcast %cst_38 : f32 to vector<16x16x256xf32>
    %c1_39 = arith.constant 1 : index
    %c0_40 = arith.constant 0 : index
    %c0_41 = arith.constant 0 : index
    %c0_42 = arith.constant 0 : index
    %97 = vector.load %arg6[%c1_39, %c0_40, %c0_41, %c0_42] : memref<2x18x16x256xf32, #tpu.memory_space<vmem>>, vector<1x16x16x256xf32>
    %98 = vector.shape_cast %97 : vector<1x16x16x256xf32> to vector<16x16x256xf32>
    %99 = vector.extract_strided_slice %6 {offsets = [0, 0, 0], sizes = [1, 1, 256], strides = [1, 1, 1]} : vector<3x3x256xf32> to vector<1x1x256xf32>
    %100 = vector.shape_cast %99 : vector<1x1x256xf32> to vector<256xf32>
    %101 = vector.shape_cast %100 : vector<256xf32> to vector<1x1x256xf32>
    %102 = vector.broadcast %101 : vector<1x1x256xf32> to vector<16x16x256xf32>
    %103 = arith.mulf %98, %102 : vector<16x16x256xf32>
    %104 = arith.addf %93, %103 : vector<16x16x256xf32>
    %105 = vector.extract_strided_slice %6 {offsets = [0, 1, 0], sizes = [1, 1, 256], strides = [1, 1, 1]} : vector<3x3x256xf32> to vector<1x1x256xf32>
    %106 = vector.shape_cast %105 : vector<1x1x256xf32> to vector<256xf32>
    %107 = vector.shape_cast %106 : vector<256xf32> to vector<1x1x256xf32>
    %108 = vector.broadcast %107 : vector<1x1x256xf32> to vector<16x16x256xf32>
    %109 = arith.mulf %98, %108 : vector<16x16x256xf32>
    %110 = arith.addf %95, %109 : vector<16x16x256xf32>
    %111 = vector.extract_strided_slice %6 {offsets = [0, 2, 0], sizes = [1, 1, 256], strides = [1, 1, 1]} : vector<3x3x256xf32> to vector<1x1x256xf32>
    %112 = vector.shape_cast %111 : vector<1x1x256xf32> to vector<256xf32>
    %113 = vector.shape_cast %112 : vector<256xf32> to vector<1x1x256xf32>
    %114 = vector.broadcast %113 : vector<1x1x256xf32> to vector<16x16x256xf32>
    %115 = arith.mulf %98, %114 : vector<16x16x256xf32>
    %116 = arith.addf %96, %115 : vector<16x16x256xf32>
    %c1_43 = arith.constant 1 : index
    %c1_44 = arith.constant 1 : index
    %c0_45 = arith.constant 0 : index
    %c0_46 = arith.constant 0 : index
    %117 = vector.load %arg6[%c1_43, %c1_44, %c0_45, %c0_46] : memref<2x18x16x256xf32, #tpu.memory_space<vmem>>, vector<1x16x16x256xf32>
    %118 = vector.shape_cast %117 : vector<1x16x16x256xf32> to vector<16x16x256xf32>
    %119 = vector.extract_strided_slice %6 {offsets = [1, 0, 0], sizes = [1, 1, 256], strides = [1, 1, 1]} : vector<3x3x256xf32> to vector<1x1x256xf32>
    %120 = vector.shape_cast %119 : vector<1x1x256xf32> to vector<256xf32>
    %121 = vector.shape_cast %120 : vector<256xf32> to vector<1x1x256xf32>
    %122 = vector.broadcast %121 : vector<1x1x256xf32> to vector<16x16x256xf32>
    %123 = arith.mulf %118, %122 : vector<16x16x256xf32>
    %124 = arith.addf %104, %123 : vector<16x16x256xf32>
    %125 = vector.extract_strided_slice %6 {offsets = [1, 1, 0], sizes = [1, 1, 256], strides = [1, 1, 1]} : vector<3x3x256xf32> to vector<1x1x256xf32>
    %126 = vector.shape_cast %125 : vector<1x1x256xf32> to vector<256xf32>
    %127 = vector.shape_cast %126 : vector<256xf32> to vector<1x1x256xf32>
    %128 = vector.broadcast %127 : vector<1x1x256xf32> to vector<16x16x256xf32>
    %129 = arith.mulf %118, %128 : vector<16x16x256xf32>
    %130 = arith.addf %110, %129 : vector<16x16x256xf32>
    %131 = vector.extract_strided_slice %6 {offsets = [1, 2, 0], sizes = [1, 1, 256], strides = [1, 1, 1]} : vector<3x3x256xf32> to vector<1x1x256xf32>
    %132 = vector.shape_cast %131 : vector<1x1x256xf32> to vector<256xf32>
    %133 = vector.shape_cast %132 : vector<256xf32> to vector<1x1x256xf32>
    %134 = vector.broadcast %133 : vector<1x1x256xf32> to vector<16x16x256xf32>
    %135 = arith.mulf %118, %134 : vector<16x16x256xf32>
    %136 = arith.addf %116, %135 : vector<16x16x256xf32>
    %c1_47 = arith.constant 1 : index
    %c2_48 = arith.constant 2 : index
    %c0_49 = arith.constant 0 : index
    %c0_50 = arith.constant 0 : index
    %137 = vector.load %arg6[%c1_47, %c2_48, %c0_49, %c0_50] : memref<2x18x16x256xf32, #tpu.memory_space<vmem>>, vector<1x16x16x256xf32>
    %138 = vector.shape_cast %137 : vector<1x16x16x256xf32> to vector<16x16x256xf32>
    %139 = vector.extract_strided_slice %6 {offsets = [2, 0, 0], sizes = [1, 1, 256], strides = [1, 1, 1]} : vector<3x3x256xf32> to vector<1x1x256xf32>
    %140 = vector.shape_cast %139 : vector<1x1x256xf32> to vector<256xf32>
    %141 = vector.shape_cast %140 : vector<256xf32> to vector<1x1x256xf32>
    %142 = vector.broadcast %141 : vector<1x1x256xf32> to vector<16x16x256xf32>
    %143 = arith.mulf %138, %142 : vector<16x16x256xf32>
    %144 = arith.addf %124, %143 : vector<16x16x256xf32>
    %145 = vector.extract_strided_slice %6 {offsets = [2, 1, 0], sizes = [1, 1, 256], strides = [1, 1, 1]} : vector<3x3x256xf32> to vector<1x1x256xf32>
    %146 = vector.shape_cast %145 : vector<1x1x256xf32> to vector<256xf32>
    %147 = vector.shape_cast %146 : vector<256xf32> to vector<1x1x256xf32>
    %148 = vector.broadcast %147 : vector<1x1x256xf32> to vector<16x16x256xf32>
    %149 = arith.mulf %138, %148 : vector<16x16x256xf32>
    %150 = arith.addf %130, %149 : vector<16x16x256xf32>
    %151 = vector.extract_strided_slice %6 {offsets = [2, 2, 0], sizes = [1, 1, 256], strides = [1, 1, 1]} : vector<3x3x256xf32> to vector<1x1x256xf32>
    %152 = vector.shape_cast %151 : vector<1x1x256xf32> to vector<256xf32>
    %153 = vector.shape_cast %152 : vector<256xf32> to vector<1x1x256xf32>
    %154 = vector.broadcast %153 : vector<1x1x256xf32> to vector<16x16x256xf32>
    %155 = arith.mulf %138, %154 : vector<16x16x256xf32>
    %156 = arith.addf %136, %155 : vector<16x16x256xf32>
    %c1_i32_51 = arith.constant 1 : i32
    %157 = tpu.dynamic_rotate %144 by %c1_i32_51 dim 1 : vector<16x16x256xf32>, i32 -> vector<16x16x256xf32>
    %158 = vector.broadcast %13 : vector<1x16x1xf32> to vector<16x16x256xf32>
    %159 = arith.mulf %157, %158 : vector<16x16x256xf32>
    %c15_i32_52 = arith.constant 15 : i32
    %160 = tpu.dynamic_rotate %156 by %c15_i32_52 dim 1 : vector<16x16x256xf32>, i32 -> vector<16x16x256xf32>
    %161 = vector.broadcast %17 : vector<1x16x1xf32> to vector<16x16x256xf32>
    %162 = arith.mulf %160, %161 : vector<16x16x256xf32>
    %163 = arith.addf %150, %159 : vector<16x16x256xf32>
    %164 = arith.addf %163, %162 : vector<16x16x256xf32>
    %c1_53 = arith.constant 1 : index
    %c0_54 = arith.constant 0 : index
    %c0_55 = arith.constant 0 : index
    %c0_56 = arith.constant 0 : index
    %165 = vector.load %arg5[%c1_53, %c0_54, %c0_55, %c0_56] : memref<2x16x16x256xf32, #tpu.memory_space<vmem>>, vector<1x16x16x256xf32>
    %166 = vector.shape_cast %165 : vector<1x16x16x256xf32> to vector<16x16x256xf32>
    %167 = vector.shape_cast %164 : vector<16x16x256xf32> to vector<1x16x16x256xf32>
    tpu.vector_store %arg5[%c1_53, %c0_54, %c0_55, %c0_56], %167 {strides = array<i32>} : memref<2x16x16x256xf32, #tpu.memory_space<vmem>>, vector<1x16x16x256xf32>,
    return
  }
  func.func @transform_0(%arg0: i32, %arg1: i32) -> (i32, i32, i32, i32) {
    %c0_i32 = arith.constant 0 : i32
    %c0_i32_0 = arith.constant 0 : i32
    %c0_i32_1 = arith.constant 0 : i32
    return %arg1, %c0_i32, %c0_i32_0, %arg0 : i32, i32, i32, i32
  }
  func.func @transform_1(%arg0: i32, %arg1: i32) -> (i32, i32, i32) {
    %c0_i32 = arith.constant 0 : i32
    %c0_i32_0 = arith.constant 0 : i32
    %c0_i32_1 = arith.constant 0 : i32
    return %c0_i32, %c0_i32_0, %arg0 : i32, i32, i32
  }
  func.func @transform_2(%arg0: i32, %arg1: i32) -> (i32, i32) {
    %c0_i32 = arith.constant 0 : i32
    %c0_i32_0 = arith.constant 0 : i32
    return %c0_i32, %arg0 : i32, i32
  }
  func.func @transform_3(%arg0: i32, %arg1: i32) -> (i32, i32, i32, i32) {
    %c0_i32 = arith.constant 0 : i32
    %c0_i32_0 = arith.constant 0 : i32
    %c0_i32_1 = arith.constant 0 : i32
    return %arg1, %c0_i32, %c0_i32_0, %arg0 : i32, i32, i32, i32
  }
}

</mosaic_0001>

<bundles_post_ra>
// kernel: tpu_custom_call.1
= control target key start
LH: loop header
LB: loop body
LE: loop exit
PB: predicated region body
PF: predicated region fallthrough
CT: control target
= control target key end

     0   :  { %8 = vsyncpa [#allocation4], 0  ;;  %s7905_s0 = inlined_call_operand.hbm [shape: f32[2,16,16,256], index: 0, kind: input, shape index: {}]   ;;  %s7906_s1 = inlined_call_operand.hbm [shape: f32[3,3,256], index: 1, kind: input, shape index: {}]   ;;  %s7907_s2 = inlined_call_operand.vmem [shape: f32[1,256], index: 2, kind: input, shape index: {}]   ;;  %s7908_s3 = inlined_call_operand.hbm [shape: f32[2,16,16,256], index: 3, kind: output, shape index: {}]  }
   0x1   :  { %9 = vsyncpa [#allocation7], 0 }
   0x2   :  { %10 = vsyncpa [#allocation5], 0  ;;  %s4453_s12 = smov [#allocation3]  }
   0x3   :  { %s16_s13 = sshll.u32 %s4453_s12, 4  ;;  %s17_s13 = int_to_ptr.vmem [resolvable:$true] %s16_s13 }
   0x4   :  { %s4395_s14 = scalar_lea.vmem %s17_s13, 16384  ;;  %p4400_p1 = scmp.lt.s32.totalorder %s17_s13, %s17_s13 }
   0x5   :  { %p4396_p0 = scmp.ne.s32.totalorder %s17_s13, %s4395_s14  ;;  %p4401_p2 = scmp.lt.s32.totalorder %s4395_s14, %s4395_s14 }
   0x7   :  { %p4402_p3 = por %p4401_p2, %p4400_p1 }
   0x9   :  { %p4403_p4 = pnand %p4402_p3, %p4396_p0 }
   0xb   :  { %4406 = shalt.err (!%p4403_p4)
}
   0xc   :  { %s4454_s15 = smov 256   ;;  %s4455_s16 = smov 16  }
   0xd   :  { %22 = dma.hbm_to_vmem [thread:$0]  %s7905_s0, 16384, %s17_s13, [#allocation4], %s4454_s15, %s4454_s15, %s4455_s16  }
   0xe   :  { %s4456_s19 = smov [#allocation6]  }
   0xf   :  { %s28_s20 = sshll.u32 %s4456_s19, 4  ;;  %s29_s20 = int_to_ptr.vmem [resolvable:$true] %s28_s20 }
  0x10   :  { %s4415_s21 = scalar_lea.vmem %s29_s20, 384  ;;  %p4420_p6 = scmp.lt.s32.totalorder %s29_s20, %s29_s20 }
  0x11   :  { %p4416_p5 = scmp.ne.s32.totalorder %s29_s20, %s4415_s21  ;;  %p4421_p7 = scmp.lt.s32.totalorder %s4415_s21, %s4415_s21 }
  0x13   :  { %p4422_p8 = por %p4421_p7, %p4420_p6 }
  0x15   :  { %p4423_p9 = pnand %p4422_p8, %p4416_p5 }
  0x17   :  { %4426 = shalt.err (!%p4423_p9)
}
  0x18   :  { %s4457_s22 = smov 128   ;;  %s4458_s23 = smov 8  }
  0x19   :  { %34 = dma.hbm_to_vmem [thread:$0]  %s7906_s1, 384, %s29_s20, [#allocation7], %s4457_s22, %s4457_s22, %s4458_s23  }
  0x1a   :  { %4447 = dma.done.wait [#allocation4], 16384  }
  0x1b   :  { %4448 = vsyncadd [#allocation4], 4294950912 }
  0x1c   :  { %4449 = dma.done.wait [#allocation7], 384  }
  0x1d   :  { %4450 = vsyncadd [#allocation7], 4294966912  ;;  %v321_v0 = vlaneseq  ;;  %v317_v8 = vld [vmem:[#allocation6] sm:$0x77]  ;;  %v4459_v9 = vmov 0.0   ;;  %v4543_v31 = vld [vmem:[#allocation3 + $0x10] sm:$0xff] }
  0x1e   :  { %v318_v12 = vld [vmem:[#allocation6 + $0x8] sm:$0x77]  ;;  %v320_v13 = vld [vmem:[%s7907_s2] sm:$0x3]  ;;  %v319_v32 = vld [vmem:[#allocation6 + $0x10] sm:$0x77] }
  0x1f   :  { %v4490_v1 = vshrl.u32 %v321_v0, 7  ;;  %v4541_v30 = vld [vmem:[#allocation3] sm:$0xff]  ;;  %v4597_v62 = vld [vmem:[#allocation3 + $0x30] sm:$0xff]  ;;  %s4460_s2 = smov [#allocation8]  }
  0x20   :  { %v4595_v61 = vld [vmem:[#allocation3 + $0x20] sm:$0xff]  ;;  %s4364_s26 = sshll.u32 %s4460_s2, 4  ;;  %s4365_s26 = int_to_ptr.vmem [resolvable:$true] %s4364_s26 }
  0x21   :  { %vm324_vm0 = vcmp.gt.s32.totalorder %v4490_v1, 0  ;;  %v339_v2 = vsub.s32 0, %v4490_v1  ;;  %v4495_v3 = vsub.s32 1, %v4490_v1  ;;  %v418_v4 = vsub.s32 4, %v4490_v1  ;;  %s4427_s27 = scalar_lea.vmem %s4365_s26, 16384  ;;  %p4432_p11 = scmp.lt.s32.totalorder %s4365_s26, %s4365_s26 }
  0x22   :  { %v4499_v5 = vsub.s32 5, %v4490_v1  ;;  %v4502_v6 = vsub.s32 2, %v4490_v1  ;;  %v4505_v7 = vsub.s32 6, %v4490_v1  ;;  %v4508_v10 = vsel %vm324_vm0, 1.0, %v4459_v9  ;;  %p4428_p10 = scmp.ne.s32.totalorder %s4365_s26, %s4427_s27  ;;  %p4433_p12 = scmp.lt.s32.totalorder %s4427_s27, %s4427_s27 }
  0x23   :  { %v4511_v11 = vadd.s32 8, %v4490_v1  ;;  %v415_v14 = vrot.slane %v317_v8, %v339_v2  ;;  %v419_v15 = vrot.slane %v317_v8, %v418_v4  ;;  %v561_v16 = vrot.slane %v317_v8, %v4495_v3 }
  0x24   :  { %v565_v17 = vrot.slane %v317_v8, %v4499_v5  ;;  %v4518_v18 = vrot.slane %v320_v13, %v339_v2  ;;  %v4521_v19 = vrot.slane %v320_v13, %v4495_v3  ;;  %v707_v20 = vrot.slane %v317_v8, %v4502_v6  ;;  %p4434_p13 = por %p4433_p12, %p4432_p11 }
  0x25   :  { %v711_v21 = vrot.slane %v317_v8, %v4505_v7  ;;  %v4525_v22 = vrot.slane %v415_v14, %v339_v2  ;;  %v4527_v23 = vrot.slane %v419_v15, %v339_v2  ;;  %v4530_v24 = vrot.slane %v561_v16, %v4495_v3  ;;  %v4620_v16 = vld [vmem:[#allocation3 + $0x8] sm:$0xff] }
  0x26   :  { %v4533_v25 = vrot.slane %v565_v17, %v4495_v3  ;;  %v4536_v26 = vrot.slane %v707_v20, %v4502_v6  ;;  %v918_v28 = vrot.slane %v318_v12, %v339_v2  ;;  %v922_v29 = vrot.slane %v318_v12, %v418_v4  ;;  %v4622_v17 = vld [vmem:[#allocation3 + $0x18] sm:$0xff]  ;;  %p4435_p0 = pnand %p4434_p13, %p4428_p10 }
  0x27   :  { %v4539_v27 = vrot.slane %v711_v21, %v4502_v6  ;;  %v4546_v33 = vmul.f32 0.0, %v4525_v22  ;;  %v576_v34 = vmul.f32 0.0, %v4530_v24  ;;  %v1064_v35 = vrot.slane %v318_v12, %v4495_v3 }
  0x28   :  { %v1068_v36 = vrot.slane %v318_v12, %v4499_v5  ;;  %v4552_v37 = vmul.f32 0.0, %v4536_v26  ;;  %v4554_v38 = vrot.slane %v918_v28, %v339_v2  ;;  %v4556_v39 = vrot.slane %v922_v29, %v339_v2 }
  0x29   :  { %v1210_v40 = vrot.slane %v318_v12, %v4502_v6  ;;  %v4560_v41 = vadd.f32 %v576_v34, %v4518_v18  ;;  %v4563_v42 = vrot.slane %v1064_v35, %v4495_v3  ;;  %v1214_v44 = vrot.slane %v318_v12, %v4505_v7 }
  0x2a   :  { %v4566_v43 = vrot.slane %v1068_v36, %v4495_v3  ;;  %v933_v45 = vmul.f32 %v4554_v38, %v4541_v30  ;;  %v935_v46 = vmul.f32 %v4554_v38, %v4543_v31  ;;  %v1422_v48 = vrot.slane %v319_v32, %v339_v2 }
  0x2b   :  { %v4574_v47 = vrot.slane %v1210_v40, %v4502_v6  ;;  %vm1921_vm1 = vcmp.lt.s32.totalorder %v4490_v1, 1  ;;  %v1079_v49 = vmul.f32 %v4563_v42, %v4541_v30  ;;  %v4580_v50 = vrot.slane %v1214_v44, %v4502_v6 }
  0x2c   :  { %v1426_v51 = vrot.slane %v319_v32, %v418_v4  ;;  %v1568_v52 = vrot.slane %v319_v32, %v4495_v3  ;;  %v997_v53 = vadd.f32 %v933_v45, %v4546_v33  ;;  %v999_v54 = vadd.f32 %v935_v46, %v4546_v33 }
  0x2d   :  { %v1225_v55 = vmul.f32 %v4574_v47, %v4541_v30  ;;  %v1227_v56 = vmul.f32 %v4574_v47, %v4543_v31  ;;  %v1143_v57 = vadd.f32 %v1079_v49, %v4560_v41  ;;  %v4590_v58 = vrot.slane %v1422_v48, %v339_v2 }
  0x2e   :  { %v4592_v59 = vrot.slane %v1426_v51, %v339_v2  ;;  %v1572_v60 = vrot.slane %v319_v32, %v4499_v5  ;;  %v4602_v4 = vrot.slane %v1568_v52, %v4495_v3  ;;  %v1714_v8 = vrot.slane %v319_v32, %v4502_v6 }
  0x2f   :  { %v1289_v63 = vadd.f32 %v1225_v55, %v4552_v37  ;;  %v1291_v0 = vadd.f32 %v1227_v56, %v4552_v37  ;;  %vm331_vm2 = vcmp.lt.s32.totalorder %v4511_v11, 15  ;;  %v1437_v2 = vmul.f32 %v4590_v58, %v4595_v61 }
  0x30   :  { %v1439_v5 = vmul.f32 %v4590_v58, %v4597_v62  ;;  %v4611_v12 = vrot.slane %v1572_v60, %v4495_v3  ;;  %v1718_v13 = vrot.slane %v319_v32, %v4505_v7  ;;  %vm2114_vm3 = vcmp.lt.s32.totalorder %v4490_v1, 7 }
  0x31   :  { %v1583_v14 = vmul.f32 %v4602_v4, %v4595_v61  ;;  %v4618_v15 = vrot.slane %v1714_v8, %v4502_v6  ;;  %v4625_v20 = vmul.f32 0.0, %v4527_v23  ;;  %v577_v3 = vmul.f32 0.0, %v4533_v25 }
  0x32   :  { %v1501_v21 = vadd.f32 %v1437_v2, %v997_v53  ;;  %v1503_v28 = vadd.f32 %v1439_v5, %v999_v54  ;;  %v4629_v7 = vrot.slane %v1718_v13, %v4502_v6  ;;  %v4632_v29 = vmul.f32 0.0, %v4539_v27 }
  0x33   :  { %v1647_v32 = vadd.f32 %v1583_v14, %v1143_v57  ;;  %v1729_v34 = vmul.f32 %v4618_v15, %v4595_v61  ;;  %v1731_v35 = vmul.f32 %v4618_v15, %v4597_v62  ;;  %v4639_v36 = vadd.f32 %v577_v3, %v4521_v19 }
  0x34   :  { %7917 = vst [vmem:[#allocation12_spill] sm:$0xff] %v4632_v29  ;;  %v1857_v40 = vrot.slane %v1501_v21, 7  ;;  %v1889_v44 = vrot.slane %v1503_v28, 7  ;;  %v934_v45 = vmul.f32 %v4556_v39, %v4620_v16  ;;  %v936_v6 = vmul.f32 %v4556_v39, %v4622_v17 }
  0x35   :  { %7918 = vst [vmem:[#allocation13_spill] sm:$0xff] %v4639_v36  ;;  %v1793_v46 = vadd.f32 %v1729_v34, %v1289_v63  ;;  %v1795_v48 = vadd.f32 %v1731_v35, %v1291_v0  ;;  %v1080_v49 = vmul.f32 %v4566_v43, %v4620_v16  ;;  %v1226_v51 = vmul.f32 %v4580_v50, %v4620_v16  ;;  %v4656_v63 = vld [vmem:[#allocation3 + $0x28] sm:$0xff]  ;;  %v4658_v0 = vld [vmem:[#allocation3 + $0x38] sm:$0xff] }
  0x36   :  { %v1954_v52 = vsel %vm1921_vm1, %v1889_v44, %v1857_v40  ;;  %v998_v53 = vadd.f32 %v934_v45, %v4625_v20  ;;  %v1000_v54 = vadd.f32 %v936_v6, %v4625_v20  ;;  %v1228_v55 = vmul.f32 %v4580_v50, %v4622_v17 }
  0x37   :  { %v1986_v56 = vmul.f32 %v4508_v10, %v1954_v52  ;;  %v2050_v57 = vrot.slane %v1793_v46, 1  ;;  %v2082_v60 = vrot.slane %v1795_v48, 1  ;;  %v1144_v8 = vadd.f32 %v1080_v49, %v4639_v36 }
  0x38   :  { %v1290_v2 = vadd.f32 %v1226_v51, %v4632_v29  ;;  %v1292_v5 = vadd.f32 %v1228_v55, %v4632_v29  ;;  %v1438_v13 = vmul.f32 %v4592_v59, %v4656_v63  ;;  %v1440_v14 = vmul.f32 %v4592_v59, %v4658_v0 }
  0x39   :  { %v2115_v3 = vsel %vm2114_vm3, %v2050_v57, %v2082_v60  ;;  %v2243_v21 = vadd.f32 %v1986_v56, %v1647_v32  ;;  %v1584_v28 = vmul.f32 %v4611_v12, %v4656_v63  ;;  %v1730_v34 = vmul.f32 %v4629_v7, %v4656_v63 }
  0x3a   :  { %v1502_v35 = vadd.f32 %v1438_v13, %v998_v53  ;;  %v1504_v45 = vadd.f32 %v1440_v14, %v1000_v54  ;;  %v1732_v6 = vmul.f32 %v4629_v7, %v4658_v0  ;;  %v4678_v46 = vsel %vm331_vm2, 1.0, %v4459_v9 }
  0x3b   :  { %v2307_v48 = vadd.f32 %v2243_v21, %v2115_v3  ;;  %v1648_v49 = vadd.f32 %v1584_v28, %v1144_v8  ;;  %v1794_v51 = vadd.f32 %v1730_v34, %v1290_v2  ;;  %v1081_v32 = vmul.f32 %v4563_v42, %v4543_v31 }
  0x3c   :  { %v1796_v52 = vadd.f32 %v1732_v6, %v1292_v5  ;;  %v1858_v55 = vrot.slane %v1502_v35, 7  ;;  %v1890_v56 = vrot.slane %v1504_v45, 7  ;;  %v1585_v53 = vmul.f32 %v4602_v4, %v4597_v62 }
  0x3d   :  { %2371 = vst [vmem:[#allocation8] sm:$0xff] %v2307_v48  ;;  %v2051_v54 = vrot.slane %v1794_v51, 1  ;;  %v1145_v13 = vadd.f32 %v1081_v32, %v4560_v41  ;;  %v1922_v9 = vsel %vm1921_vm1, %v1857_v40, %v1889_v44  ;;  %v2147_v11 = vsel %vm2114_vm3, %v2082_v60, %v2050_v57 }
  0x3e   :  { %v1955_v8 = vsel %vm1921_vm1, %v1890_v56, %v1858_v55  ;;  %v2083_v2 = vrot.slane %v1796_v52, 1  ;;  %v2181_v5 = vmul.f32 %v4678_v46, %v2147_v11  ;;  %v1082_v14 = vmul.f32 %v4566_v43, %v4622_v17 }
  0x3f   :  { %v1987_v3 = vmul.f32 %v4508_v10, %v1955_v8  ;;  %v1649_v21 = vadd.f32 %v1585_v53, %v1145_v13  ;;  %v1586_v28 = vmul.f32 %v4611_v12, %v4658_v0  ;;  %v1923_v40 = vsel %vm1921_vm1, %v1858_v55, %v1890_v56 }
  0x40   :  { %v2116_v44 = vsel %vm2114_vm3, %v2051_v54, %v2083_v2  ;;  %v1146_v57 = vadd.f32 %v1082_v14, %v4639_v36  ;;  %v2148_v60 = vsel %vm2114_vm3, %v2083_v2, %v2051_v54  ;;  %v434_v34 = vmul.f32 %v4525_v22, %v4541_v30  ;;  %v4726_v2 = vld [vmem:[#allocation3 + $0x50] sm:$0xff] }
  0x41   :  { %v2244_v35 = vadd.f32 %v1987_v3, %v1648_v49  ;;  %v2245_v45 = vadd.f32 %v1922_v9, %v1649_v21  ;;  %v2182_v6 = vmul.f32 %v4678_v46, %v2148_v60  ;;  %v436_v48 = vmul.f32 %v4525_v22, %v4543_v31  ;;  %v4719_v9 = vld [vmem:[#allocation3 + $0x40] sm:$0xff] }
  0x42   :  { %v1650_v51 = vadd.f32 %v1586_v28, %v1146_v57  ;;  %v580_v32 = vmul.f32 %v4530_v24, %v4541_v30  ;;  %v726_v52 = vmul.f32 %v4536_v26, %v4541_v30  ;;  %v728_v55 = vmul.f32 %v4536_v26, %v4543_v31 }
  0x43   :  { %v2308_v56 = vadd.f32 %v2244_v35, %v2116_v44  ;;  %v2309_v53 = vadd.f32 %v2245_v45, %v2181_v5  ;;  %v937_v49 = vmul.f32 %v4554_v38, %v4595_v61  ;;  %v939_v54 = vmul.f32 %v4554_v38, %v4597_v62 }
  0x44   :  { %v2246_v13 = vadd.f32 %v1923_v40, %v1650_v51  ;;  %v644_v11 = vadd.f32 %v580_v32, %v4518_v18  ;;  %v1083_v8 = vmul.f32 %v4563_v42, %v4595_v61  ;;  %v1229_v30 = vmul.f32 %v4574_v47, %v4595_v61 }
  0x45   :  { %2372 = vst [vmem:[#allocation8 + $0x8] sm:$0xff] %v2308_v56  ;;  %2373 = vst [vmem:[#allocation8 + $0x10] sm:$0xff] %v2309_v53  ;;  %v1001_v5 = vadd.f32 %v937_v49, %v434_v34  ;;  %v1003_v14 = vadd.f32 %v939_v54, %v436_v48  ;;  %v1231_v3 = vmul.f32 %v4574_v47, %v4597_v62 }
  0x46   :  { %v1441_v21 = vmul.f32 %v4590_v58, %v4719_v9  ;;  %v2310_v28 = vadd.f32 %v2246_v13, %v2182_v6  ;;  %v1147_v40 = vadd.f32 %v1083_v8, %v644_v11  ;;  %v1293_v44 = vadd.f32 %v1229_v30, %v726_v52 }
  0x47   :  { %v1443_v57 = vmul.f32 %v4590_v58, %v4726_v2  ;;  %v1295_v60 = vadd.f32 %v1231_v3, %v728_v55  ;;  %v1587_v45 = vmul.f32 %v4602_v4, %v4719_v9  ;;  %v1733_v34 = vmul.f32 %v4618_v15, %v4719_v9 }
  0x48   :  { %v1505_v35 = vadd.f32 %v1441_v21, %v1001_v5  ;;  %2374 = vst [vmem:[#allocation8 + $0x18] sm:$0xff] %v2310_v28  ;;  %v1735_v51 = vmul.f32 %v4618_v15, %v4726_v2  ;;  %v435_v6 = vmul.f32 %v4527_v23, %v4620_v16  ;;  %v437_v32 = vmul.f32 %v4527_v23, %v4622_v17 }
  0x49   :  { %v1507_v48 = vadd.f32 %v1443_v57, %v1003_v14  ;;  %v1651_v52 = vadd.f32 %v1587_v45, %v1147_v40  ;;  %v1797_v55 = vadd.f32 %v1733_v34, %v1293_v44  ;;  %v581_v53 = vmul.f32 %v4533_v25, %v4620_v16  ;;  %v4762_v44 = vld [vmem:[#allocation3 + $0x48] sm:$0xff]  ;;  %v4768_v34 = vld [vmem:[#allocation3 + $0x58] sm:$0xff] }
  0x4a   :  { %v1859_v56 = vrot.slane %v1505_v35, 7  ;;  %v1799_v49 = vadd.f32 %v1735_v51, %v1295_v60  ;;  %v727_v13 = vmul.f32 %v4539_v27, %v4620_v16  ;;  %v729_v11 = vmul.f32 %v4539_v27, %v4622_v17 }
  0x4b   :  { %v1891_v54 = vrot.slane %v1507_v48, 7  ;;  %v2052_v8 = vrot.slane %v1797_v55, 1  ;;  %v645_v30 = vadd.f32 %v581_v53, %v4521_v19  ;;  %v938_v5 = vmul.f32 %v4556_v39, %v4656_v63 }
  0x4c   :  { %v940_v14 = vmul.f32 %v4556_v39, %v4658_v0  ;;  %v2084_v21 = vrot.slane %v1799_v49, 1  ;;  %v1084_v28 = vmul.f32 %v4566_v43, %v4656_v63  ;;  %v1230_v16 = vmul.f32 %v4580_v50, %v4656_v63 }
  0x4d   :  { %v1956_v3 = vsel %vm1921_vm1, %v1891_v54, %v1859_v56  ;;  %v1002_v57 = vadd.f32 %v938_v5, %v435_v6  ;;  %v1232_v35 = vmul.f32 %v4580_v50, %v4658_v0  ;;  %v1442_v55 = vmul.f32 %v4592_v59, %v4762_v44 }
  0x4e   :  { %v1990_v40 = vmul.f32 %v4508_v10, %v1956_v3  ;;  %v1004_v60 = vadd.f32 %v940_v14, %v437_v32  ;;  %v2117_v45 = vsel %vm2114_vm3, %v2052_v8, %v2084_v21  ;;  %v1148_v48 = vadd.f32 %v1084_v28, %v645_v30 }
  0x4f   :  { %v1294_v51 = vadd.f32 %v1230_v16, %v727_v13  ;;  %v1296_v49 = vadd.f32 %v1232_v35, %v729_v11  ;;  %v1444_v3 = vmul.f32 %v4592_v59, %v4768_v34  ;;  %v1588_v6 = vmul.f32 %v4611_v12, %v4762_v44 }
  0x50   :  { %v2247_v53 = vadd.f32 %v1990_v40, %v1651_v52  ;;  %v1506_v32 = vadd.f32 %v1442_v55, %v1002_v57  ;;  %v1734_v5 = vmul.f32 %v4629_v7, %v4762_v44  ;;  %v1736_v14 = vmul.f32 %v4629_v7, %v4768_v34 }
  0x51   :  { %v582_v13 = vmul.f32 %v4530_v24, %v4543_v31  ;;  %v1508_v28 = vadd.f32 %v1444_v3, %v1004_v60  ;;  %v1652_v52 = vadd.f32 %v1588_v6, %v1148_v48  ;;  %v1085_v11 = vmul.f32 %v4563_v42, %v4597_v62 }
  0x52   :  { %v2311_v30 = vadd.f32 %v2247_v53, %v2117_v45  ;;  %v1798_v16 = vadd.f32 %v1734_v5, %v1294_v51  ;;  %v1800_v40 = vadd.f32 %v1736_v14, %v1296_v49  ;;  %v1860_v35 = vrot.slane %v1506_v32, 7 }
  0x53   :  { %v646_v57 = vadd.f32 %v582_v13, %v4518_v18  ;;  %v1892_v55 = vrot.slane %v1508_v28, 7  ;;  %v1589_v29 = vmul.f32 %v4602_v4, %v4726_v2  ;;  %v1924_v36 = vsel %vm1921_vm1, %v1859_v56, %v1891_v54 }
  0x54   :  { %2375 = vst [vmem:[#allocation8 + $0x20] sm:$0xff] %v2311_v30  ;;  %v2149_v31 = vsel %vm2114_vm3, %v2084_v21, %v2052_v8  ;;  %v2053_v60 = vrot.slane %v1798_v16, 1  ;;  %v2085_v45 = vrot.slane %v1800_v40, 1  ;;  %v583_v49 = vmul.f32 %v4533_v25, %v4622_v17 }
  0x55   :  { %v1149_v48 = vadd.f32 %v1085_v11, %v646_v57  ;;  %v2185_v51 = vmul.f32 %v4678_v46, %v2149_v31  ;;  %v1957_v53 = vsel %vm1921_vm1, %v1892_v55, %v1860_v35  ;;  %v1086_v3 = vmul.f32 %v4566_v43, %v4658_v0 }
  0x56   :  { %v1590_v56 = vmul.f32 %v4611_v12, %v4768_v34  ;;  %v1991_v54 = vmul.f32 %v4508_v10, %v1957_v53  ;;  %v2118_v8 = vsel %vm2114_vm3, %v2053_v60, %v2085_v45  ;;  %v1925_v6 = vsel %vm1921_vm1, %v1860_v35, %v1892_v55 }
  0x57   :  { %v1653_v21 = vadd.f32 %v1589_v29, %v1149_v48  ;;  %v647_v32 = vadd.f32 %v583_v49, %v4521_v19  ;;  %v2150_v17 = vsel %vm2114_vm3, %v2085_v45, %v2053_v60  ;;  %v438_v5 = vmul.f32 %v4525_v22, %v4595_v61  ;;  %v4824_v60 = vld [vmem:[#allocation3 + $0x60] sm:$0xff]  ;;  %v4826_v45 = vld [vmem:[#allocation3 + $0x70] sm:$0xff] }
  0x58   :  { %v440_v14 = vmul.f32 %v4525_v22, %v4597_v62  ;;  %v2248_v13 = vadd.f32 %v1991_v54, %v1652_v52  ;;  %v2186_v28 = vmul.f32 %v4678_v46, %v2150_v17  ;;  %v584_v29 = vmul.f32 %v4530_v24, %v4595_v61 }
  0x59   :  { %v2249_v30 = vadd.f32 %v1924_v36, %v1653_v21  ;;  %v1150_v11 = vadd.f32 %v1086_v3, %v647_v32  ;;  %v730_v16 = vmul.f32 %v4536_v26, %v4595_v61  ;;  %v732_v40 = vmul.f32 %v4536_v26, %v4597_v62 }
  0x5a   :  { %v941_v35 = vmul.f32 %v4554_v38, %v4719_v9  ;;  %v2312_v57 = vadd.f32 %v2248_v13, %v2118_v8  ;;  %v648_v52 = vadd.f32 %v584_v29, %v4518_v18  ;;  %v943_v36 = vmul.f32 %v4554_v38, %v4726_v2 }
  0x5b   :  { %v2313_v55 = vadd.f32 %v2249_v30, %v2185_v51  ;;  %v1654_v31 = vadd.f32 %v1590_v56, %v1150_v11  ;;  %v1087_v61 = vmul.f32 %v4563_v42, %v4719_v9  ;;  %v1233_v53 = vmul.f32 %v4574_v47, %v4719_v9 }
  0x5c   :  { %v1005_v48 = vadd.f32 %v941_v35, %v438_v5  ;;  %2376 = vst [vmem:[#allocation8 + $0x28] sm:$0xff] %v2312_v57  ;;  %v1007_v51 = vadd.f32 %v943_v36, %v440_v14  ;;  %v1235_v49 = vmul.f32 %v4574_v47, %v4726_v2  ;;  %v1445_v3 = vmul.f32 %v4590_v58, %v4824_v60 }
  0x5d   :  { %2377 = vst [vmem:[#allocation8 + $0x30] sm:$0xff] %v2313_v55  ;;  %v1447_v56 = vmul.f32 %v4590_v58, %v4826_v45  ;;  %v2250_v54 = vadd.f32 %v1925_v6, %v1654_v31  ;;  %v1151_v8 = vadd.f32 %v1087_v61, %v648_v52  ;;  %v1297_v21 = vadd.f32 %v1233_v53, %v730_v16 }
  0x5e   :  { %v1591_v32 = vmul.f32 %v4602_v4, %v4824_v60  ;;  %v1299_v17 = vadd.f32 %v1235_v49, %v732_v40  ;;  %v1509_v5 = vadd.f32 %v1445_v3, %v1005_v48  ;;  %v1737_v14 = vmul.f32 %v4618_v15, %v4824_v60 }
  0x5f   :  { %v1511_v13 = vadd.f32 %v1447_v56, %v1007_v51  ;;  %v2314_v30 = vadd.f32 %v2250_v54, %v2186_v28  ;;  %v1739_v11 = vmul.f32 %v4618_v15, %v4826_v45  ;;  %v439_v35 = vmul.f32 %v4527_v23, %v4656_v63  ;;  %v4864_v56 = vld [vmem:[#allocation3 + $0x68] sm:$0xff] }
  0x60   :  { %v1655_v29 = vadd.f32 %v1591_v32, %v1151_v8  ;;  %v1801_v6 = vadd.f32 %v1737_v14, %v1297_v21  ;;  %v1861_v57 = vrot.slane %v1509_v5, 7  ;;  %v441_v55 = vmul.f32 %v4527_v23, %v4658_v0 }
  0x61   :  { %v1893_v16 = vrot.slane %v1511_v13, 7  ;;  %2378 = vst [vmem:[#allocation8 + $0x38] sm:$0xff] %v2314_v30  ;;  %v1803_v40 = vadd.f32 %v1739_v11, %v1299_v17  ;;  %v585_v52 = vmul.f32 %v4533_v25, %v4656_v63  ;;  %v731_v28 = vmul.f32 %v4539_v27, %v4656_v63  ;;  %v4872_v13 = vld [vmem:[#allocation3 + $0x78] sm:$0xff] }
  0x62   :  { %v733_v36 = vmul.f32 %v4539_v27, %v4658_v0  ;;  %v2054_v48 = vrot.slane %v1801_v6, 1  ;;  %v942_v61 = vmul.f32 %v4556_v39, %v4762_v44  ;;  %v944_v53 = vmul.f32 %v4556_v39, %v4768_v34 }
  0x63   :  { %v1958_v31 = vsel %vm1921_vm1, %v1893_v16, %v1861_v57  ;;  %v2086_v49 = vrot.slane %v1803_v40, 1  ;;  %v649_v3 = vadd.f32 %v585_v52, %v4521_v19  ;;  %v1088_v63 = vmul.f32 %v4566_v43, %v4762_v44 }
  0x64   :  { %v1994_v51 = vmul.f32 %v4508_v10, %v1958_v31  ;;  %v1006_v54 = vadd.f32 %v942_v61, %v439_v35  ;;  %v1008_v8 = vadd.f32 %v944_v53, %v441_v55  ;;  %v1234_v21 = vmul.f32 %v4580_v50, %v4762_v44 }
  0x65   :  { %v1236_v32 = vmul.f32 %v4580_v50, %v4768_v34  ;;  %v2119_v17 = vsel %vm2114_vm3, %v2054_v48, %v2086_v49  ;;  %v1152_v14 = vadd.f32 %v1088_v63, %v649_v3  ;;  %v1446_v30 = vmul.f32 %v4592_v59, %v4864_v56 }
  0x66   :  { %v2251_v5 = vadd.f32 %v1994_v51, %v1655_v29  ;;  %v1298_v11 = vadd.f32 %v1234_v21, %v731_v28  ;;  %v1448_v35 = vmul.f32 %v4592_v59, %v4872_v13  ;;  %v1592_v55 = vmul.f32 %v4611_v12, %v4864_v56 }
  0x67   :  { %v1300_v6 = vadd.f32 %v1236_v32, %v733_v36  ;;  %v1510_v52 = vadd.f32 %v1446_v30, %v1006_v54  ;;  %v1738_v31 = vmul.f32 %v4629_v7, %v4864_v56  ;;  %v1740_v29 = vmul.f32 %v4629_v7, %v4872_v13 }
  0x68   :  { %v2315_v40 = vadd.f32 %v2251_v5, %v2119_v17  ;;  %v1512_v61 = vadd.f32 %v1448_v35, %v1008_v8  ;;  %v1656_v53 = vadd.f32 %v1592_v55, %v1152_v14  ;;  %v586_v28 = vmul.f32 %v4530_v24, %v4597_v62 }
  0x69   :  { %v1089_v36 = vmul.f32 %v4563_v42, %v4726_v2  ;;  %v1802_v51 = vadd.f32 %v1738_v31, %v1298_v11  ;;  %v1804_v3 = vadd.f32 %v1740_v29, %v1300_v6  ;;  %v1862_v63 = vrot.slane %v1510_v52, 7 }
  0x6a   :  { %2379 = vst [vmem:[#allocation8 + $0x40] sm:$0xff] %v2315_v40  ;;  %v1593_v54 = vmul.f32 %v4602_v4, %v4826_v45  ;;  %v1894_v21 = vrot.slane %v1512_v61, 7  ;;  %v650_v32 = vadd.f32 %v586_v28, %v4518_v18  ;;  %v1926_v8 = vsel %vm1921_vm1, %v1861_v57, %v1893_v16 }
  0x6b   :  { %v2151_v17 = vsel %vm2114_vm3, %v2086_v49, %v2054_v48  ;;  %v2055_v62 = vrot.slane %v1802_v51, 1  ;;  %v2087_v5 = vrot.slane %v1804_v3, 1  ;;  %v587_v30 = vmul.f32 %v4533_v25, %v4658_v0 }
  0x6c   :  { %v2189_v14 = vmul.f32 %v4678_v46, %v2151_v17  ;;  %v1959_v11 = vsel %vm1921_vm1, %v1894_v21, %v1862_v63  ;;  %v1153_v6 = vadd.f32 %v1089_v36, %v650_v32  ;;  %v1090_v35 = vmul.f32 %v4566_v43, %v4768_v34 }
  0x6d   :  { %v1594_v57 = vmul.f32 %v4611_v12, %v4872_v13  ;;  %v1995_v16 = vmul.f32 %v4508_v10, %v1959_v11  ;;  %v2120_v48 = vsel %vm2114_vm3, %v2055_v62, %v2087_v5  ;;  %v651_v49 = vadd.f32 %v587_v30, %v4521_v19 }
  0x6e   :  { %v1927_v0 = vsel %vm1921_vm1, %v1862_v63, %v1894_v21  ;;  %v1657_v55 = vadd.f32 %v1593_v54, %v1153_v6  ;;  %v2152_v40 = vsel %vm2114_vm3, %v2087_v5, %v2055_v62  ;;  %v442_v52 = vmul.f32 %v4525_v22, %v4719_v9  ;;  %v4928_v5 = vld [vmem:[#allocation3 + $0x80] sm:$0xff]  ;;  %v4934_v6 = vld [vmem:[#allocation3 + $0x90] sm:$0xff] }
  0x6f   :  { %v444_v31 = vmul.f32 %v4525_v22, %v4726_v2  ;;  %v2252_v29 = vadd.f32 %v1995_v16, %v1656_v53  ;;  %v1154_v61 = vadd.f32 %v1090_v35, %v651_v49  ;;  %v2190_v28 = vmul.f32 %v4678_v46, %v2152_v40 }
  0x70   :  { %v588_v36 = vmul.f32 %v4530_v24, %v4719_v9  ;;  %v2253_v51 = vadd.f32 %v1926_v8, %v1657_v55  ;;  %v734_v3 = vmul.f32 %v4536_v26, %v4719_v9  ;;  %v736_v63 = vmul.f32 %v4536_v26, %v4726_v2 }
  0x71   :  { %v945_v54 = vmul.f32 %v4554_v38, %v4824_v60  ;;  %v2316_v21 = vadd.f32 %v2252_v29, %v2120_v48  ;;  %v1658_v32 = vadd.f32 %v1594_v57, %v1154_v61  ;;  %v947_v17 = vmul.f32 %v4554_v38, %v4826_v45 }
  0x72   :  { %v652_v53 = vadd.f32 %v588_v36, %v4518_v18  ;;  %v2317_v62 = vadd.f32 %v2253_v51, %v2189_v14  ;;  %v1091_v9 = vmul.f32 %v4563_v42, %v4824_v60  ;;  %v1237_v30 = vmul.f32 %v4574_v47, %v4824_v60 }
  0x73   :  { %v1009_v8 = vadd.f32 %v945_v54, %v442_v52  ;;  %2380 = vst [vmem:[#allocation8 + $0x48] sm:$0xff] %v2316_v21  ;;  %v2254_v11 = vadd.f32 %v1927_v0, %v1658_v32  ;;  %v1011_v35 = vadd.f32 %v947_v17, %v444_v31  ;;  %v1239_v57 = vmul.f32 %v4574_v47, %v4826_v45 }
  0x74   :  { %v1449_v14 = vmul.f32 %v4590_v58, %v4928_v5  ;;  %2381 = vst [vmem:[#allocation8 + $0x50] sm:$0xff] %v2317_v62  ;;  %v1155_v16 = vadd.f32 %v1091_v9, %v652_v53  ;;  %v1301_v48 = vadd.f32 %v1237_v30, %v734_v3  ;;  %v1451_v49 = vmul.f32 %v4590_v58, %v4934_v6 }
  0x75   :  { %v1595_v55 = vmul.f32 %v4602_v4, %v4928_v5  ;;  %v2318_v40 = vadd.f32 %v2254_v11, %v2190_v28  ;;  %v1303_v0 = vadd.f32 %v1239_v57, %v736_v63  ;;  %v1741_v31 = vmul.f32 %v4618_v15, %v4928_v5 }
  0x76   :  { %v1513_v52 = vadd.f32 %v1449_v14, %v1009_v8  ;;  %v1515_v29 = vadd.f32 %v1451_v49, %v1011_v35  ;;  %v1743_v36 = vmul.f32 %v4618_v15, %v4934_v6  ;;  %v443_v51 = vmul.f32 %v4527_v23, %v4762_v44 }
  0x77   :  { %v1659_v61 = vadd.f32 %v1595_v55, %v1155_v16  ;;  %2382 = vst [vmem:[#allocation8 + $0x58] sm:$0xff] %v2318_v40  ;;  %v1805_v3 = vadd.f32 %v1741_v31, %v1301_v48  ;;  %v445_v21 = vmul.f32 %v4527_v23, %v4768_v34  ;;  %v589_v28 = vmul.f32 %v4533_v25, %v4762_v44  ;;  %v4970_v16 = vld [vmem:[#allocation3 + $0x88] sm:$0xff] }
  0x78   :  { %v1863_v54 = vrot.slane %v1513_v52, 7  ;;  %v1807_v63 = vadd.f32 %v1743_v36, %v1303_v0  ;;  %v1895_v32 = vrot.slane %v1515_v29, 7  ;;  %v735_v53 = vmul.f32 %v4539_v27, %v4762_v44  ;;  %v4976_v0 = vld [vmem:[#allocation3 + $0x98] sm:$0xff] }
  0x79   :  { %v737_v17 = vmul.f32 %v4539_v27, %v4768_v34  ;;  %v2056_v62 = vrot.slane %v1805_v3, 1  ;;  %v653_v8 = vadd.f32 %v589_v28, %v4521_v19  ;;  %v946_v9 = vmul.f32 %v4556_v39, %v4864_v56 }
  0x7a   :  { %v948_v30 = vmul.f32 %v4556_v39, %v4872_v13  ;;  %v1960_v11 = vsel %vm1921_vm1, %v1895_v32, %v1863_v54  ;;  %v2088_v35 = vrot.slane %v1807_v63, 1  ;;  %v1092_v57 = vmul.f32 %v4566_v43, %v4864_v56 }
  0x7b   :  { %v1238_v44 = vmul.f32 %v4580_v50, %v4864_v56  ;;  %v1998_v14 = vmul.f32 %v4508_v10, %v1960_v11  ;;  %v1010_v48 = vadd.f32 %v946_v9, %v443_v51  ;;  %v1240_v55 = vmul.f32 %v4580_v50, %v4872_v13 }
  0x7c   :  { %v1012_v49 = vadd.f32 %v948_v30, %v445_v21  ;;  %v2121_v40 = vsel %vm2114_vm3, %v2056_v62, %v2088_v35  ;;  %v1156_v52 = vadd.f32 %v1092_v57, %v653_v8  ;;  %v1450_v29 = vmul.f32 %v4592_v59, %v4970_v16 }
  0x7d   :  { %v1302_v31 = vadd.f32 %v1238_v44, %v735_v53  ;;  %v2255_v36 = vadd.f32 %v1998_v14, %v1659_v61  ;;  %v1304_v3 = vadd.f32 %v1240_v55, %v737_v17  ;;  %v1452_v28 = vmul.f32 %v4592_v59, %v4976_v0 }
  0x7e   :  { %v1596_v51 = vmul.f32 %v4611_v12, %v4970_v16  ;;  %v1514_v21 = vadd.f32 %v1450_v29, %v1010_v48  ;;  %v1742_v63 = vmul.f32 %v4629_v7, %v4970_v16  ;;  %v1744_v9 = vmul.f32 %v4629_v7, %v4976_v0 }
  0x7f   :  { %v590_v53 = vmul.f32 %v4530_v24, %v4726_v2  ;;  %v2319_v8 = vadd.f32 %v2255_v36, %v2121_v40  ;;  %v1516_v30 = vadd.f32 %v1452_v28, %v1012_v49  ;;  %v1093_v17 = vmul.f32 %v4563_v42, %v4826_v45 }
  0x80   :  { %v1660_v61 = vadd.f32 %v1596_v51, %v1156_v52  ;;  %v1806_v11 = vadd.f32 %v1742_v63, %v1302_v31  ;;  %v1808_v57 = vadd.f32 %v1744_v9, %v1304_v3  ;;  %v1864_v44 = vrot.slane %v1514_v21, 7 }
  0x81   :  { %v654_v14 = vadd.f32 %v590_v53, %v4518_v18  ;;  %2383 = vst [vmem:[#allocation8 + $0x60] sm:$0xff] %v2319_v8  ;;  %v1896_v48 = vrot.slane %v1516_v30, 7  ;;  %v1597_v55 = vmul.f32 %v4602_v4, %v4934_v6  ;;  %v1928_v29 = vsel %vm1921_vm1, %v1863_v54, %v1895_v32 }
  0x82   :  { %v2153_v2 = vsel %vm2114_vm3, %v2088_v35, %v2056_v62  ;;  %v2057_v49 = vrot.slane %v1806_v11, 1  ;;  %v2089_v40 = vrot.slane %v1808_v57, 1  ;;  %v591_v3 = vmul.f32 %v4533_v25, %v4768_v34 }
  0x83   :  { %v1157_v52 = vadd.f32 %v1093_v17, %v654_v14  ;;  %v2193_v31 = vmul.f32 %v4678_v46, %v2153_v2  ;;  %v1961_v36 = vsel %vm1921_vm1, %v1896_v48, %v1864_v44  ;;  %v1094_v28 = vmul.f32 %v4566_v43, %v4872_v13 }
  0x84   :  { %v1598_v54 = vmul.f32 %v4611_v12, %v4976_v0  ;;  %v1999_v32 = vmul.f32 %v4508_v10, %v1961_v36  ;;  %v2122_v62 = vsel %vm2114_vm3, %v2057_v49, %v2089_v40  ;;  %v1929_v51 = vsel %vm1921_vm1, %v1864_v44, %v1896_v48 }
  0x85   :  { %v1661_v35 = vadd.f32 %v1597_v55, %v1157_v52  ;;  %v655_v21 = vadd.f32 %v591_v3, %v4521_v19  ;;  %v2154_v34 = vsel %vm2114_vm3, %v2089_v40, %v2057_v49  ;;  %v446_v63 = vmul.f32 %v4525_v22, %v4824_v60  ;;  %v5032_v49 = vld [vmem:[#allocation3 + $0xa0] sm:$0xff]  ;;  %v5034_v40 = vld [vmem:[#allocation3 + $0xb0] sm:$0xff] }
  0x86   :  { %v448_v9 = vmul.f32 %v4525_v22, %v4826_v45  ;;  %v2256_v53 = vadd.f32 %v1999_v32, %v1660_v61  ;;  %v2194_v30 = vmul.f32 %v4678_v46, %v2154_v34  ;;  %v592_v17 = vmul.f32 %v4530_v24, %v4824_v60 }
  0x87   :  { %v2257_v8 = vadd.f32 %v1928_v29, %v1661_v35  ;;  %v1158_v11 = vadd.f32 %v1094_v28, %v655_v21  ;;  %v738_v57 = vmul.f32 %v4536_v26, %v4824_v60  ;;  %v740_v44 = vmul.f32 %v4536_v26, %v4826_v45 }
  0x88   :  { %v949_v14 = vmul.f32 %v4554_v38, %v4928_v5  ;;  %v2320_v48 = vadd.f32 %v2256_v53, %v2122_v62  ;;  %v656_v61 = vadd.f32 %v592_v17, %v4518_v18  ;;  %v951_v29 = vmul.f32 %v4554_v38, %v4934_v6 }
  0x89   :  { %v2321_v55 = vadd.f32 %v2257_v8, %v2193_v31  ;;  %v1662_v2 = vadd.f32 %v1598_v54, %v1158_v11  ;;  %v1095_v60 = vmul.f32 %v4563_v42, %v4928_v5  ;;  %v1241_v36 = vmul.f32 %v4574_v47, %v4928_v5 }
  0x8a   :  { %v1013_v52 = vadd.f32 %v949_v14, %v446_v63  ;;  %2384 = vst [vmem:[#allocation8 + $0x68] sm:$0xff] %v2320_v48  ;;  %v1015_v31 = vadd.f32 %v951_v29, %v448_v9  ;;  %v1243_v3 = vmul.f32 %v4574_v47, %v4934_v6  ;;  %v1453_v28 = vmul.f32 %v4590_v58, %v5032_v49 }
  0x8b   :  { %2385 = vst [vmem:[#allocation8 + $0x70] sm:$0xff] %v2321_v55  ;;  %v1455_v54 = vmul.f32 %v4590_v58, %v5034_v40  ;;  %v2258_v32 = vadd.f32 %v1929_v51, %v1662_v2  ;;  %v1159_v62 = vadd.f32 %v1095_v60, %v656_v61  ;;  %v1305_v35 = vadd.f32 %v1241_v36, %v738_v57 }
  0x8c   :  { %v1599_v21 = vmul.f32 %v4602_v4, %v5032_v49  ;;  %v1307_v34 = vadd.f32 %v1243_v3, %v740_v44  ;;  %v1517_v63 = vadd.f32 %v1453_v28, %v1013_v52  ;;  %v1745_v9 = vmul.f32 %v4618_v15, %v5032_v49 }
  0x8d   :  { %v1519_v53 = vadd.f32 %v1455_v54, %v1015_v31  ;;  %v2322_v8 = vadd.f32 %v2258_v32, %v2194_v30  ;;  %v1747_v11 = vmul.f32 %v4618_v15, %v5034_v40  ;;  %v447_v14 = vmul.f32 %v4527_v23, %v4864_v56  ;;  %v5072_v54 = vld [vmem:[#allocation3 + $0xa8] sm:$0xff] }
  0x8e   :  { %v1663_v17 = vadd.f32 %v1599_v21, %v1159_v62  ;;  %v1809_v51 = vadd.f32 %v1745_v9, %v1305_v35  ;;  %v1865_v48 = vrot.slane %v1517_v63, 7  ;;  %v449_v55 = vmul.f32 %v4527_v23, %v4872_v13 }
  0x8f   :  { %v1897_v57 = vrot.slane %v1519_v53, 7  ;;  %2386 = vst [vmem:[#allocation8 + $0x78] sm:$0xff] %v2322_v8  ;;  %v1811_v44 = vadd.f32 %v1747_v11, %v1307_v34  ;;  %v593_v61 = vmul.f32 %v4533_v25, %v4864_v56  ;;  %v739_v30 = vmul.f32 %v4539_v27, %v4864_v56  ;;  %v5080_v53 = vld [vmem:[#allocation3 + $0xb8] sm:$0xff] }
  0x90   :  { %v741_v29 = vmul.f32 %v4539_v27, %v4872_v13  ;;  %v2058_v52 = vrot.slane %v1809_v51, 1  ;;  %v950_v60 = vmul.f32 %v4556_v39, %v4970_v16  ;;  %v952_v36 = vmul.f32 %v4556_v39, %v4976_v0 }
  0x91   :  { %v1962_v2 = vsel %vm1921_vm1, %v1897_v57, %v1865_v48  ;;  %v2090_v3 = vrot.slane %v1811_v44, 1  ;;  %v657_v28 = vadd.f32 %v593_v61, %v4521_v19  ;;  %v1096_v56 = vmul.f32 %v4566_v43, %v4970_v16 }
  0x92   :  { %v2002_v31 = vmul.f32 %v4508_v10, %v1962_v2  ;;  %v1014_v32 = vadd.f32 %v950_v60, %v447_v14  ;;  %v1016_v62 = vadd.f32 %v952_v36, %v449_v55  ;;  %v1242_v35 = vmul.f32 %v4580_v50, %v4970_v16 }
  0x93   :  { %v1244_v21 = vmul.f32 %v4580_v50, %v4976_v0  ;;  %v2123_v34 = vsel %vm2114_vm3, %v2058_v52, %v2090_v3  ;;  %v1160_v9 = vadd.f32 %v1096_v56, %v657_v28  ;;  %v1454_v8 = vmul.f32 %v4592_v59, %v5072_v54 }
  0x94   :  { %v2259_v63 = vadd.f32 %v2002_v31, %v1663_v17  ;;  %v1306_v11 = vadd.f32 %v1242_v35, %v739_v30  ;;  %v1456_v14 = vmul.f32 %v4592_v59, %v5080_v53  ;;  %v1600_v55 = vmul.f32 %v4611_v12, %v5072_v54 }
  0x95   :  { %v1308_v51 = vadd.f32 %v1244_v21, %v741_v29  ;;  %v1518_v61 = vadd.f32 %v1454_v8, %v1014_v32  ;;  %v1746_v2 = vmul.f32 %v4629_v7, %v5072_v54  ;;  %v1748_v17 = vmul.f32 %v4629_v7, %v5080_v53 }
  0x96   :  { %v2323_v44 = vadd.f32 %v2259_v63, %v2123_v34  ;;  %v1520_v60 = vadd.f32 %v1456_v14, %v1016_v62  ;;  %v1664_v36 = vadd.f32 %v1600_v55, %v1160_v9  ;;  %v594_v30 = vmul.f32 %v4530_v24, %v4826_v45 }
  0x97   :  { %v1097_v29 = vmul.f32 %v4563_v42, %v4934_v6  ;;  %v1810_v31 = vadd.f32 %v1746_v2, %v1306_v11  ;;  %v1812_v28 = vadd.f32 %v1748_v17, %v1308_v51  ;;  %v1866_v56 = vrot.slane %v1518_v61, 7 }
  0x98   :  { %2387 = vst [vmem:[#allocation8 + $0x80] sm:$0xff] %v2323_v44  ;;  %v1601_v32 = vmul.f32 %v4602_v4, %v5034_v40  ;;  %v1898_v35 = vrot.slane %v1520_v60, 7  ;;  %v658_v21 = vadd.f32 %v594_v30, %v4518_v18  ;;  %v1930_v62 = vsel %vm1921_vm1, %v1865_v48, %v1897_v57 }
  0x99   :  { %v2155_v34 = vsel %vm2114_vm3, %v2090_v3, %v2058_v52  ;;  %v2059_v45 = vrot.slane %v1810_v31, 1  ;;  %v2091_v63 = vrot.slane %v1812_v28, 1  ;;  %v595_v8 = vmul.f32 %v4533_v25, %v4872_v13 }
  0x9a   :  { %v2197_v9 = vmul.f32 %v4678_v46, %v2155_v34  ;;  %v1963_v11 = vsel %vm1921_vm1, %v1898_v35, %v1866_v56  ;;  %v1161_v51 = vadd.f32 %v1097_v29, %v658_v21  ;;  %v1098_v14 = vmul.f32 %v4566_v43, %v4976_v0 }
  0x9b   :  { %v1602_v48 = vmul.f32 %v4611_v12, %v5080_v53  ;;  %v2003_v57 = vmul.f32 %v4508_v10, %v1963_v11  ;;  %v2124_v52 = vsel %vm2114_vm3, %v2059_v45, %v2091_v63  ;;  %v659_v3 = vadd.f32 %v595_v8, %v4521_v19 }
  0x9c   :  { %v1931_v13 = vsel %vm1921_vm1, %v1866_v56, %v1898_v35  ;;  %v1665_v55 = vadd.f32 %v1601_v32, %v1161_v51  ;;  %v2156_v44 = vsel %vm2114_vm3, %v2091_v63, %v2059_v45  ;;  %v450_v61 = vmul.f32 %v4525_v22, %v4928_v5  ;;  %v5136_v63 = vld [vmem:[#allocation3 + $0xc0] sm:$0xff]  ;;  %v5142_v51 = vld [vmem:[#allocation3 + $0xd0] sm:$0xff] }
  0x9d   :  { %v452_v2 = vmul.f32 %v4525_v22, %v4934_v6  ;;  %v2260_v17 = vadd.f32 %v2003_v57, %v1664_v36  ;;  %v1162_v60 = vadd.f32 %v1098_v14, %v659_v3  ;;  %v2198_v30 = vmul.f32 %v4678_v46, %v2156_v44 }
  0x9e   :  { %v596_v29 = vmul.f32 %v4530_v24, %v4928_v5  ;;  %v2261_v31 = vadd.f32 %v1930_v62, %v1665_v55  ;;  %v742_v28 = vmul.f32 %v4536_v26, %v4928_v5  ;;  %v744_v56 = vmul.f32 %v4536_v26, %v4934_v6 }
  0x9f   :  { %v953_v32 = vmul.f32 %v4554_v38, %v5032_v49  ;;  %v2324_v35 = vadd.f32 %v2260_v17, %v2124_v52  ;;  %v1666_v21 = vadd.f32 %v1602_v48, %v1162_v60  ;;  %v955_v34 = vmul.f32 %v4554_v38, %v5034_v40 }
  0xa0   :  { %v660_v36 = vadd.f32 %v596_v29, %v4518_v18  ;;  %v2325_v45 = vadd.f32 %v2261_v31, %v2197_v9  ;;  %v1099_v5 = vmul.f32 %v4563_v42, %v5032_v49  ;;  %v1245_v8 = vmul.f32 %v4574_v47, %v5032_v49 }
  0xa1   :  { %v1017_v62 = vadd.f32 %v953_v32, %v450_v61  ;;  %2388 = vst [vmem:[#allocation8 + $0x88] sm:$0xff] %v2324_v35  ;;  %v2262_v11 = vadd.f32 %v1931_v13, %v1666_v21  ;;  %v1019_v14 = vadd.f32 %v955_v34, %v452_v2  ;;  %v1247_v48 = vmul.f32 %v4574_v47, %v5034_v40 }
  0xa2   :  { %v1457_v9 = vmul.f32 %v4590_v58, %v5136_v63  ;;  %2389 = vst [vmem:[#allocation8 + $0x90] sm:$0xff] %v2325_v45  ;;  %v1163_v57 = vadd.f32 %v1099_v5, %v660_v36  ;;  %v1309_v52 = vadd.f32 %v1245_v8, %v742_v28  ;;  %v1459_v3 = vmul.f32 %v4590_v58, %v5142_v51 }
  0xa3   :  { %v1603_v55 = vmul.f32 %v4602_v4, %v5136_v63  ;;  %v2326_v44 = vadd.f32 %v2262_v11, %v2198_v30  ;;  %v1311_v13 = vadd.f32 %v1247_v48, %v744_v56  ;;  %v1749_v2 = vmul.f32 %v4618_v15, %v5136_v63 }
  0xa4   :  { %v1521_v61 = vadd.f32 %v1457_v9, %v1017_v62  ;;  %v1523_v17 = vadd.f32 %v1459_v3, %v1019_v14  ;;  %v1751_v29 = vmul.f32 %v4618_v15, %v5142_v51  ;;  %v451_v31 = vmul.f32 %v4527_v23, %v4970_v16 }
  0xa5   :  { %v1667_v60 = vadd.f32 %v1603_v55, %v1163_v57  ;;  %2390 = vst [vmem:[#allocation8 + $0x98] sm:$0xff] %v2326_v44  ;;  %v1813_v28 = vadd.f32 %v1749_v2, %v1309_v52  ;;  %v453_v35 = vmul.f32 %v4527_v23, %v4976_v0  ;;  %v597_v30 = vmul.f32 %v4533_v25, %v4970_v16  ;;  %v5178_v57 = vld [vmem:[#allocation3 + $0xc8] sm:$0xff] }
  0xa6   :  { %v1867_v32 = vrot.slane %v1521_v61, 7  ;;  %v1815_v56 = vadd.f32 %v1751_v29, %v1311_v13  ;;  %v1899_v21 = vrot.slane %v1523_v17, 7  ;;  %v743_v36 = vmul.f32 %v4539_v27, %v4970_v16  ;;  %v5184_v13 = vld [vmem:[#allocation3 + $0xd8] sm:$0xff] }
  0xa7   :  { %v745_v34 = vmul.f32 %v4539_v27, %v4976_v0  ;;  %v2060_v45 = vrot.slane %v1813_v28, 1  ;;  %v661_v62 = vadd.f32 %v597_v30, %v4521_v19  ;;  %v954_v5 = vmul.f32 %v4556_v39, %v5072_v54 }
  0xa8   :  { %v956_v8 = vmul.f32 %v4556_v39, %v5080_v53  ;;  %v1964_v11 = vsel %vm1921_vm1, %v1899_v21, %v1867_v32  ;;  %v2092_v14 = vrot.slane %v1815_v56, 1  ;;  %v1100_v48 = vmul.f32 %v4566_v43, %v5072_v54 }
  0xa9   :  { %v1246_v16 = vmul.f32 %v4580_v50, %v5072_v54  ;;  %v2006_v9 = vmul.f32 %v4508_v10, %v1964_v11  ;;  %v1018_v52 = vadd.f32 %v954_v5, %v451_v31  ;;  %v1248_v55 = vmul.f32 %v4580_v50, %v5080_v53 }
  0xaa   :  { %v1020_v3 = vadd.f32 %v956_v8, %v453_v35  ;;  %v2125_v44 = vsel %vm2114_vm3, %v2060_v45, %v2092_v14  ;;  %v1164_v61 = vadd.f32 %v1100_v48, %v661_v62  ;;  %v1458_v17 = vmul.f32 %v4592_v59, %v5178_v57 }
  0xab   :  { %v1310_v2 = vadd.f32 %v1246_v16, %v743_v36  ;;  %v2263_v29 = vadd.f32 %v2006_v9, %v1667_v60  ;;  %v1312_v28 = vadd.f32 %v1248_v55, %v745_v34  ;;  %v1460_v30 = vmul.f32 %v4592_v59, %v5184_v13 }
  0xac   :  { %v1604_v31 = vmul.f32 %v4611_v12, %v5178_v57  ;;  %v1522_v35 = vadd.f32 %v1458_v17, %v1018_v52  ;;  %v1750_v56 = vmul.f32 %v4629_v7, %v5178_v57  ;;  %v1752_v5 = vmul.f32 %v4629_v7, %v5184_v13 }
  0xad   :  { %v598_v36 = vmul.f32 %v4530_v24, %v4934_v6  ;;  %v2327_v62 = vadd.f32 %v2263_v29, %v2125_v44  ;;  %v1524_v8 = vadd.f32 %v1460_v30, %v1020_v3  ;;  %v1101_v34 = vmul.f32 %v4563_v42, %v5034_v40 }
  0xae   :  { %v1668_v60 = vadd.f32 %v1604_v31, %v1164_v61  ;;  %v1814_v11 = vadd.f32 %v1750_v56, %v1310_v2  ;;  %v1816_v48 = vadd.f32 %v1752_v5, %v1312_v28  ;;  %v1868_v16 = vrot.slane %v1522_v35, 7 }
  0xaf   :  { %v662_v9 = vadd.f32 %v598_v36, %v4518_v18  ;;  %2391 = vst [vmem:[#allocation8 + $0xa0] sm:$0xff] %v2327_v62  ;;  %v1900_v52 = vrot.slane %v1524_v8, 7  ;;  %v1605_v55 = vmul.f32 %v4602_v4, %v5142_v51  ;;  %v1932_v17 = vsel %vm1921_vm1, %v1867_v32, %v1899_v21 }
  0xb0   :  { %v2157_v6 = vsel %vm2114_vm3, %v2092_v14, %v2060_v45  ;;  %v2061_v3 = vrot.slane %v1814_v11, 1  ;;  %v2093_v44 = vrot.slane %v1816_v48, 1  ;;  %v599_v28 = vmul.f32 %v4533_v25, %v4976_v0 }
  0xb1   :  { %v1165_v61 = vadd.f32 %v1101_v34, %v662_v9  ;;  %v2201_v2 = vmul.f32 %v4678_v46, %v2157_v6  ;;  %v1965_v29 = vsel %vm1921_vm1, %v1900_v52, %v1868_v16  ;;  %v1102_v30 = vmul.f32 %v4566_v43, %v5080_v53 }
  0xb2   :  { %v1606_v32 = vmul.f32 %v4611_v12, %v5184_v13  ;;  %v2007_v21 = vmul.f32 %v4508_v10, %v1965_v29  ;;  %v2126_v45 = vsel %vm2114_vm3, %v2061_v3, %v2093_v44  ;;  %v1933_v31 = vsel %vm1921_vm1, %v1868_v16, %v1900_v52 }
  0xb3   :  { %v1669_v14 = vadd.f32 %v1605_v55, %v1165_v61  ;;  %v663_v35 = vadd.f32 %v599_v28, %v4521_v19  ;;  %v2158_v0 = vsel %vm2114_vm3, %v2093_v44, %v2061_v3  ;;  %v454_v56 = vmul.f32 %v4525_v22, %v5032_v49  ;;  %v5240_v3 = vld [vmem:[#allocation3 + $0xe0] sm:$0xff]  ;;  %v5242_v44 = vld [vmem:[#allocation3 + $0xf0] sm:$0xff] }
  0xb4   :  { %v456_v5 = vmul.f32 %v4525_v22, %v5034_v40  ;;  %v2264_v36 = vadd.f32 %v2007_v21, %v1668_v60  ;;  %v2202_v8 = vmul.f32 %v4678_v46, %v2158_v0  ;;  %v600_v34 = vmul.f32 %v4530_v24, %v5032_v49 }
  0xb5   :  { %v2265_v62 = vadd.f32 %v1932_v17, %v1669_v14  ;;  %v1166_v11 = vadd.f32 %v1102_v30, %v663_v35  ;;  %v746_v48 = vmul.f32 %v4536_v26, %v5032_v49  ;;  %v748_v16 = vmul.f32 %v4536_v26, %v5034_v40 }
  0xb6   :  { %v957_v9 = vmul.f32 %v4554_v38, %v5136_v63  ;;  %v2328_v52 = vadd.f32 %v2264_v36, %v2126_v45  ;;  %v664_v60 = vadd.f32 %v600_v34, %v4518_v18  ;;  %v959_v17 = vmul.f32 %v4554_v38, %v5142_v51 }
  0xb7   :  { %v2329_v55 = vadd.f32 %v2265_v62, %v2201_v2  ;;  %v1670_v6 = vadd.f32 %v1606_v32, %v1166_v11  ;;  %v1103_v49 = vmul.f32 %v4563_v42, %v5136_v63  ;;  %v1249_v29 = vmul.f32 %v4574_v47, %v5136_v63 }
  0xb8   :  { %v1021_v61 = vadd.f32 %v957_v9, %v454_v56  ;;  %2392 = vst [vmem:[#allocation8 + $0xa8] sm:$0xff] %v2328_v52  ;;  %v1023_v2 = vadd.f32 %v959_v17, %v456_v5  ;;  %v1251_v28 = vmul.f32 %v4574_v47, %v5142_v51  ;;  %v1461_v30 = vmul.f32 %v4590_v58, %v5240_v3 }
  0xb9   :  { %2393 = vst [vmem:[#allocation8 + $0xb0] sm:$0xff] %v2329_v55  ;;  %v1463_v32 = vmul.f32 %v4590_v58, %v5242_v44  ;;  %v2266_v21 = vadd.f32 %v1933_v31, %v1670_v6  ;;  %v1167_v45 = vadd.f32 %v1103_v49, %v664_v60  ;;  %v1313_v14 = vadd.f32 %v1249_v29, %v746_v48 }
  0xba   :  { %v1607_v35 = vmul.f32 %v4602_v4, %v5240_v3  ;;  %v1315_v0 = vadd.f32 %v1251_v28, %v748_v16  ;;  %v1525_v56 = vadd.f32 %v1461_v30, %v1021_v61  ;;  %v1753_v5 = vmul.f32 %v4618_v15, %v5240_v3 }
  0xbb   :  { %v1527_v36 = vadd.f32 %v1463_v32, %v1023_v2  ;;  %v2330_v62 = vadd.f32 %v2266_v21, %v2202_v8  ;;  %v1755_v11 = vmul.f32 %v4618_v15, %v5242_v44  ;;  %v455_v9 = vmul.f32 %v4527_v23, %v5072_v54  ;;  %v5280_v32 = vld [vmem:[#allocation3 + $0xe8] sm:$0xff] }
  0xbc   :  { %v1671_v34 = vadd.f32 %v1607_v35, %v1167_v45  ;;  %v1817_v31 = vadd.f32 %v1753_v5, %v1313_v14  ;;  %v1869_v52 = vrot.slane %v1525_v56, 7  ;;  %v457_v55 = vmul.f32 %v4527_v23, %v5080_v53 }
  0xbd   :  { %v1901_v48 = vrot.slane %v1527_v36, 7  ;;  %2394 = vst [vmem:[#allocation8 + $0xb8] sm:$0xff] %v2330_v62  ;;  %v1819_v16 = vadd.f32 %v1755_v11, %v1315_v0  ;;  %v601_v60 = vmul.f32 %v4533_v25, %v5072_v54  ;;  %v747_v8 = vmul.f32 %v4539_v27, %v5072_v54  ;;  %v5288_v36 = vld [vmem:[#allocation3 + $0xf8] sm:$0xff] }
  0xbe   :  { %v749_v17 = vmul.f32 %v4539_v27, %v5080_v53  ;;  %v2062_v61 = vrot.slane %v1817_v31, 1  ;;  %v958_v49 = vmul.f32 %v4556_v39, %v5178_v57  ;;  %v960_v29 = vmul.f32 %v4556_v39, %v5184_v13 }
  0xbf   :  { %v1966_v6 = vsel %vm1921_vm1, %v1901_v48, %v1869_v52  ;;  %v2094_v28 = vrot.slane %v1819_v16, 1  ;;  %v665_v30 = vadd.f32 %v601_v60, %v4521_v19  ;;  %v1104_v54 = vmul.f32 %v4566_v43, %v5178_v57 }
  0xc0   :  { %v2010_v2 = vmul.f32 %v4508_v10, %v1966_v6  ;;  %v1022_v21 = vadd.f32 %v958_v49, %v455_v9  ;;  %v1024_v45 = vadd.f32 %v960_v29, %v457_v55  ;;  %v1250_v14 = vmul.f32 %v4580_v50, %v5178_v57 }
  0xc1   :  { %v1252_v35 = vmul.f32 %v4580_v50, %v5184_v13  ;;  %v2127_v0 = vsel %vm2114_vm3, %v2062_v61, %v2094_v28  ;;  %v1168_v5 = vadd.f32 %v1104_v54, %v665_v30  ;;  %v1462_v62 = vmul.f32 %v4592_v59, %v5280_v32 }
  0xc2   :  { %v2267_v56 = vadd.f32 %v2010_v2, %v1671_v34  ;;  %v1314_v11 = vadd.f32 %v1250_v14, %v747_v8  ;;  %v1464_v9 = vmul.f32 %v4592_v59, %v5288_v36  ;;  %v1608_v55 = vmul.f32 %v4611_v12, %v5280_v32 }
  0xc3   :  { %v1316_v31 = vadd.f32 %v1252_v35, %v749_v17  ;;  %v1526_v60 = vadd.f32 %v1462_v62, %v1022_v21  ;;  %v1754_v6 = vmul.f32 %v4629_v7, %v5280_v32  ;;  %v1756_v34 = vmul.f32 %v4629_v7, %v5288_v36 }
  0xc4   :  { %v2331_v16 = vadd.f32 %v2267_v56, %v2127_v0  ;;  %v1528_v49 = vadd.f32 %v1464_v9, %v1024_v45  ;;  %v1672_v29 = vadd.f32 %v1608_v55, %v1168_v5  ;;  %v602_v8 = vmul.f32 %v4530_v24, %v5034_v40 }
  0xc5   :  { %v1105_v17 = vmul.f32 %v4563_v42, %v5142_v51  ;;  %v1818_v2 = vadd.f32 %v1754_v6, %v1314_v11  ;;  %v1820_v30 = vadd.f32 %v1756_v34, %v1316_v31  ;;  %v1870_v54 = vrot.slane %v1526_v60, 7 }
  0xc6   :  { %2395 = vst [vmem:[#allocation8 + $0xc0] sm:$0xff] %v2331_v16  ;;  %v1609_v21 = vmul.f32 %v4602_v4, %v5242_v44  ;;  %v1902_v14 = vrot.slane %v1528_v49, 7  ;;  %v666_v35 = vadd.f32 %v602_v8, %v4518_v18  ;;  %v1934_v45 = vsel %vm1921_vm1, %v1869_v52, %v1901_v48 }
  0xc7   :  { %v2159_v0 = vsel %vm2114_vm3, %v2094_v28, %v2062_v61  ;;  %v2063_v40 = vrot.slane %v1818_v2, 1  ;;  %v2095_v56 = vrot.slane %v1820_v30, 1  ;;  %v603_v62 = vmul.f32 %v4533_v25, %v5080_v53 }
  0xc8   :  { %v2205_v5 = vmul.f32 %v4678_v46, %v2159_v0  ;;  %v1967_v11 = vsel %vm1921_vm1, %v1902_v14, %v1870_v54  ;;  %v1169_v31 = vadd.f32 %v1105_v17, %v666_v35  ;;  %v1106_v9 = vmul.f32 %v4566_v43, %v5184_v13 }
  0xc9   :  { %v1610_v52 = vmul.f32 %v4611_v12, %v5288_v36  ;;  %v2011_v48 = vmul.f32 %v4508_v10, %v1967_v11  ;;  %v2128_v61 = vsel %vm2114_vm3, %v2063_v40, %v2095_v56  ;;  %v667_v28 = vadd.f32 %v603_v62, %v4521_v19 }
  0xca   :  { %v1935_v53 = vsel %vm1921_vm1, %v1870_v54, %v1902_v14  ;;  %v1673_v55 = vadd.f32 %v1609_v21, %v1169_v31  ;;  %v2160_v16 = vsel %vm2114_vm3, %v2095_v56, %v2063_v40  ;;  %v458_v60 = vmul.f32 %v4525_v22, %v5136_v63  ;;  %v5344_v56 = vld [vmem:[#allocation3 + $0x100] sm:$0xff]  ;;  %v5350_v31 = vld [vmem:[#allocation3 + $0x110] sm:$0xff] }
  0xcb   :  { %v460_v6 = vmul.f32 %v4525_v22, %v5142_v51  ;;  %v2268_v34 = vadd.f32 %v2011_v48, %v1672_v29  ;;  %v1170_v49 = vadd.f32 %v1106_v9, %v667_v28  ;;  %v2206_v8 = vmul.f32 %v4678_v46, %v2160_v16 }
  0xcc   :  { %v604_v17 = vmul.f32 %v4530_v24, %v5136_v63  ;;  %v2269_v2 = vadd.f32 %v1934_v45, %v1673_v55  ;;  %v750_v30 = vmul.f32 %v4536_v26, %v5136_v63  ;;  %v752_v54 = vmul.f32 %v4536_v26, %v5142_v51 }
  0xcd   :  { %v961_v21 = vmul.f32 %v4554_v38, %v5240_v3  ;;  %v2332_v14 = vadd.f32 %v2268_v34, %v2128_v61  ;;  %v1674_v35 = vadd.f32 %v1610_v52, %v1170_v49  ;;  %v963_v0 = vmul.f32 %v4554_v38, %v5242_v44 }
  0xce   :  { %v668_v29 = vadd.f32 %v604_v17, %v4518_v18  ;;  %v2333_v40 = vadd.f32 %v2269_v2, %v2205_v5  ;;  %v1107_v63 = vmul.f32 %v4563_v42, %v5240_v3  ;;  %v1253_v62 = vmul.f32 %v4574_v47, %v5240_v3 }
  0xcf   :  { %v1025_v45 = vadd.f32 %v961_v21, %v458_v60  ;;  %2396 = vst [vmem:[#allocation8 + $0xc8] sm:$0xff] %v2332_v14  ;;  %v2270_v11 = vadd.f32 %v1935_v53, %v1674_v35  ;;  %v1027_v9 = vadd.f32 %v963_v0, %v460_v6  ;;  %v1255_v52 = vmul.f32 %v4574_v47, %v5242_v44 }
  0xd0   :  { %v1465_v5 = vmul.f32 %v4590_v58, %v5344_v56  ;;  %2397 = vst [vmem:[#allocation8 + $0xd0] sm:$0xff] %v2333_v40  ;;  %v1171_v48 = vadd.f32 %v1107_v63, %v668_v29  ;;  %v1317_v61 = vadd.f32 %v1253_v62, %v750_v30  ;;  %v1467_v28 = vmul.f32 %v4590_v58, %v5350_v31 }
  0xd1   :  { %v1611_v55 = vmul.f32 %v4602_v4, %v5344_v56  ;;  %v2334_v16 = vadd.f32 %v2270_v11, %v2206_v8  ;;  %v1319_v53 = vadd.f32 %v1255_v52, %v752_v54  ;;  %v1757_v6 = vmul.f32 %v4618_v15, %v5344_v56 }
  0xd2   :  { %v1529_v60 = vadd.f32 %v1465_v5, %v1025_v45  ;;  %v1531_v34 = vadd.f32 %v1467_v28, %v1027_v9  ;;  %v1759_v17 = vmul.f32 %v4618_v15, %v5350_v31  ;;  %v459_v2 = vmul.f32 %v4527_v23, %v5178_v57 }
  0xd3   :  { %v1675_v49 = vadd.f32 %v1611_v55, %v1171_v48  ;;  %2398 = vst [vmem:[#allocation8 + $0xd8] sm:$0xff] %v2334_v16  ;;  %v1821_v30 = vadd.f32 %v1757_v6, %v1317_v61  ;;  %v461_v14 = vmul.f32 %v4527_v23, %v5184_v13  ;;  %v605_v8 = vmul.f32 %v4533_v25, %v5178_v57  ;;  %v5386_v48 = vld [vmem:[#allocation3 + $0x108] sm:$0xff] }
  0xd4   :  { %v1871_v21 = vrot.slane %v1529_v60, 7  ;;  %v1823_v54 = vadd.f32 %v1759_v17, %v1319_v53  ;;  %v1903_v35 = vrot.slane %v1531_v34, 7  ;;  %v751_v29 = vmul.f32 %v4539_v27, %v5178_v57  ;;  %v5392_v53 = vld [vmem:[#allocation3 + $0x118] sm:$0xff] }
  0xd5   :  { %v753_v0 = vmul.f32 %v4539_v27, %v5184_v13  ;;  %v2064_v40 = vrot.slane %v1821_v30, 1  ;;  %v669_v45 = vadd.f32 %v605_v8, %v4521_v19  ;;  %v962_v63 = vmul.f32 %v4556_v39, %v5280_v32 }
  0xd6   :  { %v964_v62 = vmul.f32 %v4556_v39, %v5288_v36  ;;  %v1968_v11 = vsel %vm1921_vm1, %v1903_v35, %v1871_v21  ;;  %v2096_v9 = vrot.slane %v1823_v54, 1  ;;  %v1108_v52 = vmul.f32 %v4566_v43, %v5280_v32 }
  0xd7   :  { %v1254_v57 = vmul.f32 %v4580_v50, %v5280_v32  ;;  %v2014_v5 = vmul.f32 %v4508_v10, %v1968_v11  ;;  %v1026_v61 = vadd.f32 %v962_v63, %v459_v2  ;;  %v1256_v55 = vmul.f32 %v4580_v50, %v5288_v36 }
  0xd8   :  { %v1028_v28 = vadd.f32 %v964_v62, %v461_v14  ;;  %v2129_v16 = vsel %vm2114_vm3, %v2064_v40, %v2096_v9  ;;  %v1172_v60 = vadd.f32 %v1108_v52, %v669_v45  ;;  %v1466_v34 = vmul.f32 %v4592_v59, %v5386_v48 }
  0xd9   :  { %v1318_v6 = vadd.f32 %v1254_v57, %v751_v29  ;;  %v2271_v17 = vadd.f32 %v2014_v5, %v1675_v49  ;;  %v1320_v30 = vadd.f32 %v1256_v55, %v753_v0  ;;  %v1468_v8 = vmul.f32 %v4592_v59, %v5392_v53 }
  0xda   :  { %v1612_v2 = vmul.f32 %v4611_v12, %v5386_v48  ;;  %v1530_v14 = vadd.f32 %v1466_v34, %v1026_v61  ;;  %v1758_v54 = vmul.f32 %v4629_v7, %v5386_v48  ;;  %v1760_v63 = vmul.f32 %v4629_v7, %v5392_v53 }
  0xdb   :  { %v606_v29 = vmul.f32 %v4530_v24, %v5142_v51  ;;  %v2335_v45 = vadd.f32 %v2271_v17, %v2129_v16  ;;  %v1532_v62 = vadd.f32 %v1468_v8, %v1028_v28  ;;  %v1109_v0 = vmul.f32 %v4563_v42, %v5242_v44 }
  0xdc   :  { %v1676_v49 = vadd.f32 %v1612_v2, %v1172_v60  ;;  %v1822_v11 = vadd.f32 %v1758_v54, %v1318_v6  ;;  %v1824_v52 = vadd.f32 %v1760_v63, %v1320_v30  ;;  %v1872_v57 = vrot.slane %v1530_v14, 7 }
  0xdd   :  { %v670_v5 = vadd.f32 %v606_v29, %v4518_v18  ;;  %2399 = vst [vmem:[#allocation8 + $0xe0] sm:$0xff] %v2335_v45  ;;  %v1904_v61 = vrot.slane %v1532_v62, 7  ;;  %v1613_v55 = vmul.f32 %v4602_v4, %v5350_v31  ;;  %v1936_v34 = vsel %vm1921_vm1, %v1871_v21, %v1903_v35 }
  0xde   :  { %v2161_v51 = vsel %vm2114_vm3, %v2096_v9, %v2064_v40  ;;  %v2065_v28 = vrot.slane %v1822_v11, 1  ;;  %v2097_v16 = vrot.slane %v1824_v52, 1  ;;  %v607_v30 = vmul.f32 %v4533_v25, %v5184_v13 }
  0xdf   :  { %v1173_v60 = vadd.f32 %v1109_v0, %v670_v5  ;;  %v2209_v6 = vmul.f32 %v4678_v46, %v2161_v51  ;;  %v1969_v17 = vsel %vm1921_vm1, %v1904_v61, %v1872_v57  ;;  %v1110_v8 = vmul.f32 %v4566_v43, %v5288_v36 }
  0xe0   :  { %v1614_v21 = vmul.f32 %v4611_v12, %v5392_v53  ;;  %v2015_v35 = vmul.f32 %v4508_v10, %v1969_v17  ;;  %v2130_v40 = vsel %vm2114_vm3, %v2065_v28, %v2097_v16  ;;  %v1937_v2 = vsel %vm1921_vm1, %v1872_v57, %v1904_v61 }
  0xe1   :  { %v1677_v9 = vadd.f32 %v1613_v55, %v1173_v60  ;;  %v671_v14 = vadd.f32 %v607_v30, %v4521_v19  ;;  %v2162_v13 = vsel %vm2114_vm3, %v2097_v16, %v2065_v28  ;;  %v462_v54 = vmul.f32 %v4525_v22, %v5240_v3  ;;  %v5448_v28 = vld [vmem:[#allocation3 + $0x120] sm:$0xff]  ;;  %v5450_v16 = vld [vmem:[#allocation3 + $0x130] sm:$0xff] }
  0xe2   :  { %v464_v63 = vmul.f32 %v4525_v22, %v5242_v44  ;;  %v2272_v29 = vadd.f32 %v2015_v35, %v1676_v49  ;;  %v2210_v62 = vmul.f32 %v4678_v46, %v2162_v13  ;;  %v608_v0 = vmul.f32 %v4530_v24, %v5240_v3 }
  0xe3   :  { %v2273_v45 = vadd.f32 %v1936_v34, %v1677_v9  ;;  %v1174_v11 = vadd.f32 %v1110_v8, %v671_v14  ;;  %v754_v52 = vmul.f32 %v4536_v26, %v5240_v3  ;;  %v756_v57 = vmul.f32 %v4536_v26, %v5242_v44 }
  0xe4   :  { %v965_v5 = vmul.f32 %v4554_v38, %v5344_v56  ;;  %v2336_v61 = vadd.f32 %v2272_v29, %v2130_v40  ;;  %v672_v49 = vadd.f32 %v608_v0, %v4518_v18  ;;  %v967_v34 = vmul.f32 %v4554_v38, %v5350_v31 }
  0xe5   :  { %v2337_v55 = vadd.f32 %v2273_v45, %v2209_v6  ;;  %v1678_v51 = vadd.f32 %v1614_v21, %v1174_v11  ;;  %v1111_v3 = vmul.f32 %v4563_v42, %v5344_v56  ;;  %v1257_v17 = vmul.f32 %v4574_v47, %v5344_v56 }
  0xe6   :  { %v1029_v60 = vadd.f32 %v965_v5, %v462_v54  ;;  %2400 = vst [vmem:[#allocation8 + $0xe8] sm:$0xff] %v2336_v61  ;;  %v1031_v6 = vadd.f32 %v967_v34, %v464_v63  ;;  %v1259_v30 = vmul.f32 %v4574_v47, %v5350_v31  ;;  %v1469_v8 = vmul.f32 %v4590_v58, %v5448_v28 }
  0xe7   :  { %2401 = vst [vmem:[#allocation8 + $0xf0] sm:$0xff] %v2337_v55  ;;  %v1471_v21 = vmul.f32 %v4590_v58, %v5450_v16  ;;  %v2274_v35 = vadd.f32 %v1937_v2, %v1678_v51  ;;  %v1175_v40 = vadd.f32 %v1111_v3, %v672_v49  ;;  %v1321_v9 = vadd.f32 %v1257_v17, %v754_v52 }
  0xe8   :  { %v1615_v14 = vmul.f32 %v4602_v4, %v5448_v28  ;;  %v1323_v13 = vadd.f32 %v1259_v30, %v756_v57  ;;  %v1533_v54 = vadd.f32 %v1469_v8, %v1029_v60  ;;  %v1761_v63 = vmul.f32 %v4618_v15, %v5448_v28 }
  0xe9   :  { %v1535_v29 = vadd.f32 %v1471_v21, %v1031_v6  ;;  %v2338_v45 = vadd.f32 %v2274_v35, %v2210_v62  ;;  %v1763_v11 = vmul.f32 %v4618_v15, %v5450_v16  ;;  %v463_v5 = vmul.f32 %v4527_v23, %v5280_v32  ;;  %v5488_v21 = vld [vmem:[#allocation3 + $0x128] sm:$0xff] }
  0xea   :  { %v1679_v0 = vadd.f32 %v1615_v14, %v1175_v40  ;;  %v1825_v2 = vadd.f32 %v1761_v63, %v1321_v9  ;;  %v1873_v61 = vrot.slane %v1533_v54, 7  ;;  %v465_v55 = vmul.f32 %v4527_v23, %v5288_v36 }
  0xeb   :  { %v1905_v52 = vrot.slane %v1535_v29, 7  ;;  %2402 = vst [vmem:[#allocation8 + $0xf8] sm:$0xff] %v2338_v45  ;;  %v1827_v57 = vadd.f32 %v1763_v11, %v1323_v13  ;;  %v609_v49 = vmul.f32 %v4533_v25, %v5280_v32  ;;  %v755_v62 = vmul.f32 %v4539_v27, %v5280_v32  ;;  %v5496_v29 = vld [vmem:[#allocation3 + $0x138] sm:$0xff] }
  0xec   :  { %v757_v34 = vmul.f32 %v4539_v27, %v5288_v36  ;;  %v2066_v60 = vrot.slane %v1825_v2, 1  ;;  %v966_v3 = vmul.f32 %v4556_v39, %v5386_v48  ;;  %v968_v17 = vmul.f32 %v4556_v39, %v5392_v53 }
  0xed   :  { %v1970_v51 = vsel %vm1921_vm1, %v1905_v52, %v1873_v61  ;;  %v2098_v30 = vrot.slane %v1827_v57, 1  ;;  %v673_v8 = vadd.f32 %v609_v49, %v4521_v19  ;;  %v1112_v32 = vmul.f32 %v4566_v43, %v5386_v48 }
  0xee   :  { %v2018_v6 = vmul.f32 %v4508_v10, %v1970_v51  ;;  %v1030_v35 = vadd.f32 %v966_v3, %v463_v5  ;;  %v1032_v40 = vadd.f32 %v968_v17, %v465_v55  ;;  %v1258_v9 = vmul.f32 %v4580_v50, %v5386_v48 }
  0xef   :  { %v1260_v14 = vmul.f32 %v4580_v50, %v5392_v53  ;;  %v2131_v13 = vsel %vm2114_vm3, %v2066_v60, %v2098_v30  ;;  %v1176_v63 = vadd.f32 %v1112_v32, %v673_v8  ;;  %v1470_v45 = vmul.f32 %v4592_v59, %v5488_v21 }
  0xf0   :  { %v2275_v54 = vadd.f32 %v2018_v6, %v1679_v0  ;;  %v1322_v11 = vadd.f32 %v1258_v9, %v755_v62  ;;  %v1472_v5 = vmul.f32 %v4592_v59, %v5496_v29  ;;  %v1616_v55 = vmul.f32 %v4611_v12, %v5488_v21 }
  0xf1   :  { %v1324_v2 = vadd.f32 %v1260_v14, %v757_v34  ;;  %v1534_v49 = vadd.f32 %v1470_v45, %v1030_v35  ;;  %v1762_v51 = vmul.f32 %v4629_v7, %v5488_v21  ;;  %v1764_v0 = vmul.f32 %v4629_v7, %v5496_v29 }
  0xf2   :  { %v2339_v57 = vadd.f32 %v2275_v54, %v2131_v13  ;;  %v1536_v3 = vadd.f32 %v1472_v5, %v1032_v40  ;;  %v1680_v17 = vadd.f32 %v1616_v55, %v1176_v63  ;;  %v610_v62 = vmul.f32 %v4530_v24, %v5242_v44 }
  0xf3   :  { %v1113_v34 = vmul.f32 %v4563_v42, %v5350_v31  ;;  %v1826_v6 = vadd.f32 %v1762_v51, %v1322_v11  ;;  %v1828_v8 = vadd.f32 %v1764_v0, %v1324_v2  ;;  %v1874_v32 = vrot.slane %v1534_v49, 7 }
  0xf4   :  { %2403 = vst [vmem:[#allocation8 + $0x100] sm:$0xff] %v2339_v57  ;;  %v1617_v35 = vmul.f32 %v4602_v4, %v5450_v16  ;;  %v1906_v9 = vrot.slane %v1536_v3, 7  ;;  %v674_v14 = vadd.f32 %v610_v62, %v4518_v18  ;;  %v1938_v40 = vsel %vm1921_vm1, %v1873_v61, %v1905_v52 }
  0xf5   :  { %v2163_v13 = vsel %vm2114_vm3, %v2098_v30, %v2066_v60  ;;  %v2067_v44 = vrot.slane %v1826_v6, 1  ;;  %v2099_v54 = vrot.slane %v1828_v8, 1  ;;  %v611_v45 = vmul.f32 %v4533_v25, %v5288_v36 }
  0xf6   :  { %v2213_v63 = vmul.f32 %v4678_v46, %v2163_v13  ;;  %v1971_v11 = vsel %vm1921_vm1, %v1906_v9, %v1874_v32  ;;  %v1177_v2 = vadd.f32 %v1113_v34, %v674_v14  ;;  %v1114_v5 = vmul.f32 %v4566_v43, %v5392_v53 }
  0xf7   :  { %v1618_v61 = vmul.f32 %v4611_v12, %v5496_v29  ;;  %v2019_v52 = vmul.f32 %v4508_v10, %v1971_v11  ;;  %v2132_v60 = vsel %vm2114_vm3, %v2067_v44, %v2099_v54  ;;  %v675_v30 = vadd.f32 %v611_v45, %v4521_v19 }
  0xf8   :  { %v1939_v36 = vsel %vm1921_vm1, %v1874_v32, %v1906_v9  ;;  %v1681_v55 = vadd.f32 %v1617_v35, %v1177_v2  ;;  %v2164_v57 = vsel %vm2114_vm3, %v2099_v54, %v2067_v44  ;;  %v466_v49 = vmul.f32 %v4525_v22, %v5344_v56  ;;  %v5552_v54 = vld [vmem:[#allocation3 + $0x140] sm:$0xff]  ;;  %v5558_v2 = vld [vmem:[#allocation3 + $0x150] sm:$0xff] }
  0xf9   :  { %v468_v51 = vmul.f32 %v4525_v22, %v5350_v31  ;;  %v2276_v0 = vadd.f32 %v2019_v52, %v1680_v17  ;;  %v1178_v3 = vadd.f32 %v1114_v5, %v675_v30  ;;  %v2214_v62 = vmul.f32 %v4678_v46, %v2164_v57 }
  0xfa   :  { %v612_v34 = vmul.f32 %v4530_v24, %v5344_v56  ;;  %v2277_v6 = vadd.f32 %v1938_v40, %v1681_v55  ;;  %v758_v8 = vmul.f32 %v4536_v26, %v5344_v56  ;;  %v760_v32 = vmul.f32 %v4536_v26, %v5350_v31 }
  0xfb   :  { %v969_v35 = vmul.f32 %v4554_v38, %v5448_v28  ;;  %v2340_v9 = vadd.f32 %v2276_v0, %v2132_v60  ;;  %v1682_v14 = vadd.f32 %v1618_v61, %v1178_v3  ;;  %v971_v13 = vmul.f32 %v4554_v38, %v5450_v16 }
  0xfc   :  { %v676_v17 = vadd.f32 %v612_v34, %v4518_v18  ;;  %v2341_v44 = vadd.f32 %v2277_v6, %v2213_v63  ;;  %v1115_v56 = vmul.f32 %v4563_v42, %v5448_v28  ;;  %v1261_v45 = vmul.f32 %v4574_v47, %v5448_v28 }
  0xfd   :  { %v1033_v40 = vadd.f32 %v969_v35, %v466_v49  ;;  %2404 = vst [vmem:[#allocation8 + $0x108] sm:$0xff] %v2340_v9  ;;  %v2278_v11 = vadd.f32 %v1939_v36, %v1682_v14  ;;  %v1035_v5 = vadd.f32 %v971_v13, %v468_v51  ;;  %v1263_v61 = vmul.f32 %v4574_v47, %v5450_v16 }
  0xfe   :  { %v1473_v63 = vmul.f32 %v4590_v58, %v5552_v54  ;;  %2405 = vst [vmem:[#allocation8 + $0x110] sm:$0xff] %v2341_v44  ;;  %v1179_v52 = vadd.f32 %v1115_v56, %v676_v17  ;;  %v1325_v60 = vadd.f32 %v1261_v45, %v758_v8  ;;  %v1475_v30 = vmul.f32 %v4590_v58, %v5558_v2 }
  0xff   :  { %v1619_v55 = vmul.f32 %v4602_v4, %v5552_v54  ;;  %v2342_v57 = vadd.f32 %v2278_v11, %v2214_v62  ;;  %v1327_v36 = vadd.f32 %v1263_v61, %v760_v32  ;;  %v1765_v51 = vmul.f32 %v4618_v15, %v5552_v54 }
 0x100   :  { %v1537_v49 = vadd.f32 %v1473_v63, %v1033_v40  ;;  %v1539_v0 = vadd.f32 %v1475_v30, %v1035_v5  ;;  %v1767_v34 = vmul.f32 %v4618_v15, %v5558_v2  ;;  %v467_v6 = vmul.f32 %v4527_v23, %v5386_v48 }
 0x101   :  { %v1683_v3 = vadd.f32 %v1619_v55, %v1179_v52  ;;  %2406 = vst [vmem:[#allocation8 + $0x118] sm:$0xff] %v2342_v57  ;;  %v1829_v8 = vadd.f32 %v1765_v51, %v1325_v60  ;;  %v469_v9 = vmul.f32 %v4527_v23, %v5392_v53  ;;  %v613_v62 = vmul.f32 %v4533_v25, %v5386_v48  ;;  %v5594_v52 = vld [vmem:[#allocation3 + $0x148] sm:$0xff] }
 0x102   :  { %v1875_v35 = vrot.slane %v1537_v49, 7  ;;  %v1831_v32 = vadd.f32 %v1767_v34, %v1327_v36  ;;  %v1907_v14 = vrot.slane %v1539_v0, 7  ;;  %v759_v17 = vmul.f32 %v4539_v27, %v5386_v48  ;;  %v5600_v36 = vld [vmem:[#allocation3 + $0x158] sm:$0xff] }
 0x103   :  { %v761_v13 = vmul.f32 %v4539_v27, %v5392_v53  ;;  %v2068_v44 = vrot.slane %v1829_v8, 1  ;;  %v677_v40 = vadd.f32 %v613_v62, %v4521_v19  ;;  %v970_v56 = vmul.f32 %v4556_v39, %v5488_v21 }
 0x104   :  { %v972_v45 = vmul.f32 %v4556_v39, %v5496_v29  ;;  %v1972_v11 = vsel %vm1921_vm1, %v1907_v14, %v1875_v35  ;;  %v2100_v5 = vrot.slane %v1831_v32, 1  ;;  %v1116_v61 = vmul.f32 %v4566_v43, %v5488_v21 }
 0x105   :  { %v1262_v48 = vmul.f32 %v4580_v50, %v5488_v21  ;;  %v2022_v63 = vmul.f32 %v4508_v10, %v1972_v11  ;;  %v1034_v60 = vadd.f32 %v970_v56, %v467_v6  ;;  %v1264_v55 = vmul.f32 %v4580_v50, %v5496_v29 }
 0x106   :  { %v1036_v30 = vadd.f32 %v972_v45, %v469_v9  ;;  %v2133_v57 = vsel %vm2114_vm3, %v2068_v44, %v2100_v5  ;;  %v1180_v49 = vadd.f32 %v1116_v61, %v677_v40  ;;  %v1474_v0 = vmul.f32 %v4592_v59, %v5594_v52 }
 0x107   :  { %v1326_v51 = vadd.f32 %v1262_v48, %v759_v17  ;;  %v2279_v34 = vadd.f32 %v2022_v63, %v1683_v3  ;;  %v1328_v8 = vadd.f32 %v1264_v55, %v761_v13  ;;  %v1476_v62 = vmul.f32 %v4592_v59, %v5600_v36 }
 0x108   :  { %v1620_v6 = vmul.f32 %v4611_v12, %v5594_v52  ;;  %v1538_v9 = vadd.f32 %v1474_v0, %v1034_v60  ;;  %v1766_v32 = vmul.f32 %v4629_v7, %v5594_v52  ;;  %v1768_v56 = vmul.f32 %v4629_v7, %v5600_v36 }
 0x109   :  { %v614_v17 = vmul.f32 %v4530_v24, %v5350_v31  ;;  %v2343_v40 = vadd.f32 %v2279_v34, %v2133_v57  ;;  %v1540_v45 = vadd.f32 %v1476_v62, %v1036_v30  ;;  %v1117_v13 = vmul.f32 %v4563_v42, %v5450_v16 }
 0x10a   :  { %v1684_v3 = vadd.f32 %v1620_v6, %v1180_v49  ;;  %v1830_v11 = vadd.f32 %v1766_v32, %v1326_v51  ;;  %v1832_v61 = vadd.f32 %v1768_v56, %v1328_v8  ;;  %v1876_v48 = vrot.slane %v1538_v9, 7 }
 0x10b   :  { %v678_v63 = vadd.f32 %v614_v17, %v4518_v18  ;;  %2407 = vst [vmem:[#allocation8 + $0x120] sm:$0xff] %v2343_v40  ;;  %v1908_v60 = vrot.slane %v1540_v45, 7  ;;  %v1621_v55 = vmul.f32 %v4602_v4, %v5558_v2  ;;  %v1940_v0 = vsel %vm1921_vm1, %v1875_v35, %v1907_v14 }
 0x10c   :  { %v2165_v31 = vsel %vm2114_vm3, %v2100_v5, %v2068_v44  ;;  %v2069_v30 = vrot.slane %v1830_v11, 1  ;;  %v2101_v57 = vrot.slane %v1832_v61, 1  ;;  %v615_v8 = vmul.f32 %v4533_v25, %v5392_v53 }
 0x10d   :  { %v1181_v49 = vadd.f32 %v1117_v13, %v678_v63  ;;  %v2217_v51 = vmul.f32 %v4678_v46, %v2165_v31  ;;  %v1973_v34 = vsel %vm1921_vm1, %v1908_v60, %v1876_v48  ;;  %v1118_v62 = vmul.f32 %v4566_v43, %v5496_v29 }
 0x10e   :  { %v1622_v35 = vmul.f32 %v4611_v12, %v5600_v36  ;;  %v2023_v14 = vmul.f32 %v4508_v10, %v1973_v34  ;;  %v2134_v44 = vsel %vm2114_vm3, %v2069_v30, %v2101_v57  ;;  %v1941_v6 = vsel %vm1921_vm1, %v1876_v48, %v1908_v60 }
 0x10f   :  { %v1685_v5 = vadd.f32 %v1621_v55, %v1181_v49  ;;  %v679_v9 = vadd.f32 %v615_v8, %v4521_v19  ;;  %v2166_v53 = vsel %vm2114_vm3, %v2101_v57, %v2069_v30  ;;  %v470_v32 = vmul.f32 %v4525_v22, %v5448_v28  ;;  %v5656_v30 = vld [vmem:[#allocation3 + $0x160] sm:$0xff]  ;;  %v5658_v57 = vld [vmem:[#allocation3 + $0x170] sm:$0xff] }
 0x110   :  { %v472_v56 = vmul.f32 %v4525_v22, %v5450_v16  ;;  %v2280_v17 = vadd.f32 %v2023_v14, %v1684_v3  ;;  %v2218_v45 = vmul.f32 %v4678_v46, %v2166_v53  ;;  %v616_v13 = vmul.f32 %v4530_v24, %v5448_v28 }
 0x111   :  { %v2281_v40 = vadd.f32 %v1940_v0, %v1685_v5  ;;  %v1182_v11 = vadd.f32 %v1118_v62, %v679_v9  ;;  %v762_v61 = vmul.f32 %v4536_v26, %v5448_v28  ;;  %v764_v48 = vmul.f32 %v4536_v26, %v5450_v16 }
 0x112   :  { %v973_v63 = vmul.f32 %v4554_v38, %v5552_v54  ;;  %v2344_v60 = vadd.f32 %v2280_v17, %v2134_v44  ;;  %v680_v3 = vadd.f32 %v616_v13, %v4518_v18  ;;  %v975_v0 = vmul.f32 %v4554_v38, %v5558_v2 }
 0x113   :  { %v2345_v55 = vadd.f32 %v2281_v40, %v2217_v51  ;;  %v1686_v31 = vadd.f32 %v1622_v35, %v1182_v11  ;;  %v1119_v28 = vmul.f32 %v4563_v42, %v5552_v54  ;;  %v1265_v34 = vmul.f32 %v4574_v47, %v5552_v54 }
 0x114   :  { %v1037_v49 = vadd.f32 %v973_v63, %v470_v32  ;;  %2408 = vst [vmem:[#allocation8 + $0x128] sm:$0xff] %v2344_v60  ;;  %v1039_v51 = vadd.f32 %v975_v0, %v472_v56  ;;  %v1267_v8 = vmul.f32 %v4574_v47, %v5558_v2  ;;  %v1477_v62 = vmul.f32 %v4590_v58, %v5656_v30 }
 0x115   :  { %2409 = vst [vmem:[#allocation8 + $0x130] sm:$0xff] %v2345_v55  ;;  %v1479_v35 = vmul.f32 %v4590_v58, %v5658_v57  ;;  %v2282_v14 = vadd.f32 %v1941_v6, %v1686_v31  ;;  %v1183_v44 = vadd.f32 %v1119_v28, %v680_v3  ;;  %v1329_v5 = vadd.f32 %v1265_v34, %v762_v61 }
 0x116   :  { %v1623_v9 = vmul.f32 %v4602_v4, %v5656_v30  ;;  %v1331_v53 = vadd.f32 %v1267_v8, %v764_v48  ;;  %v1541_v32 = vadd.f32 %v1477_v62, %v1037_v49  ;;  %v1769_v56 = vmul.f32 %v4618_v15, %v5656_v30 }
 0x117   :  { %v1543_v17 = vadd.f32 %v1479_v35, %v1039_v51  ;;  %v2346_v40 = vadd.f32 %v2282_v14, %v2218_v45  ;;  %v1771_v11 = vmul.f32 %v4618_v15, %v5658_v57  ;;  %v471_v63 = vmul.f32 %v4527_v23, %v5488_v21  ;;  %v5696_v35 = vld [vmem:[#allocation3 + $0x168] sm:$0xff] }
 0x118   :  { %v1687_v13 = vadd.f32 %v1623_v9, %v1183_v44  ;;  %v1833_v6 = vadd.f32 %v1769_v56, %v1329_v5  ;;  %v1877_v60 = vrot.slane %v1541_v32, 7  ;;  %v473_v55 = vmul.f32 %v4527_v23, %v5496_v29 }
 0x119   :  { %v1909_v61 = vrot.slane %v1543_v17, 7  ;;  %2410 = vst [vmem:[#allocation8 + $0x138] sm:$0xff] %v2346_v40  ;;  %v1835_v48 = vadd.f32 %v1771_v11, %v1331_v53  ;;  %v617_v3 = vmul.f32 %v4533_v25, %v5488_v21  ;;  %v763_v45 = vmul.f32 %v4539_v27, %v5488_v21  ;;  %v5704_v17 = vld [vmem:[#allocation3 + $0x178] sm:$0xff] }
 0x11a   :  { %v765_v0 = vmul.f32 %v4539_v27, %v5496_v29  ;;  %v2070_v49 = vrot.slane %v1833_v6, 1  ;;  %v974_v28 = vmul.f32 %v4556_v39, %v5594_v52  ;;  %v976_v34 = vmul.f32 %v4556_v39, %v5600_v36 }
 0x11b   :  { %v1974_v31 = vsel %vm1921_vm1, %v1909_v61, %v1877_v60  ;;  %v2102_v8 = vrot.slane %v1835_v48, 1  ;;  %v681_v62 = vadd.f32 %v617_v3, %v4521_v19  ;;  %v1120_v21 = vmul.f32 %v4566_v43, %v5594_v52 }
 0x11c   :  { %v2026_v51 = vmul.f32 %v4508_v10, %v1974_v31  ;;  %v1038_v14 = vadd.f32 %v974_v28, %v471_v63  ;;  %v1040_v44 = vadd.f32 %v976_v34, %v473_v55  ;;  %v1266_v5 = vmul.f32 %v4580_v50, %v5594_v52 }
 0x11d   :  { %v1268_v9 = vmul.f32 %v4580_v50, %v5600_v36  ;;  %v2135_v53 = vsel %vm2114_vm3, %v2070_v49, %v2102_v8  ;;  %v1184_v56 = vadd.f32 %v1120_v21, %v681_v62  ;;  %v1478_v40 = vmul.f32 %v4592_v59, %v5696_v35 }
 0x11e   :  { %v2283_v32 = vadd.f32 %v2026_v51, %v1687_v13  ;;  %v1330_v11 = vadd.f32 %v1266_v5, %v763_v45  ;;  %v1480_v63 = vmul.f32 %v4592_v59, %v5704_v17  ;;  %v1624_v55 = vmul.f32 %v4611_v12, %v5696_v35 }
 0x11f   :  { %v1332_v6 = vadd.f32 %v1268_v9, %v765_v0  ;;  %v1542_v3 = vadd.f32 %v1478_v40, %v1038_v14  ;;  %v1770_v31 = vmul.f32 %v4629_v7, %v5696_v35  ;;  %v1772_v13 = vmul.f32 %v4629_v7, %v5704_v17 }
 0x120   :  { %v2347_v48 = vadd.f32 %v2283_v32, %v2135_v53  ;;  %v1544_v28 = vadd.f32 %v1480_v63, %v1040_v44  ;;  %v1688_v34 = vadd.f32 %v1624_v55, %v1184_v56  ;;  %v618_v45 = vmul.f32 %v4530_v24, %v5450_v16 }
 0x121   :  { %v1121_v0 = vmul.f32 %v4563_v42, %v5558_v2  ;;  %v1834_v51 = vadd.f32 %v1770_v31, %v1330_v11  ;;  %v1836_v62 = vadd.f32 %v1772_v13, %v1332_v6  ;;  %v1878_v21 = vrot.slane %v1542_v3, 7 }
 0x122   :  { %2411 = vst [vmem:[#allocation8 + $0x140] sm:$0xff] %v2347_v48  ;;  %v1625_v14 = vmul.f32 %v4602_v4, %v5658_v57  ;;  %v1910_v5 = vrot.slane %v1544_v28, 7  ;;  %v682_v9 = vadd.f32 %v618_v45, %v4518_v18  ;;  %v1942_v44 = vsel %vm1921_vm1, %v1877_v60, %v1909_v61 }
 0x123   :  { %v2167_v53 = vsel %vm2114_vm3, %v2102_v8, %v2070_v49  ;;  %v2071_v16 = vrot.slane %v1834_v51, 1  ;;  %v2103_v32 = vrot.slane %v1836_v62, 1  ;;  %v619_v40 = vmul.f32 %v4533_v25, %v5496_v29 }
 0x124   :  { %v2221_v56 = vmul.f32 %v4678_v46, %v2167_v53  ;;  %v1975_v11 = vsel %vm1921_vm1, %v1910_v5, %v1878_v21  ;;  %v1185_v6 = vadd.f32 %v1121_v0, %v682_v9  ;;  %v1122_v63 = vmul.f32 %v4566_v43, %v5600_v36 }
 0x125   :  { %v1626_v60 = vmul.f32 %v4611_v12, %v5704_v17  ;;  %v2027_v61 = vmul.f32 %v4508_v10, %v1975_v11  ;;  %v2136_v49 = vsel %vm2114_vm3, %v2071_v16, %v2103_v32  ;;  %v683_v8 = vadd.f32 %v619_v40, %v4521_v19 }
 0x126   :  { %v1943_v29 = vsel %vm1921_vm1, %v1878_v21, %v1910_v5  ;;  %v1689_v55 = vadd.f32 %v1625_v14, %v1185_v6  ;;  %v2168_v48 = vsel %vm2114_vm3, %v2103_v32, %v2071_v16  ;;  %v474_v3 = vmul.f32 %v4525_v22, %v5552_v54  ;;  %v5760_v32 = vld [vmem:[#allocation3 + $0x180] sm:$0xff]  ;;  %v5766_v6 = vld [vmem:[#allocation3 + $0x190] sm:$0xff] }
 0x127   :  { %v476_v31 = vmul.f32 %v4525_v22, %v5558_v2  ;;  %v2284_v13 = vadd.f32 %v2027_v61, %v1688_v34  ;;  %v1186_v28 = vadd.f32 %v1122_v63, %v683_v8  ;;  %v2222_v45 = vmul.f32 %v4678_v46, %v2168_v48 }
 0x128   :  { %v620_v0 = vmul.f32 %v4530_v24, %v5552_v54  ;;  %v2285_v51 = vadd.f32 %v1942_v44, %v1689_v55  ;;  %v766_v62 = vmul.f32 %v4536_v26, %v5552_v54  ;;  %v768_v21 = vmul.f32 %v4536_v26, %v5558_v2 }
 0x129   :  { %v977_v14 = vmul.f32 %v4554_v38, %v5656_v30  ;;  %v2348_v5 = vadd.f32 %v2284_v13, %v2136_v49  ;;  %v1690_v9 = vadd.f32 %v1626_v60, %v1186_v28  ;;  %v979_v53 = vmul.f32 %v4554_v38, %v5658_v57 }
 0x12a   :  { %v684_v34 = vadd.f32 %v620_v0, %v4518_v18  ;;  %v2349_v16 = vadd.f32 %v2285_v51, %v2221_v56  ;;  %v1123_v54 = vmul.f32 %v4563_v42, %v5656_v30  ;;  %v1269_v40 = vmul.f32 %v4574_v47, %v5656_v30 }
 0x12b   :  { %v1041_v44 = vadd.f32 %v977_v14, %v474_v3  ;;  %2412 = vst [vmem:[#allocation8 + $0x148] sm:$0xff] %v2348_v5  ;;  %v2286_v11 = vadd.f32 %v1943_v29, %v1690_v9  ;;  %v1043_v63 = vadd.f32 %v979_v53, %v476_v31  ;;  %v1271_v60 = vmul.f32 %v4574_v47, %v5658_v57 }
 0x12c   :  { %v1481_v56 = vmul.f32 %v4590_v58, %v5760_v32  ;;  %2413 = vst [vmem:[#allocation8 + $0x150] sm:$0xff] %v2349_v16  ;;  %v1187_v61 = vadd.f32 %v1123_v54, %v684_v34  ;;  %v1333_v49 = vadd.f32 %v1269_v40, %v766_v62  ;;  %v1483_v8 = vmul.f32 %v4590_v58, %v5766_v6 }
 0x12d   :  { %v1627_v55 = vmul.f32 %v4602_v4, %v5760_v32  ;;  %v2350_v48 = vadd.f32 %v2286_v11, %v2222_v45  ;;  %v1335_v29 = vadd.f32 %v1271_v60, %v768_v21  ;;  %v1773_v31 = vmul.f32 %v4618_v15, %v5760_v32 }
 0x12e   :  { %v1545_v3 = vadd.f32 %v1481_v56, %v1041_v44  ;;  %v1547_v13 = vadd.f32 %v1483_v8, %v1043_v63  ;;  %v1775_v0 = vmul.f32 %v4618_v15, %v5766_v6  ;;  %v475_v51 = vmul.f32 %v4527_v23, %v5594_v52 }
 0x12f   :  { %v1691_v28 = vadd.f32 %v1627_v55, %v1187_v61  ;;  %2414 = vst [vmem:[#allocation8 + $0x158] sm:$0xff] %v2350_v48  ;;  %v1837_v62 = vadd.f32 %v1773_v31, %v1333_v49  ;;  %v477_v5 = vmul.f32 %v4527_v23, %v5600_v36  ;;  %v621_v45 = vmul.f32 %v4533_v25, %v5594_v52  ;;  %v5802_v61 = vld [vmem:[#allocation3 + $0x188] sm:$0xff] }
 0x130   :  { %v1879_v14 = vrot.slane %v1545_v3, 7  ;;  %v1839_v21 = vadd.f32 %v1775_v0, %v1335_v29  ;;  %v1911_v9 = vrot.slane %v1547_v13, 7  ;;  %v767_v34 = vmul.f32 %v4539_v27, %v5594_v52  ;;  %v5808_v29 = vld [vmem:[#allocation3 + $0x198] sm:$0xff] }
 0x131   :  { %v769_v53 = vmul.f32 %v4539_v27, %v5600_v36  ;;  %v2072_v16 = vrot.slane %v1837_v62, 1  ;;  %v685_v44 = vadd.f32 %v621_v45, %v4521_v19  ;;  %v978_v54 = vmul.f32 %v4556_v39, %v5696_v35 }
 0x132   :  { %v980_v40 = vmul.f32 %v4556_v39, %v5704_v17  ;;  %v1976_v11 = vsel %vm1921_vm1, %v1911_v9, %v1879_v14  ;;  %v2104_v63 = vrot.slane %v1839_v21, 1  ;;  %v1124_v60 = vmul.f32 %v4566_v43, %v5696_v35 }
 0x133   :  { %v1270_v52 = vmul.f32 %v4580_v50, %v5696_v35  ;;  %v2030_v56 = vmul.f32 %v4508_v10, %v1976_v11  ;;  %v1042_v49 = vadd.f32 %v978_v54, %v475_v51  ;;  %v1272_v55 = vmul.f32 %v4580_v50, %v5704_v17 }
 0x134   :  { %v1044_v8 = vadd.f32 %v980_v40, %v477_v5  ;;  %v2137_v48 = vsel %vm2114_vm3, %v2072_v16, %v2104_v63  ;;  %v1188_v3 = vadd.f32 %v1124_v60, %v685_v44  ;;  %v1482_v13 = vmul.f32 %v4592_v59, %v5802_v61 }
 0x135   :  { %v1334_v31 = vadd.f32 %v1270_v52, %v767_v34  ;;  %v2287_v0 = vadd.f32 %v2030_v56, %v1691_v28  ;;  %v1336_v62 = vadd.f32 %v1272_v55, %v769_v53  ;;  %v1484_v45 = vmul.f32 %v4592_v59, %v5808_v29 }
 0x136   :  { %v1628_v51 = vmul.f32 %v4611_v12, %v5802_v61  ;;  %v1546_v5 = vadd.f32 %v1482_v13, %v1042_v49  ;;  %v1774_v21 = vmul.f32 %v4629_v7, %v5802_v61  ;;  %v1776_v54 = vmul.f32 %v4629_v7, %v5808_v29 }
 0x137   :  { %v622_v34 = vmul.f32 %v4530_v24, %v5558_v2  ;;  %v2351_v44 = vadd.f32 %v2287_v0, %v2137_v48  ;;  %v1548_v40 = vadd.f32 %v1484_v45, %v1044_v8  ;;  %v1125_v53 = vmul.f32 %v4563_v42, %v5658_v57 }
 0x138   :  { %v1692_v28 = vadd.f32 %v1628_v51, %v1188_v3  ;;  %v1838_v11 = vadd.f32 %v1774_v21, %v1334_v31  ;;  %v1840_v60 = vadd.f32 %v1776_v54, %v1336_v62  ;;  %v1880_v52 = vrot.slane %v1546_v5, 7 }
 0x139   :  { %v686_v56 = vadd.f32 %v622_v34, %v4518_v18  ;;  %2415 = vst [vmem:[#allocation8 + $0x160] sm:$0xff] %v2351_v44  ;;  %v1912_v49 = vrot.slane %v1548_v40, 7  ;;  %v1629_v55 = vmul.f32 %v4602_v4, %v5766_v6  ;;  %v1944_v13 = vsel %vm1921_vm1, %v1879_v14, %v1911_v9 }
 0x13a   :  { %v2169_v2 = vsel %vm2114_vm3, %v2104_v63, %v2072_v16  ;;  %v2073_v8 = vrot.slane %v1838_v11, 1  ;;  %v2105_v48 = vrot.slane %v1840_v60, 1  ;;  %v623_v62 = vmul.f32 %v4533_v25, %v5600_v36 }
 0x13b   :  { %v1189_v3 = vadd.f32 %v1125_v53, %v686_v56  ;;  %v2225_v31 = vmul.f32 %v4678_v46, %v2169_v2  ;;  %v1977_v0 = vsel %vm1921_vm1, %v1912_v49, %v1880_v52  ;;  %v1126_v45 = vmul.f32 %v4566_v43, %v5704_v17 }
 0x13c   :  { %v1630_v14 = vmul.f32 %v4611_v12, %v5808_v29  ;;  %v2031_v9 = vmul.f32 %v4508_v10, %v1977_v0  ;;  %v2138_v16 = vsel %vm2114_vm3, %v2073_v8, %v2105_v48  ;;  %v1945_v51 = vsel %vm1921_vm1, %v1880_v52, %v1912_v49 }
 0x13d   :  { %v1693_v63 = vadd.f32 %v1629_v55, %v1189_v3  ;;  %v687_v5 = vadd.f32 %v623_v62, %v4521_v19  ;;  %v2170_v36 = vsel %vm2114_vm3, %v2105_v48, %v2073_v8  ;;  %v478_v21 = vmul.f32 %v4525_v22, %v5656_v30  ;;  %v5864_v8 = vld [vmem:[#allocation3 + $0x1a0] sm:$0xff]  ;;  %v5866_v48 = vld [vmem:[#allocation3 + $0x1b0] sm:$0xff] }
 0x13e   :  { %v480_v54 = vmul.f32 %v4525_v22, %v5658_v57  ;;  %v2288_v34 = vadd.f32 %v2031_v9, %v1692_v28  ;;  %v2226_v40 = vmul.f32 %v4678_v46, %v2170_v36  ;;  %v624_v53 = vmul.f32 %v4530_v24, %v5656_v30 }
 0x13f   :  { %v2289_v44 = vadd.f32 %v1944_v13, %v1693_v63  ;;  %v1190_v11 = vadd.f32 %v1126_v45, %v687_v5  ;;  %v770_v60 = vmul.f32 %v4536_v26, %v5656_v30  ;;  %v772_v52 = vmul.f32 %v4536_v26, %v5658_v57 }
 0x140   :  { %v981_v56 = vmul.f32 %v4554_v38, %v5760_v32  ;;  %v2352_v49 = vadd.f32 %v2288_v34, %v2138_v16  ;;  %v688_v28 = vadd.f32 %v624_v53, %v4518_v18  ;;  %v983_v13 = vmul.f32 %v4554_v38, %v5766_v6 }
 0x141   :  { %v2353_v55 = vadd.f32 %v2289_v44, %v2225_v31  ;;  %v1694_v2 = vadd.f32 %v1630_v14, %v1190_v11  ;;  %v1127_v30 = vmul.f32 %v4563_v42, %v5760_v32  ;;  %v1273_v0 = vmul.f32 %v4574_v47, %v5760_v32 }
 0x142   :  { %v1045_v3 = vadd.f32 %v981_v56, %v478_v21  ;;  %2416 = vst [vmem:[#allocation8 + $0x168] sm:$0xff] %v2352_v49  ;;  %v1047_v31 = vadd.f32 %v983_v13, %v480_v54  ;;  %v1275_v62 = vmul.f32 %v4574_v47, %v5766_v6  ;;  %v1485_v45 = vmul.f32 %v4590_v58, %v5864_v8 }
 0x143   :  { %2417 = vst [vmem:[#allocation8 + $0x170] sm:$0xff] %v2353_v55  ;;  %v1487_v14 = vmul.f32 %v4590_v58, %v5866_v48  ;;  %v2290_v9 = vadd.f32 %v1945_v51, %v1694_v2  ;;  %v1191_v16 = vadd.f32 %v1127_v30, %v688_v28  ;;  %v1337_v63 = vadd.f32 %v1273_v0, %v770_v60 }
 0x144   :  { %v1631_v5 = vmul.f32 %v4602_v4, %v5864_v8  ;;  %v1339_v36 = vadd.f32 %v1275_v62, %v772_v52  ;;  %v1549_v21 = vadd.f32 %v1485_v45, %v1045_v3  ;;  %v1777_v54 = vmul.f32 %v4618_v15, %v5864_v8 }
 0x145   :  { %v1551_v34 = vadd.f32 %v1487_v14, %v1047_v31  ;;  %v2354_v44 = vadd.f32 %v2290_v9, %v2226_v40  ;;  %v1779_v11 = vmul.f32 %v4618_v15, %v5866_v48  ;;  %v479_v56 = vmul.f32 %v4527_v23, %v5696_v35  ;;  %v5904_v14 = vld [vmem:[#allocation3 + $0x1a8] sm:$0xff] }
 0x146   :  { %v1695_v53 = vadd.f32 %v1631_v5, %v1191_v16  ;;  %v1841_v51 = vadd.f32 %v1777_v54, %v1337_v63  ;;  %v1881_v49 = vrot.slane %v1549_v21, 7  ;;  %v481_v55 = vmul.f32 %v4527_v23, %v5704_v17 }
 0x147   :  { %v1913_v60 = vrot.slane %v1551_v34, 7  ;;  %2418 = vst [vmem:[#allocation8 + $0x178] sm:$0xff] %v2354_v44  ;;  %v1843_v52 = vadd.f32 %v1779_v11, %v1339_v36  ;;  %v625_v28 = vmul.f32 %v4533_v25, %v5696_v35  ;;  %v771_v40 = vmul.f32 %v4539_v27, %v5696_v35  ;;  %v5912_v34 = vld [vmem:[#allocation3 + $0x1b8] sm:$0xff] }
 0x148   :  { %v773_v13 = vmul.f32 %v4539_v27, %v5704_v17  ;;  %v2074_v3 = vrot.slane %v1841_v51, 1  ;;  %v982_v30 = vmul.f32 %v4556_v39, %v5802_v61  ;;  %v984_v0 = vmul.f32 %v4556_v39, %v5808_v29 }
 0x149   :  { %v1978_v2 = vsel %vm1921_vm1, %v1913_v60, %v1881_v49  ;;  %v2106_v62 = vrot.slane %v1843_v52, 1  ;;  %v689_v45 = vadd.f32 %v625_v28, %v4521_v19  ;;  %v1128_v35 = vmul.f32 %v4566_v43, %v5802_v61 }
 0x14a   :  { %v2034_v31 = vmul.f32 %v4508_v10, %v1978_v2  ;;  %v1046_v9 = vadd.f32 %v982_v30, %v479_v56  ;;  %v1048_v16 = vadd.f32 %v984_v0, %v481_v55  ;;  %v1274_v63 = vmul.f32 %v4580_v50, %v5802_v61 }
 0x14b   :  { %v1276_v5 = vmul.f32 %v4580_v50, %v5808_v29  ;;  %v2139_v36 = vsel %vm2114_vm3, %v2074_v3, %v2106_v62  ;;  %v1192_v54 = vadd.f32 %v1128_v35, %v689_v45  ;;  %v1486_v44 = vmul.f32 %v4592_v59, %v5904_v14 }
 0x14c   :  { %v2291_v21 = vadd.f32 %v2034_v31, %v1695_v53  ;;  %v1338_v11 = vadd.f32 %v1274_v63, %v771_v40  ;;  %v1488_v56 = vmul.f32 %v4592_v59, %v5912_v34  ;;  %v1632_v55 = vmul.f32 %v4611_v12, %v5904_v14 }
 0x14d   :  { %v1340_v51 = vadd.f32 %v1276_v5, %v773_v13  ;;  %v1550_v28 = vadd.f32 %v1486_v44, %v1046_v9  ;;  %v1778_v2 = vmul.f32 %v4629_v7, %v5904_v14  ;;  %v1780_v53 = vmul.f32 %v4629_v7, %v5912_v34 }
 0x14e   :  { %v2355_v52 = vadd.f32 %v2291_v21, %v2139_v36  ;;  %v1552_v30 = vadd.f32 %v1488_v56, %v1048_v16  ;;  %v1696_v0 = vadd.f32 %v1632_v55, %v1192_v54  ;;  %v626_v40 = vmul.f32 %v4530_v24, %v5658_v57 }
 0x14f   :  { %v1129_v13 = vmul.f32 %v4563_v42, %v5766_v6  ;;  %v1842_v31 = vadd.f32 %v1778_v2, %v1338_v11  ;;  %v1844_v45 = vadd.f32 %v1780_v53, %v1340_v51  ;;  %v1882_v35 = vrot.slane %v1550_v28, 7 }
 0x150   :  { %2419 = vst [vmem:[#allocation8 + $0x180] sm:$0xff] %v2355_v52  ;;  %v1633_v9 = vmul.f32 %v4602_v4, %v5866_v48  ;;  %v1914_v63 = vrot.slane %v1552_v30, 7  ;;  %v690_v5 = vadd.f32 %v626_v40, %v4518_v18  ;;  %v1946_v16 = vsel %vm1921_vm1, %v1881_v49, %v1913_v60 }
 0x151   :  { %v2171_v36 = vsel %vm2114_vm3, %v2106_v62, %v2074_v3  ;;  %v2075_v57 = vrot.slane %v1842_v31, 1  ;;  %v2107_v21 = vrot.slane %v1844_v45, 1  ;;  %v627_v44 = vmul.f32 %v4533_v25, %v5704_v17 }
 0x152   :  { %v2229_v54 = vmul.f32 %v4678_v46, %v2171_v36  ;;  %v1979_v11 = vsel %vm1921_vm1, %v1914_v63, %v1882_v35  ;;  %v1193_v51 = vadd.f32 %v1129_v13, %v690_v5  ;;  %v1130_v56 = vmul.f32 %v4566_v43, %v5808_v29 }
 0x153   :  { %v1634_v49 = vmul.f32 %v4611_v12, %v5912_v34  ;;  %v2035_v60 = vmul.f32 %v4508_v10, %v1979_v11  ;;  %v2140_v3 = vsel %vm2114_vm3, %v2075_v57, %v2107_v21  ;;  %v691_v62 = vadd.f32 %v627_v44, %v4521_v19 }
 0x154   :  { %v1947_v17 = vsel %vm1921_vm1, %v1882_v35, %v1914_v63  ;;  %v1697_v55 = vadd.f32 %v1633_v9, %v1193_v51  ;;  %v2172_v52 = vsel %vm2114_vm3, %v2107_v21, %v2075_v57  ;;  %v482_v28 = vmul.f32 %v4525_v22, %v5760_v32  ;;  %v5968_v21 = vld [vmem:[#allocation3 + $0x1c0] sm:$0xff]  ;;  %v5974_v51 = vld [vmem:[#allocation3 + $0x1d0] sm:$0xff] }
 0x155   :  { %v484_v2 = vmul.f32 %v4525_v22, %v5766_v6  ;;  %v2292_v53 = vadd.f32 %v2035_v60, %v1696_v0  ;;  %v1194_v30 = vadd.f32 %v1130_v56, %v691_v62  ;;  %v2230_v40 = vmul.f32 %v4678_v46, %v2172_v52 }
 0x156   :  { %v628_v13 = vmul.f32 %v4530_v24, %v5760_v32  ;;  %v2293_v31 = vadd.f32 %v1946_v16, %v1697_v55  ;;  %v774_v45 = vmul.f32 %v4536_v26, %v5760_v32  ;;  %v776_v35 = vmul.f32 %v4536_v26, %v5766_v6 }
 0x157   :  { %v985_v9 = vmul.f32 %v4554_v38, %v5864_v8  ;;  %v2356_v63 = vadd.f32 %v2292_v53, %v2140_v3  ;;  %v1698_v5 = vadd.f32 %v1634_v49, %v1194_v30  ;;  %v987_v36 = vmul.f32 %v4554_v38, %v5866_v48 }
 0x158   :  { %v692_v0 = vadd.f32 %v628_v13, %v4518_v18  ;;  %v2357_v57 = vadd.f32 %v2293_v31, %v2229_v54  ;;  %v1131_v32 = vmul.f32 %v4563_v42, %v5864_v8  ;;  %v1277_v44 = vmul.f32 %v4574_v47, %v5864_v8 }
 0x159   :  { %v1049_v16 = vadd.f32 %v985_v9, %v482_v28  ;;  %2420 = vst [vmem:[#allocation8 + $0x188] sm:$0xff] %v2356_v63  ;;  %v2294_v11 = vadd.f32 %v1947_v17, %v1698_v5  ;;  %v1051_v56 = vadd.f32 %v987_v36, %v484_v2  ;;  %v1279_v49 = vmul.f32 %v4574_v47, %v5866_v48 }
 0x15a   :  { %v1489_v54 = vmul.f32 %v4590_v58, %v5968_v21  ;;  %2421 = vst [vmem:[#allocation8 + $0x190] sm:$0xff] %v2357_v57  ;;  %v1195_v60 = vadd.f32 %v1131_v32, %v692_v0  ;;  %v1341_v3 = vadd.f32 %v1277_v44, %v774_v45  ;;  %v1491_v62 = vmul.f32 %v4590_v58, %v5974_v51 }
 0x15b   :  { %v1635_v55 = vmul.f32 %v4602_v4, %v5968_v21  ;;  %v2358_v52 = vadd.f32 %v2294_v11, %v2230_v40  ;;  %v1343_v17 = vadd.f32 %v1279_v49, %v776_v35  ;;  %v1781_v2 = vmul.f32 %v4618_v15, %v5968_v21 }
 0x15c   :  { %v1553_v28 = vadd.f32 %v1489_v54, %v1049_v16  ;;  %v1555_v53 = vadd.f32 %v1491_v62, %v1051_v56  ;;  %v1783_v13 = vmul.f32 %v4618_v15, %v5974_v51  ;;  %v483_v31 = vmul.f32 %v4527_v23, %v5802_v61 }
 0x15d   :  { %v1699_v30 = vadd.f32 %v1635_v55, %v1195_v60  ;;  %2422 = vst [vmem:[#allocation8 + $0x198] sm:$0xff] %v2358_v52  ;;  %v1845_v45 = vadd.f32 %v1781_v2, %v1341_v3  ;;  %v485_v63 = vmul.f32 %v4527_v23, %v5808_v29  ;;  %v629_v40 = vmul.f32 %v4533_v25, %v5802_v61  ;;  %v6010_v60 = vld [vmem:[#allocation3 + $0x1c8] sm:$0xff] }
 0x15e   :  { %v1883_v9 = vrot.slane %v1553_v28, 7  ;;  %v1847_v35 = vadd.f32 %v1783_v13, %v1343_v17  ;;  %v1915_v5 = vrot.slane %v1555_v53, 7  ;;  %v775_v0 = vmul.f32 %v4539_v27, %v5802_v61  ;;  %v6016_v17 = vld [vmem:[#allocation3 + $0x1d8] sm:$0xff] }
 0x15f   :  { %v777_v36 = vmul.f32 %v4539_v27, %v5808_v29  ;;  %v2076_v57 = vrot.slane %v1845_v45, 1  ;;  %v693_v16 = vadd.f32 %v629_v40, %v4521_v19  ;;  %v986_v32 = vmul.f32 %v4556_v39, %v5904_v14 }
 0x160   :  { %v988_v44 = vmul.f32 %v4556_v39, %v5912_v34  ;;  %v1980_v11 = vsel %vm1921_vm1, %v1915_v5, %v1883_v9  ;;  %v2108_v56 = vrot.slane %v1847_v35, 1  ;;  %v1132_v49 = vmul.f32 %v4566_v43, %v5904_v14 }
 0x161   :  { %v1278_v61 = vmul.f32 %v4580_v50, %v5904_v14  ;;  %v2038_v54 = vmul.f32 %v4508_v10, %v1980_v11  ;;  %v1050_v3 = vadd.f32 %v986_v32, %v483_v31  ;;  %v1280_v55 = vmul.f32 %v4580_v50, %v5912_v34 }
 0x162   :  { %v1052_v62 = vadd.f32 %v988_v44, %v485_v63  ;;  %v2141_v52 = vsel %vm2114_vm3, %v2076_v57, %v2108_v56  ;;  %v1196_v28 = vadd.f32 %v1132_v49, %v693_v16  ;;  %v1490_v53 = vmul.f32 %v4592_v59, %v6010_v60 }
 0x163   :  { %v1342_v2 = vadd.f32 %v1278_v61, %v775_v0  ;;  %v2295_v13 = vadd.f32 %v2038_v54, %v1699_v30  ;;  %v1344_v45 = vadd.f32 %v1280_v55, %v777_v36  ;;  %v1492_v40 = vmul.f32 %v4592_v59, %v6016_v17 }
 0x164   :  { %v1636_v31 = vmul.f32 %v4611_v12, %v6010_v60  ;;  %v1554_v63 = vadd.f32 %v1490_v53, %v1050_v3  ;;  %v1782_v35 = vmul.f32 %v4629_v7, %v6010_v60  ;;  %v1784_v32 = vmul.f32 %v4629_v7, %v6016_v17 }
 0x165   :  { %v630_v0 = vmul.f32 %v4530_v24, %v5766_v6  ;;  %v2359_v16 = vadd.f32 %v2295_v13, %v2141_v52  ;;  %v1556_v44 = vadd.f32 %v1492_v40, %v1052_v62  ;;  %v1133_v36 = vmul.f32 %v4563_v42, %v5866_v48 }
 0x166   :  { %v1700_v30 = vadd.f32 %v1636_v31, %v1196_v28  ;;  %v1846_v11 = vadd.f32 %v1782_v35, %v1342_v2  ;;  %v1848_v49 = vadd.f32 %v1784_v32, %v1344_v45  ;;  %v1884_v61 = vrot.slane %v1554_v63, 7 }
 0x167   :  { %v694_v54 = vadd.f32 %v630_v0, %v4518_v18  ;;  %2423 = vst [vmem:[#allocation8 + $0x1a0] sm:$0xff] %v2359_v16  ;;  %v1916_v3 = vrot.slane %v1556_v44, 7  ;;  %v1637_v55 = vmul.f32 %v4602_v4, %v5974_v51  ;;  %v1948_v53 = vsel %vm1921_vm1, %v1883_v9, %v1915_v5 }
 0x168   :  { %v2173_v6 = vsel %vm2114_vm3, %v2108_v56, %v2076_v57  ;;  %v2077_v62 = vrot.slane %v1846_v11, 1  ;;  %v2109_v52 = vrot.slane %v1848_v49, 1  ;;  %v631_v45 = vmul.f32 %v4533_v25, %v5808_v29 }
 0x169   :  { %v1197_v28 = vadd.f32 %v1133_v36, %v694_v54  ;;  %v2233_v2 = vmul.f32 %v4678_v46, %v2173_v6  ;;  %v1981_v13 = vsel %vm1921_vm1, %v1916_v3, %v1884_v61  ;;  %v1134_v40 = vmul.f32 %v4566_v43, %v5912_v34 }
 0x16a   :  { %v1638_v9 = vmul.f32 %v4611_v12, %v6016_v17  ;;  %v2039_v5 = vmul.f32 %v4508_v10, %v1981_v13  ;;  %v2142_v57 = vsel %vm2114_vm3, %v2077_v62, %v2109_v52  ;;  %v1949_v31 = vsel %vm1921_vm1, %v1884_v61, %v1916_v3 }
 0x16b   :  { %v1701_v56 = vadd.f32 %v1637_v55, %v1197_v28  ;;  %v695_v63 = vadd.f32 %v631_v45, %v4521_v19  ;;  %v2174_v29 = vsel %vm2114_vm3, %v2109_v52, %v2077_v62  ;;  %v486_v35 = vmul.f32 %v4525_v22, %v5864_v8  ;;  %v6072_v62 = vld [vmem:[#allocation3 + $0x1e0] sm:$0xff]  ;;  %v6074_v52 = vld [vmem:[#allocation3 + $0x1f0] sm:$0xff] }
 0x16c   :  { %v488_v32 = vmul.f32 %v4525_v22, %v5866_v48  ;;  %v2296_v0 = vadd.f32 %v2039_v5, %v1700_v30  ;;  %v2234_v44 = vmul.f32 %v4678_v46, %v2174_v29  ;;  %v632_v36 = vmul.f32 %v4530_v24, %v5864_v8 }
 0x16d   :  { %v2297_v16 = vadd.f32 %v1948_v53, %v1701_v56  ;;  %v1198_v11 = vadd.f32 %v1134_v40, %v695_v63  ;;  %v778_v49 = vmul.f32 %v4536_v26, %v5864_v8  ;;  %v780_v61 = vmul.f32 %v4536_v26, %v5866_v48 }
 0x16e   :  { %v989_v54 = vmul.f32 %v4554_v38, %v5968_v21  ;;  %v2360_v3 = vadd.f32 %v2296_v0, %v2142_v57  ;;  %v696_v30 = vadd.f32 %v632_v36, %v4518_v18  ;;  %v991_v53 = vmul.f32 %v4554_v38, %v5974_v51 }
 0x16f   :  { %v2361_v55 = vadd.f32 %v2297_v16, %v2233_v2  ;;  %v1702_v6 = vadd.f32 %v1638_v9, %v1198_v11  ;;  %v1135_v8 = vmul.f32 %v4563_v42, %v5968_v21  ;;  %v1281_v13 = vmul.f32 %v4574_v47, %v5968_v21 }
 0x170   :  { %v1053_v28 = vadd.f32 %v989_v54, %v486_v35  ;;  %2424 = vst [vmem:[#allocation8 + $0x1a8] sm:$0xff] %v2360_v3  ;;  %v1055_v2 = vadd.f32 %v991_v53, %v488_v32  ;;  %v1283_v45 = vmul.f32 %v4574_v47, %v5974_v51  ;;  %v1493_v40 = vmul.f32 %v4590_v58, %v6072_v62 }
 0x171   :  { %2425 = vst [vmem:[#allocation8 + $0x1b0] sm:$0xff] %v2361_v55  ;;  %v1495_v9 = vmul.f32 %v4590_v58, %v6074_v52  ;;  %v2298_v5 = vadd.f32 %v1949_v31, %v1702_v6  ;;  %v1199_v57 = vadd.f32 %v1135_v8, %v696_v30  ;;  %v1345_v56 = vadd.f32 %v1281_v13, %v778_v49 }
 0x172   :  { %v1639_v63 = vmul.f32 %v4602_v4, %v6072_v62  ;;  %v1347_v29 = vadd.f32 %v1283_v45, %v780_v61  ;;  %v1557_v35 = vadd.f32 %v1493_v40, %v1053_v28  ;;  %v1785_v32 = vmul.f32 %v4618_v15, %v6072_v62 }
 0x173   :  { %v1559_v0 = vadd.f32 %v1495_v9, %v1055_v2  ;;  %v2362_v16 = vadd.f32 %v2298_v5, %v2234_v44  ;;  %v1787_v11 = vmul.f32 %v4618_v15, %v6074_v52  ;;  %v487_v54 = vmul.f32 %v4527_v23, %v5904_v14  ;;  %v6112_v9 = vld [vmem:[#allocation3 + $0x1e8] sm:$0xff] }
 0x174   :  { %v1703_v36 = vadd.f32 %v1639_v63, %v1199_v57  ;;  %v1849_v31 = vadd.f32 %v1785_v32, %v1345_v56  ;;  %v1885_v3 = vrot.slane %v1557_v35, 7  ;;  %v489_v55 = vmul.f32 %v4527_v23, %v5912_v34 }
 0x175   :  { %v1917_v49 = vrot.slane %v1559_v0, 7  ;;  %2426 = vst [vmem:[#allocation8 + $0x1b8] sm:$0xff] %v2362_v16  ;;  %v1851_v61 = vadd.f32 %v1787_v11, %v1347_v29  ;;  %v633_v30 = vmul.f32 %v4533_v25, %v5904_v14  ;;  %v779_v44 = vmul.f32 %v4539_v27, %v5904_v14  ;;  %v6120_v0 = vld [vmem:[#allocation3 + $0x1f8] sm:$0xff] }
 0x176   :  { %v781_v53 = vmul.f32 %v4539_v27, %v5912_v34  ;;  %v2078_v28 = vrot.slane %v1849_v31, 1  ;;  %v990_v8 = vmul.f32 %v4556_v39, %v6010_v60  ;;  %v992_v13 = vmul.f32 %v4556_v39, %v6016_v17 }
 0x177   :  { %v1982_v6 = vsel %vm1921_vm1, %v1917_v49, %v1885_v3  ;;  %v2110_v45 = vrot.slane %v1851_v61, 1  ;;  %v697_v40 = vadd.f32 %v633_v30, %v4521_v19  ;;  %v1136_v14 = vmul.f32 %v4566_v43, %v6010_v60 }
 0x178   :  { %v2042_v2 = vmul.f32 %v4508_v10, %v1982_v6  ;;  %v1054_v5 = vadd.f32 %v990_v8, %v487_v54  ;;  %v1056_v57 = vadd.f32 %v992_v13, %v489_v55  ;;  %v1282_v56 = vmul.f32 %v4580_v50, %v6010_v60 }
 0x179   :  { %v1284_v63 = vmul.f32 %v4580_v50, %v6016_v17  ;;  %v2143_v29 = vsel %vm2114_vm3, %v2078_v28, %v2110_v45  ;;  %v1200_v32 = vadd.f32 %v1136_v14, %v697_v40  ;;  %v1494_v16 = vmul.f32 %v4592_v59, %v6112_v9 }
 0x17a   :  { %v2299_v35 = vadd.f32 %v2042_v2, %v1703_v36  ;;  %v1346_v11 = vadd.f32 %v1282_v56, %v779_v44  ;;  %v1496_v54 = vmul.f32 %v4592_v59, %v6120_v0  ;;  %v1640_v55 = vmul.f32 %v4611_v12, %v6112_v9 }
 0x17b   :  { %v1348_v31 = vadd.f32 %v1284_v63, %v781_v53  ;;  %v1558_v30 = vadd.f32 %v1494_v16, %v1054_v5  ;;  %v1786_v6 = vmul.f32 %v4629_v7, %v6112_v9  ;;  %v1788_v36 = vmul.f32 %v4629_v7, %v6120_v0 }
 0x17c   :  { %v2363_v61 = vadd.f32 %v2299_v35, %v2143_v29  ;;  %v1560_v8 = vadd.f32 %v1496_v54, %v1056_v57  ;;  %v1704_v13 = vadd.f32 %v1640_v55, %v1200_v32  ;;  %v634_v44 = vmul.f32 %v4530_v24, %v5866_v48 }
 0x17d   :  { %v1137_v53 = vmul.f32 %v4563_v42, %v5974_v51  ;;  %v1850_v2 = vadd.f32 %v1786_v6, %v1346_v11  ;;  %v1852_v40 = vadd.f32 %v1788_v36, %v1348_v31  ;;  %v1886_v14 = vrot.slane %v1558_v30, 7 }
 0x17e   :  { %2427 = vst [vmem:[#allocation8 + $0x1c0] sm:$0xff] %v2363_v61  ;;  %v1641_v5 = vmul.f32 %v4602_v4, %v6074_v52  ;;  %v1918_v56 = vrot.slane %v1560_v8, 7  ;;  %v698_v63 = vadd.f32 %v634_v44, %v4518_v18  ;;  %v1950_v57 = vsel %vm1921_vm1, %v1885_v3, %v1917_v49 }
 0x17f   :  { %v2175_v29 = vsel %vm2114_vm3, %v2110_v45, %v2078_v28  ;;  %v2079_v48 = vrot.slane %v1850_v2, 1  ;;  %v2111_v35 = vrot.slane %v1852_v40, 1  ;;  %v635_v16 = vmul.f32 %v4533_v25, %v5912_v34 }
 0x180   :  { %v2237_v32 = vmul.f32 %v4678_v46, %v2175_v29  ;;  %v1983_v11 = vsel %vm1921_vm1, %v1918_v56, %v1886_v14  ;;  %v1201_v31 = vadd.f32 %v1137_v53, %v698_v63  ;;  %v1138_v54 = vmul.f32 %v4566_v43, %v6016_v17 }
 0x181   :  { %v1642_v3 = vmul.f32 %v4611_v12, %v6120_v0  ;;  %v2043_v49 = vmul.f32 %v4508_v10, %v1983_v11  ;;  %v2144_v28 = vsel %vm2114_vm3, %v2079_v48, %v2111_v35  ;;  %v699_v45 = vadd.f32 %v635_v16, %v4521_v19 }
 0x182   :  { %v1951_v34 = vsel %vm1921_vm1, %v1886_v14, %v1918_v56  ;;  %v1705_v55 = vadd.f32 %v1641_v5, %v1201_v31  ;;  %v2176_v61 = vsel %vm2114_vm3, %v2111_v35, %v2079_v48  ;;  %v490_v30 = vmul.f32 %v4525_v22, %v5968_v21 }
 0x183   :  { %v492_v6 = vmul.f32 %v4525_v22, %v5974_v51  ;;  %v2300_v36 = vadd.f32 %v2043_v49, %v1704_v13  ;;  %v1202_v8 = vadd.f32 %v1138_v54, %v699_v45  ;;  %v2238_v44 = vmul.f32 %v4678_v46, %v2176_v61 }
 0x184   :  { %v636_v53 = vmul.f32 %v4530_v24, %v5968_v21  ;;  %v2301_v2 = vadd.f32 %v1950_v57, %v1705_v55  ;;  %v782_v40 = vmul.f32 %v4536_v26, %v5968_v21  ;;  %v784_v14 = vmul.f32 %v4536_v26, %v5974_v51 }
 0x185   :  { %v993_v5 = vmul.f32 %v4554_v38, %v6072_v62  ;;  %v2364_v56 = vadd.f32 %v2300_v36, %v2144_v28  ;;  %v1706_v63 = vadd.f32 %v1642_v3, %v1202_v8  ;;  %v995_v29 = vmul.f32 %v4554_v38, %v6074_v52 }
 0x186   :  { %v700_v13 = vadd.f32 %v636_v53, %v4518_v18  ;;  %v2365_v48 = vadd.f32 %v2301_v2, %v2237_v32  ;;  %v1139_v57 = vmul.f32 %v4563_v42, %v6072_v62  ;;  %v1285_v21 = vmul.f32 %v4574_v47, %v6072_v62 }
 0x187   :  { %v1057_v35 = vadd.f32 %v993_v5, %v490_v30  ;;  %2428 = vst [vmem:[#allocation8 + $0x1c8] sm:$0xff] %v2364_v56  ;;  %v2302_v16 = vadd.f32 %v1951_v34, %v1706_v63  ;;  %v1059_v11 = vadd.f32 %v995_v29, %v492_v6  ;;  %v1287_v31 = vmul.f32 %v4574_v47, %v6074_v52 }
 0x188   :  { %v6183_v54 = vmul.f32 0.0, %v4590_v58  ;;  %2429 = vst [vmem:[#allocation8 + $0x1d0] sm:$0xff] %v2365_v48  ;;  %v1203_v3 = vadd.f32 %v1139_v57, %v700_v13  ;;  %v1349_v49 = vadd.f32 %v1285_v21, %v782_v40  ;;  %v6186_v32 = vmul.f32 0.0, %v4602_v4 }
 0x189   :  { %v6189_v28 = vmul.f32 0.0, %v4618_v15  ;;  %v2366_v45 = vadd.f32 %v2302_v16, %v2238_v44  ;;  %v1351_v62 = vadd.f32 %v1287_v31, %v784_v14  ;;  %v491_v6 = vmul.f32 %v4527_v23, %v6010_v60 }
 0x18a   :  { %v1561_v34 = vadd.f32 %v6183_v54, %v1057_v35  ;;  %v1563_v55 = vadd.f32 %v6183_v54, %v1059_v11  ;;  %v1707_v61 = vadd.f32 %v6186_v32, %v1203_v3  ;;  %v493_v36 = vmul.f32 %v4527_v23, %v6016_v17 }
 0x18b   :  { %v1853_v30 = vadd.f32 %v6189_v28, %v1349_v49  ;;  %2430 = vst [vmem:[#allocation8 + $0x1d8] sm:$0xff] %v2366_v45  ;;  %v1855_v8 = vadd.f32 %v6189_v28, %v1351_v62  ;;  %v637_v2 = vmul.f32 %v4533_v25, %v6010_v60  ;;  %v783_v14 = vmul.f32 %v4539_v27, %v6010_v60 }
 0x18c   :  { %v1887_v53 = vrot.slane %v1561_v34, 7  ;;  %v1919_v44 = vrot.slane %v1563_v55, 7  ;;  %v785_v5 = vmul.f32 %v4539_v27, %v6016_v17  ;;  %v994_v56 = vmul.f32 %v4556_v39, %v6112_v9 }
 0x18d   :  { %v2080_v40 = vrot.slane %v1853_v30, 1  ;;  %v2112_v13 = vrot.slane %v1855_v8, 1  ;;  %v701_v29 = vadd.f32 %v637_v2, %v4521_v19  ;;  %v996_v48 = vmul.f32 %v4556_v39, %v6120_v0 }
 0x18e   :  { %v1984_v63 = vsel %vm1921_vm1, %v1919_v44, %v1887_v53  ;;  %v1058_v57 = vadd.f32 %v994_v56, %v491_v6  ;;  %v1140_v60 = vmul.f32 %v4566_v43, %v6112_v9  ;;  %v1286_v21 = vmul.f32 %v4580_v50, %v6112_v9 }
 0x18f   :  { %v2046_v35 = vmul.f32 %v4508_v10, %v1984_v63  ;;  %v2145_v16 = vsel %vm2114_vm3, %v2080_v40, %v2112_v13  ;;  %v1060_v11 = vadd.f32 %v996_v48, %v493_v36  ;;  %v1288_v31 = vmul.f32 %v4580_v50, %v6120_v0 }
 0x190   :  { %v6223_v3 = vmul.f32 0.0, %v4592_v59  ;;  %v1204_v45 = vadd.f32 %v1140_v60, %v701_v29  ;;  %v1350_v62 = vadd.f32 %v1286_v21, %v783_v14  ;;  %v6226_v34 = vmul.f32 0.0, %v4611_v12 }
 0x191   :  { %v2303_v49 = vadd.f32 %v2046_v35, %v1707_v61  ;;  %v1352_v55 = vadd.f32 %v1288_v31, %v785_v5  ;;  %v6231_v6 = vmul.f32 0.0, %v4629_v7  ;;  %v638_v2 = vmul.f32 %v4530_v24, %v5974_v51 }
 0x192   :  { %7919 = vst [vmem:[#allocation14_spill] sm:$0xff] %v6226_v34  ;;  %v1562_v30 = vadd.f32 %v6223_v3, %v1058_v57  ;;  %v1564_v9 = vadd.f32 %v6223_v3, %v1060_v11  ;;  %v1708_v8 = vadd.f32 %v6226_v34, %v1204_v45  ;;  %v1141_v61 = vmul.f32 %v4563_v42, %v6074_v52  ;;  %v6247_v57 = vld [vmem:[#allocation3 + $0x200] sm:$0xff] }
 0x193   :  { %7920 = vst [vmem:[#allocation15_spill] sm:$0xff] %v6231_v6  ;;  %v2367_v36 = vadd.f32 %v2303_v49, %v2145_v16  ;;  %v1854_v14 = vadd.f32 %v6231_v6, %v1350_v62  ;;  %v1856_v5 = vadd.f32 %v6231_v6, %v1352_v55  ;;  %v702_v29 = vadd.f32 %v638_v2, %v4518_v18 }
 0x194   :  { %v1888_v56 = vrot.slane %v1562_v30, 7  ;;  %v1920_v63 = vrot.slane %v1564_v9, 7  ;;  %v1952_v48 = vsel %vm1921_vm1, %v1887_v53, %v1919_v44  ;;  %v2177_v35 = vsel %vm2114_vm3, %v2112_v13, %v2080_v40  ;;  %v6256_v40 = vld [vmem:[#allocation3 + $0x210] sm:$0xff] }
 0x195   :  { %2431 = vst [vmem:[#allocation8 + $0x1e0] sm:$0xff] %v2367_v36  ;;  %v639_v51 = vmul.f32 %v4533_v25, %v6016_v17  ;;  %v2081_v60 = vrot.slane %v1854_v14, 1  ;;  %v2113_v21 = vrot.slane %v1856_v5, 1  ;;  %v2241_v16 = vmul.f32 %v4678_v46, %v2177_v35 }
 0x196   :  { %v1985_v52 = vsel %vm1921_vm1, %v1920_v63, %v1888_v56  ;;  %v1205_v31 = vadd.f32 %v1141_v61, %v702_v29  ;;  %v1142_v44 = vmul.f32 %v4566_v43, %v6120_v0  ;;  %v1953_v13 = vsel %vm1921_vm1, %v1888_v56, %v1920_v63  ;;  %v6276_v56 = vld [vmem:[#allocation3 + $0x220] sm:$0xff]  ;;  %v6280_v29 = vld [vmem:[#allocation3 + $0x230] sm:$0xff] }
 0x197   :  { %v2047_v11 = vmul.f32 %v4508_v10, %v1985_v52  ;;  %v703_v53 = vadd.f32 %v639_v51, %v4521_v19  ;;  %v2146_v17 = vsel %vm2114_vm3, %v2081_v60, %v2113_v21  ;;  %v2178_v49 = vsel %vm2114_vm3, %v2113_v21, %v2081_v60  ;;  %v6287_v21 = vld [vmem:[#allocation3 + $0x208] sm:$0xff] }
 0x198   :  { %v2949_v45 = vmul.f32 %v4554_v38, %v6247_v57  ;;  %v1709_v55 = vadd.f32 %v6186_v32, %v1205_v31  ;;  %v2242_v0 = vmul.f32 %v4678_v46, %v2178_v49  ;;  %v2951_v9 = vmul.f32 %v4554_v38, %v6256_v40 }
 0x199   :  { %v2304_v62 = vadd.f32 %v2047_v11, %v1708_v8  ;;  %v1206_v30 = vadd.f32 %v1142_v44, %v703_v53  ;;  %v3077_v2 = vmul.f32 %v4563_v42, %v6247_v57  ;;  %v3205_v61 = vmul.f32 %v4574_v47, %v6247_v57 }
 0x19a   :  { %v3013_v36 = vadd.f32 %v2949_v45, %v4546_v33  ;;  %v2305_v5 = vadd.f32 %v1952_v48, %v1709_v55  ;;  %v3207_v63 = vmul.f32 %v4574_v47, %v6256_v40  ;;  %v3015_v35 = vadd.f32 %v2951_v9, %v4546_v33  ;;  %v6289_v48 = vld [vmem:[#allocation3 + $0x218] sm:$0xff] }
 0x19b   :  { %v2368_v14 = vadd.f32 %v2304_v62, %v2146_v17  ;;  %v1710_v8 = vadd.f32 %v6226_v34, %v1206_v30  ;;  %v3141_v51 = vadd.f32 %v3077_v2, %v4560_v41  ;;  %v3269_v52 = vadd.f32 %v3205_v61, %v4552_v37 }
 0x19c   :  { %v3398_v60 = vmul.f32 %v4590_v58, %v6276_v56  ;;  %v2369_v11 = vadd.f32 %v2305_v5, %v2241_v16  ;;  %v3271_v53 = vadd.f32 %v3207_v63, %v4552_v37  ;;  %v3400_v44 = vmul.f32 %v4590_v58, %v6280_v29  ;;  %v6308_v63 = vld [vmem:[#allocation3 + $0x228] sm:$0xff] }
 0x19d   :  { %2432 = vst [vmem:[#allocation8 + $0x1e8] sm:$0xff] %v2368_v14  ;;  %v2306_v31 = vadd.f32 %v1953_v13, %v1710_v8  ;;  %v3526_v17 = vmul.f32 %v4602_v4, %v6276_v56  ;;  %v3654_v49 = vmul.f32 %v4618_v15, %v6276_v56  ;;  %v3656_v45 = vmul.f32 %v4618_v15, %v6280_v29 }
 0x19e   :  { %v3462_v33 = vadd.f32 %v3398_v60, %v3013_v36  ;;  %2433 = vst [vmem:[#allocation8 + $0x1f0] sm:$0xff] %v2369_v11  ;;  %v3464_v55 = vadd.f32 %v3400_v44, %v3015_v35  ;;  %v2950_v16 = vmul.f32 %v4556_v39, %v6287_v21  ;;  %v2952_v37 = vmul.f32 %v4556_v39, %v6289_v48  ;;  %v6310_v35 = vld [vmem:[#allocation3 + $0x238] sm:$0xff]  ;;  %v7921_v11 = vld [vmem:[#allocation13_spill] sm:$0xff] }
 0x19f   :  { %v2370_v62 = vadd.f32 %v2306_v31, %v2242_v0  ;;  %v3590_v13 = vadd.f32 %v3526_v17, %v3141_v51  ;;  %v3718_v30 = vadd.f32 %v3654_v49, %v3269_v52  ;;  %v3720_v9 = vadd.f32 %v3656_v45, %v3271_v53  ;;  %v7922_v17 = vld [vmem:[#allocation12_spill] sm:$0xff] }
 0x1a0   :  { %v3782_v36 = vrot.slane %v3462_v33, 7  ;;  %v3814_v2 = vrot.slane %v3464_v55, 7  ;;  %v3014_v61 = vadd.f32 %v2950_v16, %v4625_v20  ;;  %v3016_v14 = vadd.f32 %v2952_v37, %v4625_v20 }
 0x1a1   :  { %2434 = vst [vmem:[#allocation8 + $0x1f8] sm:$0xff] %v2370_v62  ;;  %v3078_v0 = vmul.f32 %v4566_v43, %v6287_v21  ;;  %v3974_v5 = vrot.slane %v3718_v30, 1  ;;  %v4006_v8 = vrot.slane %v3720_v9, 1  ;;  %v3206_v51 = vmul.f32 %v4580_v50, %v6287_v21 }
 0x1a2   :  { %v3208_v52 = vmul.f32 %v4580_v50, %v6289_v48  ;;  %v3878_v60 = vsel %vm1921_vm1, %v3814_v2, %v3782_v36  ;;  %v3399_v31 = vmul.f32 %v4592_v59, %v6308_v63  ;;  %v3401_v53 = vmul.f32 %v4592_v59, %v6310_v35 }
 0x1a3   :  { %v3142_v20 = vadd.f32 %v3078_v0, %v7921_v11  ;;  %v3910_v44 = vmul.f32 %v4508_v10, %v3878_v60  ;;  %v4038_v33 = vsel %vm2114_vm3, %v3974_v5, %v4006_v8  ;;  %v3270_v49 = vadd.f32 %v3206_v51, %v7922_v17 }
 0x1a4   :  { %v3272_v45 = vadd.f32 %v3208_v52, %v7922_v17  ;;  %v3463_v62 = vadd.f32 %v3399_v31, %v3014_v61  ;;  %v3465_v55 = vadd.f32 %v3401_v53, %v3016_v14  ;;  %v3527_v16 = vmul.f32 %v4611_v12, %v6308_v63 }
 0x1a5   :  { %v3655_v37 = vmul.f32 %v4629_v7, %v6308_v63  ;;  %v4166_v30 = vadd.f32 %v3910_v44, %v3590_v13  ;;  %v3657_v9 = vmul.f32 %v4629_v7, %v6310_v35  ;;  %v3079_v0 = vmul.f32 %v4563_v42, %v6256_v40 }
 0x1a6   :  { %v3528_v51 = vmul.f32 %v4602_v4, %v6280_v29  ;;  %v3591_v60 = vadd.f32 %v3527_v16, %v3142_v20  ;;  %v3783_v61 = vrot.slane %v3463_v62, 7  ;;  %v3815_v14 = vrot.slane %v3465_v55, 7 }
 0x1a7   :  { %v3719_v52 = vadd.f32 %v3655_v37, %v3270_v49  ;;  %v4230_v31 = vadd.f32 %v4166_v30, %v4038_v33  ;;  %v3721_v53 = vadd.f32 %v3657_v9, %v3272_v45  ;;  %v3143_v17 = vadd.f32 %v3079_v0, %v4560_v41 }
 0x1a8   :  { %v3846_v13 = vsel %vm1921_vm1, %v3782_v36, %v3814_v2  ;;  %v3879_v44 = vsel %vm1921_vm1, %v3815_v14, %v3783_v61  ;;  %v4070_v6 = vsel %vm2114_vm3, %v4006_v8, %v3974_v5  ;;  %v3080_v20 = vmul.f32 %v4566_v43, %v6289_v48 }
 0x1a9   :  { %v3975_v34 = vrot.slane %v3719_v52, 1  ;;  %4295 = vst [vmem:[#allocation8 + $0x200] sm:$0xff] %v4230_v31  ;;  %v3911_v49 = vmul.f32 %v4508_v10, %v3879_v44  ;;  %v4007_v33 = vrot.slane %v3721_v53, 1  ;;  %v3592_v45 = vadd.f32 %v3528_v51, %v3143_v17  ;;  %v6376_v17 = vld [vmem:[#allocation3 + $0x250] sm:$0xff] }
 0x1aa   :  { %v4104_v41 = vmul.f32 %v4678_v46, %v4070_v6  ;;  %v3144_v62 = vadd.f32 %v3080_v20, %v7921_v11  ;;  %v3529_v36 = vmul.f32 %v4611_v12, %v6310_v35  ;;  %v3847_v2 = vsel %vm1921_vm1, %v3783_v61, %v3815_v14  ;;  %v6369_v14 = vld [vmem:[#allocation3 + $0x240] sm:$0xff] }
 0x1ab   :  { %v2504_v5 = vmul.f32 %v4525_v22, %v6247_v57  ;;  %v4039_v8 = vsel %vm2114_vm3, %v3975_v34, %v4007_v33  ;;  %v4167_v55 = vadd.f32 %v3911_v49, %v3591_v60  ;;  %v4168_v16 = vadd.f32 %v3846_v13, %v3592_v45 }
 0x1ac   :  { %v4071_v37 = vsel %vm2114_vm3, %v4007_v33, %v3975_v34  ;;  %v3593_v6 = vadd.f32 %v3529_v36, %v3144_v62  ;;  %v2506_v30 = vmul.f32 %v4525_v22, %v6256_v40  ;;  %v2632_v9 = vmul.f32 %v4530_v24, %v6247_v57 }
 0x1ad   :  { %v4105_v11 = vmul.f32 %v4678_v46, %v4071_v37  ;;  %v4231_v0 = vadd.f32 %v4167_v55, %v4039_v8  ;;  %v4232_v51 = vadd.f32 %v4168_v16, %v4104_v41  ;;  %v2760_v52 = vmul.f32 %v4536_v26, %v6247_v57 }
 0x1ae   :  { %v2762_v60 = vmul.f32 %v4536_v26, %v6256_v40  ;;  %v4169_v61 = vadd.f32 %v3847_v2, %v3593_v6  ;;  %v2696_v34 = vadd.f32 %v2632_v9, %v4518_v18  ;;  %v2953_v31 = vmul.f32 %v4554_v38, %v6276_v56 }
 0x1af   :  { %v2955_v53 = vmul.f32 %v4554_v38, %v6280_v29  ;;  %4296 = vst [vmem:[#allocation8 + $0x208] sm:$0xff] %v4231_v0  ;;  %4297 = vst [vmem:[#allocation8 + $0x210] sm:$0xff] %v4232_v51  ;;  %v3081_v57 = vmul.f32 %v4563_v42, %v6276_v56  ;;  %v3209_v13 = vmul.f32 %v4574_v47, %v6276_v56 }
 0x1b0   :  { %v3211_v44 = vmul.f32 %v4574_v47, %v6280_v29  ;;  %v3402_v20 = vmul.f32 %v4590_v58, %v6369_v14  ;;  %v4233_v49 = vadd.f32 %v4169_v61, %v4105_v11  ;;  %v3017_v33 = vadd.f32 %v2953_v31, %v2504_v5 }
 0x1b1   :  { %v3019_v45 = vadd.f32 %v2955_v53, %v2506_v30  ;;  %v3404_v41 = vmul.f32 %v4590_v58, %v6376_v17  ;;  %v3145_v62 = vadd.f32 %v3081_v57, %v2696_v34  ;;  %v3273_v36 = vadd.f32 %v3209_v13, %v2760_v52 }
 0x1b2   :  { %v3275_v2 = vadd.f32 %v3211_v44, %v2762_v60  ;;  %v3530_v8 = vmul.f32 %v4602_v4, %v6369_v14  ;;  %4298 = vst [vmem:[#allocation8 + $0x218] sm:$0xff] %v4233_v49  ;;  %v3466_v55 = vadd.f32 %v3402_v20, %v3017_v33  ;;  %v3658_v37 = vmul.f32 %v4618_v15, %v6369_v14  ;;  %v6412_v33 = vld [vmem:[#allocation3 + $0x248] sm:$0xff] }
 0x1b3   :  { %v3468_v16 = vadd.f32 %v3404_v41, %v3019_v45  ;;  %v3660_v6 = vmul.f32 %v4618_v15, %v6376_v17  ;;  %v2505_v11 = vmul.f32 %v4527_v23, %v6287_v21  ;;  %v2507_v30 = vmul.f32 %v4527_v23, %v6289_v48 }
 0x1b4   :  { %v3594_v5 = vadd.f32 %v3530_v8, %v3145_v62  ;;  %v2633_v9 = vmul.f32 %v4533_v25, %v6287_v21  ;;  %v3722_v0 = vadd.f32 %v3658_v37, %v3273_v36  ;;  %v3784_v52 = vrot.slane %v3466_v55, 7  ;;  %v6420_v36 = vld [vmem:[#allocation3 + $0x258] sm:$0xff] }
 0x1b5   :  { %v3724_v51 = vadd.f32 %v3660_v6, %v3275_v2  ;;  %v3816_v60 = vrot.slane %v3468_v16, 7  ;;  %v2761_v34 = vmul.f32 %v4539_v27, %v6287_v21  ;;  %v2763_v31 = vmul.f32 %v4539_v27, %v6289_v48 }
 0x1b6   :  { %v2697_v61 = vadd.f32 %v2633_v9, %v4521_v19  ;;  %v2954_v53 = vmul.f32 %v4556_v39, %v6308_v63  ;;  %v3976_v13 = vrot.slane %v3722_v0, 1  ;;  %v2956_v20 = vmul.f32 %v4556_v39, %v6310_v35 }
 0x1b7   :  { %v3880_v57 = vsel %vm1921_vm1, %v3816_v60, %v3784_v52  ;;  %v4008_v44 = vrot.slane %v3724_v51, 1  ;;  %v3082_v21 = vmul.f32 %v4566_v43, %v6308_v63  ;;  %v3210_v41 = vmul.f32 %v4580_v50, %v6308_v63 }
 0x1b8   :  { %v3914_v49 = vmul.f32 %v4508_v10, %v3880_v57  ;;  %v3018_v45 = vadd.f32 %v2954_v53, %v2505_v11  ;;  %v3020_v2 = vadd.f32 %v2956_v20, %v2507_v30  ;;  %v3212_v8 = vmul.f32 %v4580_v50, %v6310_v35 }
 0x1b9   :  { %v4040_v62 = vsel %vm2114_vm3, %v3976_v13, %v4008_v44  ;;  %v3403_v55 = vmul.f32 %v4592_v59, %v6412_v33  ;;  %v3146_v37 = vadd.f32 %v3082_v21, %v2697_v61  ;;  %v3274_v6 = vadd.f32 %v3210_v41, %v2761_v34 }
 0x1ba   :  { %v4170_v16 = vadd.f32 %v3914_v49, %v3594_v5  ;;  %v3405_v11 = vmul.f32 %v4592_v59, %v6420_v36  ;;  %v3276_v9 = vadd.f32 %v3212_v8, %v2763_v31  ;;  %v3531_v51 = vmul.f32 %v4611_v12, %v6412_v33 }
 0x1bb   :  { %v3467_v0 = vadd.f32 %v3403_v55, %v3018_v45  ;;  %v3659_v30 = vmul.f32 %v4629_v7, %v6412_v33  ;;  %v3661_v20 = vmul.f32 %v4629_v7, %v6420_v36  ;;  %v2634_v5 = vmul.f32 %v4530_v24, %v6256_v40 }
 0x1bc   :  { %v4234_v53 = vadd.f32 %v4170_v16, %v4040_v62  ;;  %v3469_v57 = vadd.f32 %v3405_v11, %v3020_v2  ;;  %v3595_v61 = vadd.f32 %v3531_v51, %v3146_v37  ;;  %v3083_v31 = vmul.f32 %v4563_v42, %v6280_v29 }
 0x1bd   :  { %v3723_v34 = vadd.f32 %v3659_v30, %v3274_v6  ;;  %v3785_v49 = vrot.slane %v3467_v0, 7  ;;  %v3725_v45 = vadd.f32 %v3661_v20, %v3276_v9  ;;  %v2698_v41 = vadd.f32 %v2634_v5, %v4518_v18 }
 0x1be   :  { %4299 = vst [vmem:[#allocation8 + $0x220] sm:$0xff] %v4234_v53  ;;  %v3817_v21 = vrot.slane %v3469_v57, 7  ;;  %v3532_v62 = vmul.f32 %v4602_v4, %v6376_v17  ;;  %v3848_v8 = vsel %vm1921_vm1, %v3784_v52, %v3816_v60  ;;  %v4072_v40 = vsel %vm2114_vm3, %v4008_v44, %v3976_v13 }
 0x1bf   :  { %v3977_v2 = vrot.slane %v3723_v34, 1  ;;  %v2635_v55 = vmul.f32 %v4533_v25, %v6289_v48  ;;  %v4009_v37 = vrot.slane %v3725_v45, 1  ;;  %v3147_v6 = vadd.f32 %v3083_v31, %v2698_v41 }
 0x1c0   :  { %v3881_v16 = vsel %vm1921_vm1, %v3817_v21, %v3785_v49  ;;  %v4108_v11 = vmul.f32 %v4678_v46, %v4072_v40  ;;  %v3084_v52 = vmul.f32 %v4566_v43, %v6310_v35  ;;  %v3533_v60 = vmul.f32 %v4611_v12, %v6420_v36 }
 0x1c1   :  { %v3915_v9 = vmul.f32 %v4508_v10, %v3881_v16  ;;  %v2699_v0 = vadd.f32 %v2635_v55, %v4521_v19  ;;  %v4041_v48 = vsel %vm2114_vm3, %v3977_v2, %v4009_v37  ;;  %v3596_v13 = vadd.f32 %v3532_v62, %v3147_v6  ;;  %v6482_v16 = vld [vmem:[#allocation3 + $0x270] sm:$0xff] }
 0x1c2   :  { %v3849_v44 = vsel %vm1921_vm1, %v3785_v49, %v3817_v21  ;;  %v4073_v51 = vsel %vm2114_vm3, %v4009_v37, %v3977_v2  ;;  %v2508_v20 = vmul.f32 %v4525_v22, %v6276_v56  ;;  %v2510_v34 = vmul.f32 %v4525_v22, %v6280_v29 }
 0x1c3   :  { %v4171_v30 = vadd.f32 %v3915_v9, %v3595_v61  ;;  %v3148_v53 = vadd.f32 %v3084_v52, %v2699_v0  ;;  %v4109_v57 = vmul.f32 %v4678_v46, %v4073_v51  ;;  %v4172_v5 = vadd.f32 %v3848_v8, %v3596_v13 }
 0x1c4   :  { %v2636_v31 = vmul.f32 %v4530_v24, %v6276_v56  ;;  %v2764_v49 = vmul.f32 %v4536_v26, %v6276_v56  ;;  %v2766_v61 = vmul.f32 %v4536_v26, %v6280_v29  ;;  %v2957_v41 = vmul.f32 %v4554_v38, %v6369_v14  ;;  %v6480_v56 = vld [vmem:[#allocation3 + $0x260] sm:$0xff] }
 0x1c5   :  { %v4235_v45 = vadd.f32 %v4171_v30, %v4041_v48  ;;  %v3597_v21 = vadd.f32 %v3533_v60, %v3148_v53  ;;  %v4236_v62 = vadd.f32 %v4172_v5, %v4108_v11  ;;  %v2959_v8 = vmul.f32 %v4554_v38, %v6376_v17 }
 0x1c6   :  { %v2700_v2 = vadd.f32 %v2636_v31, %v4518_v18  ;;  %v3085_v40 = vmul.f32 %v4563_v42, %v6369_v14  ;;  %v3021_v37 = vadd.f32 %v2957_v41, %v2508_v20  ;;  %v3213_v6 = vmul.f32 %v4574_v47, %v6369_v14 }
 0x1c7   :  { %4300 = vst [vmem:[#allocation8 + $0x228] sm:$0xff] %v4235_v45  ;;  %v4173_v55 = vadd.f32 %v3849_v44, %v3597_v21  ;;  %v3215_v11 = vmul.f32 %v4574_v47, %v6376_v17  ;;  %4301 = vst [vmem:[#allocation8 + $0x230] sm:$0xff] %v4236_v62  ;;  %v3023_v9 = vadd.f32 %v2959_v8, %v2510_v34 }
 0x1c8   :  { %v3149_v0 = vadd.f32 %v3085_v40, %v2700_v2  ;;  %v3406_v52 = vmul.f32 %v4590_v58, %v6480_v56  ;;  %v3408_v60 = vmul.f32 %v4590_v58, %v6482_v16  ;;  %v3277_v13 = vadd.f32 %v3213_v6, %v2764_v49 }
 0x1c9   :  { %v4237_v48 = vadd.f32 %v4173_v55, %v4109_v57  ;;  %v3279_v44 = vadd.f32 %v3215_v11, %v2766_v61  ;;  %v3534_v51 = vmul.f32 %v4602_v4, %v6480_v56  ;;  %v3662_v20 = vmul.f32 %v4618_v15, %v6480_v56 }
 0x1ca   :  { %v3470_v30 = vadd.f32 %v3406_v52, %v3021_v37  ;;  %v3472_v53 = vadd.f32 %v3408_v60, %v3023_v9  ;;  %v3664_v5 = vmul.f32 %v4618_v15, %v6482_v16  ;;  %v2509_v31 = vmul.f32 %v4527_v23, %v6308_v63 }
 0x1cb   :  { %4302 = vst [vmem:[#allocation8 + $0x238] sm:$0xff] %v4237_v48  ;;  %v3598_v34 = vadd.f32 %v3534_v51, %v3149_v0  ;;  %v2511_v57 = vmul.f32 %v4527_v23, %v6310_v35  ;;  %v2637_v49 = vmul.f32 %v4533_v25, %v6308_v63  ;;  %v3726_v45 = vadd.f32 %v3662_v20, %v3277_v13  ;;  %v6516_v0 = vld [vmem:[#allocation3 + $0x268] sm:$0xff]  ;;  %v6524_v13 = vld [vmem:[#allocation3 + $0x278] sm:$0xff] }
 0x1cc   :  { %v3728_v21 = vadd.f32 %v3664_v5, %v3279_v44  ;;  %v3786_v61 = vrot.slane %v3470_v30, 7  ;;  %v3818_v41 = vrot.slane %v3472_v53, 7  ;;  %v2765_v2 = vmul.f32 %v4539_v27, %v6308_v63 }
 0x1cd   :  { %v2701_v62 = vadd.f32 %v2637_v49, %v4521_v19  ;;  %v2767_v8 = vmul.f32 %v4539_v27, %v6310_v35  ;;  %v2958_v40 = vmul.f32 %v4556_v39, %v6412_v33  ;;  %v3978_v37 = vrot.slane %v3726_v45, 1 }
 0x1ce   :  { %v3882_v55 = vsel %vm1921_vm1, %v3818_v41, %v3786_v61  ;;  %v4010_v6 = vrot.slane %v3728_v21, 1  ;;  %v2960_v11 = vmul.f32 %v4556_v39, %v6420_v36  ;;  %v3086_v63 = vmul.f32 %v4566_v43, %v6412_v33 }
 0x1cf   :  { %v3918_v9 = vmul.f32 %v4508_v10, %v3882_v55  ;;  %v3022_v52 = vadd.f32 %v2958_v40, %v2509_v31  ;;  %v3214_v60 = vmul.f32 %v4580_v50, %v6412_v33  ;;  %v3216_v51 = vmul.f32 %v4580_v50, %v6420_v36 }
 0x1d0   :  { %v4042_v48 = vsel %vm2114_vm3, %v3978_v37, %v4010_v6  ;;  %v3024_v44 = vadd.f32 %v2960_v11, %v2511_v57  ;;  %v3407_v30 = vmul.f32 %v4592_v59, %v6516_v0  ;;  %v3150_v20 = vadd.f32 %v3086_v63, %v2701_v62 }
 0x1d1   :  { %v4174_v53 = vadd.f32 %v3918_v9, %v3598_v34  ;;  %v3278_v5 = vadd.f32 %v3214_v60, %v2765_v2  ;;  %v3409_v31 = vmul.f32 %v4592_v59, %v6524_v13  ;;  %v3280_v49 = vadd.f32 %v3216_v51, %v2767_v8 }
 0x1d2   :  { %v3471_v45 = vadd.f32 %v3407_v30, %v3022_v52  ;;  %v3535_v21 = vmul.f32 %v4611_v12, %v6516_v0  ;;  %v3663_v57 = vmul.f32 %v4629_v7, %v6516_v0  ;;  %v3665_v11 = vmul.f32 %v4629_v7, %v6524_v13 }
 0x1d3   :  { %v4238_v40 = vadd.f32 %v4174_v53, %v4042_v48  ;;  %v3473_v55 = vadd.f32 %v3409_v31, %v3024_v44  ;;  %v2638_v34 = vmul.f32 %v4530_v24, %v6280_v29  ;;  %v3087_v8 = vmul.f32 %v4563_v42, %v6376_v17 }
 0x1d4   :  { %v3599_v62 = vadd.f32 %v3535_v21, %v3150_v20  ;;  %v3727_v2 = vadd.f32 %v3663_v57, %v3278_v5  ;;  %v3787_v9 = vrot.slane %v3471_v45, 7  ;;  %v3729_v52 = vadd.f32 %v3665_v11, %v3280_v49 }
 0x1d5   :  { %4303 = vst [vmem:[#allocation8 + $0x240] sm:$0xff] %v4238_v40  ;;  %v3819_v63 = vrot.slane %v3473_v55, 7  ;;  %v2702_v60 = vadd.f32 %v2638_v34, %v4518_v18  ;;  %v3536_v48 = vmul.f32 %v4602_v4, %v6482_v16  ;;  %v3850_v51 = vsel %vm1921_vm1, %v3786_v61, %v3818_v41 }
 0x1d6   :  { %v3979_v44 = vrot.slane %v3727_v2, 1  ;;  %v4074_v29 = vsel %vm2114_vm3, %v4010_v6, %v3978_v37  ;;  %v2639_v30 = vmul.f32 %v4533_v25, %v6310_v35  ;;  %v4011_v20 = vrot.slane %v3729_v52, 1 }
 0x1d7   :  { %v3883_v53 = vsel %vm1921_vm1, %v3819_v63, %v3787_v9  ;;  %v3151_v5 = vadd.f32 %v3087_v8, %v2702_v60  ;;  %v4112_v31 = vmul.f32 %v4678_v46, %v4074_v29  ;;  %v3088_v61 = vmul.f32 %v4566_v43, %v6420_v36 }
 0x1d8   :  { %v3919_v49 = vmul.f32 %v4508_v10, %v3883_v53  ;;  %v2703_v45 = vadd.f32 %v2639_v30, %v4521_v19  ;;  %v3537_v41 = vmul.f32 %v4611_v12, %v6524_v13  ;;  %v4043_v35 = vsel %vm2114_vm3, %v3979_v44, %v4011_v20  ;;  %v6586_v53 = vld [vmem:[#allocation3 + $0x290] sm:$0xff] }
 0x1d9   :  { %v3600_v37 = vadd.f32 %v3536_v48, %v3151_v5  ;;  %v3851_v6 = vsel %vm1921_vm1, %v3787_v9, %v3819_v63  ;;  %v4075_v21 = vsel %vm2114_vm3, %v4011_v20, %v3979_v44  ;;  %v2512_v11 = vmul.f32 %v4525_v22, %v6369_v14 }
 0x1da   :  { %v4175_v57 = vadd.f32 %v3919_v49, %v3599_v62  ;;  %v3152_v40 = vadd.f32 %v3088_v61, %v2703_v45  ;;  %v4113_v55 = vmul.f32 %v4678_v46, %v4075_v21  ;;  %v2514_v2 = vmul.f32 %v4525_v22, %v6376_v17 }
 0x1db   :  { %v4176_v34 = vadd.f32 %v3850_v51, %v3600_v37  ;;  %v2640_v8 = vmul.f32 %v4530_v24, %v6369_v14  ;;  %v2768_v9 = vmul.f32 %v4536_v26, %v6369_v14  ;;  %v2770_v62 = vmul.f32 %v4536_v26, %v6376_v17  ;;  %v6584_v14 = vld [vmem:[#allocation3 + $0x280] sm:$0xff] }
 0x1dc   :  { %v4239_v52 = vadd.f32 %v4175_v57, %v4043_v35  ;;  %v3601_v63 = vadd.f32 %v3537_v41, %v3152_v40  ;;  %v2961_v60 = vmul.f32 %v4554_v38, %v6480_v56  ;;  %v2963_v51 = vmul.f32 %v4554_v38, %v6482_v16 }
 0x1dd   :  { %v4240_v48 = vadd.f32 %v4176_v34, %v4112_v31  ;;  %v2704_v44 = vadd.f32 %v2640_v8, %v4518_v18  ;;  %v3089_v29 = vmul.f32 %v4563_v42, %v6480_v56  ;;  %v3217_v5 = vmul.f32 %v4574_v47, %v6480_v56 }
 0x1de   :  { %4304 = vst [vmem:[#allocation8 + $0x248] sm:$0xff] %v4239_v52  ;;  %v4177_v30 = vadd.f32 %v3851_v6, %v3601_v63  ;;  %v3025_v20 = vadd.f32 %v2961_v60, %v2512_v11  ;;  %v3219_v31 = vmul.f32 %v4574_v47, %v6482_v16  ;;  %v3027_v49 = vadd.f32 %v2963_v51, %v2514_v2 }
 0x1df   :  { %4305 = vst [vmem:[#allocation8 + $0x250] sm:$0xff] %v4240_v48  ;;  %v3153_v45 = vadd.f32 %v3089_v29, %v2704_v44  ;;  %v3410_v61 = vmul.f32 %v4590_v58, %v6584_v14  ;;  %v3412_v41 = vmul.f32 %v4590_v58, %v6586_v53  ;;  %v3281_v37 = vadd.f32 %v3217_v5, %v2768_v9 }
 0x1e0   :  { %v4241_v35 = vadd.f32 %v4177_v30, %v4113_v55  ;;  %v3283_v6 = vadd.f32 %v3219_v31, %v2770_v62  ;;  %v3538_v21 = vmul.f32 %v4602_v4, %v6584_v14  ;;  %v3666_v11 = vmul.f32 %v4618_v15, %v6584_v14 }
 0x1e1   :  { %v3474_v57 = vadd.f32 %v3410_v61, %v3025_v20  ;;  %v3476_v40 = vadd.f32 %v3412_v41, %v3027_v49  ;;  %v3668_v34 = vmul.f32 %v4618_v15, %v6586_v53  ;;  %v2513_v8 = vmul.f32 %v4527_v23, %v6412_v33 }
 0x1e2   :  { %4306 = vst [vmem:[#allocation8 + $0x258] sm:$0xff] %v4241_v35  ;;  %v3602_v2 = vadd.f32 %v3538_v21, %v3153_v45  ;;  %v2515_v55 = vmul.f32 %v4527_v23, %v6420_v36  ;;  %v2641_v9 = vmul.f32 %v4533_v25, %v6412_v33  ;;  %v3730_v52 = vadd.f32 %v3666_v11, %v3281_v37  ;;  %v6620_v45 = vld [vmem:[#allocation3 + $0x288] sm:$0xff]  ;;  %v6628_v37 = vld [vmem:[#allocation3 + $0x298] sm:$0xff] }
 0x1e3   :  { %v3732_v63 = vadd.f32 %v3668_v34, %v3283_v6  ;;  %v3788_v62 = vrot.slane %v3474_v57, 7  ;;  %v3820_v60 = vrot.slane %v3476_v40, 7  ;;  %v2769_v44 = vmul.f32 %v4539_v27, %v6412_v33 }
 0x1e4   :  { %v2705_v48 = vadd.f32 %v2641_v9, %v4521_v19  ;;  %v2771_v51 = vmul.f32 %v4539_v27, %v6420_v36  ;;  %v2962_v29 = vmul.f32 %v4556_v39, %v6516_v0  ;;  %v3980_v20 = vrot.slane %v3730_v52, 1 }
 0x1e5   :  { %v3884_v30 = vsel %vm1921_vm1, %v3820_v60, %v3788_v62  ;;  %v4012_v5 = vrot.slane %v3732_v63, 1  ;;  %v2964_v31 = vmul.f32 %v4556_v39, %v6524_v13  ;;  %v3090_v33 = vmul.f32 %v4566_v43, %v6516_v0 }
 0x1e6   :  { %v3922_v49 = vmul.f32 %v4508_v10, %v3884_v30  ;;  %v3026_v61 = vadd.f32 %v2962_v29, %v2513_v8  ;;  %v3218_v41 = vmul.f32 %v4580_v50, %v6516_v0  ;;  %v3220_v21 = vmul.f32 %v4580_v50, %v6524_v13 }
 0x1e7   :  { %v4044_v35 = vsel %vm2114_vm3, %v3980_v20, %v4012_v5  ;;  %v3028_v6 = vadd.f32 %v2964_v31, %v2515_v55  ;;  %v3411_v57 = vmul.f32 %v4592_v59, %v6620_v45  ;;  %v3154_v11 = vadd.f32 %v3090_v33, %v2705_v48 }
 0x1e8   :  { %v4178_v40 = vadd.f32 %v3922_v49, %v3602_v2  ;;  %v3282_v34 = vadd.f32 %v3218_v41, %v2769_v44  ;;  %v3413_v8 = vmul.f32 %v4592_v59, %v6628_v37  ;;  %v3284_v9 = vadd.f32 %v3220_v21, %v2771_v51 }
 0x1e9   :  { %v3475_v52 = vadd.f32 %v3411_v57, %v3026_v61  ;;  %v3539_v63 = vmul.f32 %v4611_v12, %v6620_v45  ;;  %v3667_v55 = vmul.f32 %v4629_v7, %v6620_v45  ;;  %v3669_v31 = vmul.f32 %v4629_v7, %v6628_v37 }
 0x1ea   :  { %v4242_v29 = vadd.f32 %v4178_v40, %v4044_v35  ;;  %v3477_v30 = vadd.f32 %v3413_v8, %v3028_v6  ;;  %v2642_v2 = vmul.f32 %v4530_v24, %v6376_v17  ;;  %v3091_v51 = vmul.f32 %v4563_v42, %v6482_v16 }
 0x1eb   :  { %v3603_v48 = vadd.f32 %v3539_v63, %v3154_v11  ;;  %v3731_v44 = vadd.f32 %v3667_v55, %v3282_v34  ;;  %v3789_v49 = vrot.slane %v3475_v52, 7  ;;  %v3733_v61 = vadd.f32 %v3669_v31, %v3284_v9 }
 0x1ec   :  { %4307 = vst [vmem:[#allocation8 + $0x260] sm:$0xff] %v4242_v29  ;;  %v3821_v33 = vrot.slane %v3477_v30, 7  ;;  %v2706_v41 = vadd.f32 %v2642_v2, %v4518_v18  ;;  %v3540_v35 = vmul.f32 %v4602_v4, %v6586_v53  ;;  %v3852_v21 = vsel %vm1921_vm1, %v3788_v62, %v3820_v60 }
 0x1ed   :  { %v3981_v6 = vrot.slane %v3731_v44, 1  ;;  %v4076_v17 = vsel %vm2114_vm3, %v4012_v5, %v3980_v20  ;;  %v2643_v57 = vmul.f32 %v4533_v25, %v6420_v36  ;;  %v4013_v11 = vrot.slane %v3733_v61, 1 }
 0x1ee   :  { %v3885_v40 = vsel %vm1921_vm1, %v3821_v33, %v3789_v49  ;;  %v3155_v34 = vadd.f32 %v3091_v51, %v2706_v41  ;;  %v4116_v8 = vmul.f32 %v4678_v46, %v4076_v17  ;;  %v3092_v62 = vmul.f32 %v4566_v43, %v6524_v13 }
 0x1ef   :  { %v3923_v9 = vmul.f32 %v4508_v10, %v3885_v40  ;;  %v2707_v52 = vadd.f32 %v2643_v57, %v4521_v19  ;;  %v3541_v60 = vmul.f32 %v4611_v12, %v6628_v37  ;;  %v4045_v36 = vsel %vm2114_vm3, %v3981_v6, %v4013_v11  ;;  %v6690_v40 = vld [vmem:[#allocation3 + $0x2b0] sm:$0xff] }
 0x1f0   :  { %v3604_v20 = vadd.f32 %v3540_v35, %v3155_v34  ;;  %v3853_v5 = vsel %vm1921_vm1, %v3789_v49, %v3821_v33  ;;  %v4077_v63 = vsel %vm2114_vm3, %v4013_v11, %v3981_v6  ;;  %v2516_v31 = vmul.f32 %v4525_v22, %v6480_v56 }
 0x1f1   :  { %v4179_v55 = vadd.f32 %v3923_v9, %v3603_v48  ;;  %v3156_v29 = vadd.f32 %v3092_v62, %v2707_v52  ;;  %v4117_v30 = vmul.f32 %v4678_v46, %v4077_v63  ;;  %v2518_v44 = vmul.f32 %v4525_v22, %v6482_v16 }
 0x1f2   :  { %v4180_v2 = vadd.f32 %v3852_v21, %v3604_v20  ;;  %v2644_v51 = vmul.f32 %v4530_v24, %v6480_v56  ;;  %v2772_v49 = vmul.f32 %v4536_v26, %v6480_v56  ;;  %v2774_v48 = vmul.f32 %v4536_v26, %v6482_v16  ;;  %v6688_v56 = vld [vmem:[#allocation3 + $0x2a0] sm:$0xff] }
 0x1f3   :  { %v4243_v61 = vadd.f32 %v4179_v55, %v4045_v36  ;;  %v3605_v33 = vadd.f32 %v3541_v60, %v3156_v29  ;;  %v2965_v41 = vmul.f32 %v4554_v38, %v6584_v14  ;;  %v2967_v21 = vmul.f32 %v4554_v38, %v6586_v53 }
 0x1f4   :  { %v4244_v35 = vadd.f32 %v4180_v2, %v4116_v8  ;;  %v2708_v6 = vadd.f32 %v2644_v51, %v4518_v18  ;;  %v3093_v17 = vmul.f32 %v4563_v42, %v6584_v14  ;;  %v3221_v34 = vmul.f32 %v4574_v47, %v6584_v14 }
 0x1f5   :  { %4308 = vst [vmem:[#allocation8 + $0x268] sm:$0xff] %v4243_v61  ;;  %v4181_v57 = vadd.f32 %v3853_v5, %v3605_v33  ;;  %v3029_v11 = vadd.f32 %v2965_v41, %v2516_v31  ;;  %v3223_v8 = vmul.f32 %v4574_v47, %v6586_v53  ;;  %v3031_v9 = vadd.f32 %v2967_v21, %v2518_v44 }
 0x1f6   :  { %4309 = vst [vmem:[#allocation8 + $0x270] sm:$0xff] %v4244_v35  ;;  %v3157_v52 = vadd.f32 %v3093_v17, %v2708_v6  ;;  %v3414_v62 = vmul.f32 %v4590_v58, %v6688_v56  ;;  %v3416_v60 = vmul.f32 %v4590_v58, %v6690_v40  ;;  %v3285_v20 = vadd.f32 %v3221_v34, %v2772_v49 }
 0x1f7   :  { %v4245_v36 = vadd.f32 %v4181_v57, %v4117_v30  ;;  %v3287_v5 = vadd.f32 %v3223_v8, %v2774_v48  ;;  %v3542_v63 = vmul.f32 %v4602_v4, %v6688_v56  ;;  %v3670_v31 = vmul.f32 %v4618_v15, %v6688_v56 }
 0x1f8   :  { %v3478_v55 = vadd.f32 %v3414_v62, %v3029_v11  ;;  %v3480_v29 = vadd.f32 %v3416_v60, %v3031_v9  ;;  %v3672_v2 = vmul.f32 %v4618_v15, %v6690_v40  ;;  %v2517_v51 = vmul.f32 %v4527_v23, %v6516_v0 }
 0x1f9   :  { %4310 = vst [vmem:[#allocation8 + $0x278] sm:$0xff] %v4245_v36  ;;  %v3606_v44 = vadd.f32 %v3542_v63, %v3157_v52  ;;  %v2519_v30 = vmul.f32 %v4527_v23, %v6524_v13  ;;  %v2645_v49 = vmul.f32 %v4533_v25, %v6516_v0  ;;  %v3734_v61 = vadd.f32 %v3670_v31, %v3285_v20  ;;  %v6724_v52 = vld [vmem:[#allocation3 + $0x2a8] sm:$0xff]  ;;  %v6732_v20 = vld [vmem:[#allocation3 + $0x2b8] sm:$0xff] }
 0x1fa   :  { %v3736_v33 = vadd.f32 %v3672_v2, %v3287_v5  ;;  %v3790_v48 = vrot.slane %v3478_v55, 7  ;;  %v3822_v41 = vrot.slane %v3480_v29, 7  ;;  %v2773_v6 = vmul.f32 %v4539_v27, %v6516_v0 }
 0x1fb   :  { %v2709_v35 = vadd.f32 %v2645_v49, %v4521_v19  ;;  %v2775_v21 = vmul.f32 %v4539_v27, %v6524_v13  ;;  %v2966_v17 = vmul.f32 %v4556_v39, %v6620_v45  ;;  %v3982_v11 = vrot.slane %v3734_v61, 1 }
 0x1fc   :  { %v3886_v57 = vsel %vm1921_vm1, %v3822_v41, %v3790_v48  ;;  %v4014_v34 = vrot.slane %v3736_v33, 1  ;;  %v2968_v8 = vmul.f32 %v4556_v39, %v6628_v37  ;;  %v3094_v0 = vmul.f32 %v4566_v43, %v6620_v45 }
 0x1fd   :  { %v3926_v9 = vmul.f32 %v4508_v10, %v3886_v57  ;;  %v3030_v62 = vadd.f32 %v2966_v17, %v2517_v51  ;;  %v3222_v60 = vmul.f32 %v4580_v50, %v6620_v45  ;;  %v3224_v63 = vmul.f32 %v4580_v50, %v6628_v37 }
 0x1fe   :  { %v4046_v36 = vsel %vm2114_vm3, %v3982_v11, %v4014_v34  ;;  %v3032_v5 = vadd.f32 %v2968_v8, %v2519_v30  ;;  %v3415_v55 = vmul.f32 %v4592_v59, %v6724_v52  ;;  %v3158_v31 = vadd.f32 %v3094_v0, %v2709_v35 }
 0x1ff   :  { %v4182_v29 = vadd.f32 %v3926_v9, %v3606_v44  ;;  %v3286_v2 = vadd.f32 %v3222_v60, %v2773_v6  ;;  %v3417_v51 = vmul.f32 %v4592_v59, %v6732_v20  ;;  %v3288_v49 = vadd.f32 %v3224_v63, %v2775_v21 }
 0x200   :  { %v3479_v61 = vadd.f32 %v3415_v55, %v3030_v62  ;;  %v3543_v33 = vmul.f32 %v4611_v12, %v6724_v52  ;;  %v3671_v30 = vmul.f32 %v4629_v7, %v6724_v52  ;;  %v3673_v8 = vmul.f32 %v4629_v7, %v6732_v20 }
 0x201   :  { %v4246_v17 = vadd.f32 %v4182_v29, %v4046_v36  ;;  %v3481_v57 = vadd.f32 %v3417_v51, %v3032_v5  ;;  %v2646_v44 = vmul.f32 %v4530_v24, %v6482_v16  ;;  %v3095_v21 = vmul.f32 %v4563_v42, %v6586_v53 }
 0x202   :  { %v3607_v35 = vadd.f32 %v3543_v33, %v3158_v31  ;;  %v3735_v6 = vadd.f32 %v3671_v30, %v3286_v2  ;;  %v3791_v9 = vrot.slane %v3479_v61, 7  ;;  %v3737_v62 = vadd.f32 %v3673_v8, %v3288_v49 }
 0x203   :  { %4311 = vst [vmem:[#allocation8 + $0x280] sm:$0xff] %v4246_v17  ;;  %v3823_v0 = vrot.slane %v3481_v57, 7  ;;  %v2710_v60 = vadd.f32 %v2646_v44, %v4518_v18  ;;  %v3544_v36 = vmul.f32 %v4602_v4, %v6690_v40  ;;  %v3854_v63 = vsel %vm1921_vm1, %v3790_v48, %v3822_v41 }
 0x204   :  { %v3983_v5 = vrot.slane %v3735_v6, 1  ;;  %v4078_v16 = vsel %vm2114_vm3, %v4014_v34, %v3982_v11  ;;  %v2647_v55 = vmul.f32 %v4533_v25, %v6524_v13  ;;  %v4015_v31 = vrot.slane %v3737_v62, 1 }
 0x205   :  { %v3887_v29 = vsel %vm1921_vm1, %v3823_v0, %v3791_v9  ;;  %v3159_v2 = vadd.f32 %v3095_v21, %v2710_v60  ;;  %v4120_v51 = vmul.f32 %v4678_v46, %v4078_v16  ;;  %v3096_v48 = vmul.f32 %v4566_v43, %v6628_v37 }
 0x206   :  { %v3927_v49 = vmul.f32 %v4508_v10, %v3887_v29  ;;  %v2711_v61 = vadd.f32 %v2647_v55, %v4521_v19  ;;  %v3545_v41 = vmul.f32 %v4611_v12, %v6732_v20  ;;  %v4047_v13 = vsel %vm2114_vm3, %v3983_v5, %v4015_v31  ;;  %v6794_v29 = vld [vmem:[#allocation3 + $0x2d0] sm:$0xff] }
 0x207   :  { %v3608_v11 = vadd.f32 %v3544_v36, %v3159_v2  ;;  %v3855_v34 = vsel %vm1921_vm1, %v3791_v9, %v3823_v0  ;;  %v4079_v33 = vsel %vm2114_vm3, %v4015_v31, %v3983_v5  ;;  %v2520_v8 = vmul.f32 %v4525_v22, %v6584_v14 }
 0x208   :  { %v4183_v30 = vadd.f32 %v3927_v49, %v3607_v35  ;;  %v3160_v17 = vadd.f32 %v3096_v48, %v2711_v61  ;;  %v4121_v57 = vmul.f32 %v4678_v46, %v4079_v33  ;;  %v2522_v6 = vmul.f32 %v4525_v22, %v6586_v53 }
 0x209   :  { %v4184_v44 = vadd.f32 %v3854_v63, %v3608_v11  ;;  %v2648_v21 = vmul.f32 %v4530_v24, %v6584_v14  ;;  %v2776_v9 = vmul.f32 %v4536_v26, %v6584_v14  ;;  %v2778_v35 = vmul.f32 %v4536_v26, %v6586_v53  ;;  %v6792_v14 = vld [vmem:[#allocation3 + $0x2c0] sm:$0xff] }
 0x20a   :  { %v4247_v62 = vadd.f32 %v4183_v30, %v4047_v13  ;;  %v3609_v0 = vadd.f32 %v3545_v41, %v3160_v17  ;;  %v2969_v60 = vmul.f32 %v4554_v38, %v6688_v56  ;;  %v2971_v63 = vmul.f32 %v4554_v38, %v6690_v40 }
 0x20b   :  { %v4248_v36 = vadd.f32 %v4184_v44, %v4120_v51  ;;  %v2712_v5 = vadd.f32 %v2648_v21, %v4518_v18  ;;  %v3097_v16 = vmul.f32 %v4563_v42, %v6688_v56  ;;  %v3225_v2 = vmul.f32 %v4574_v47, %v6688_v56 }
 0x20c   :  { %4312 = vst [vmem:[#allocation8 + $0x288] sm:$0xff] %v4247_v62  ;;  %v4185_v55 = vadd.f32 %v3855_v34, %v3609_v0  ;;  %v3033_v31 = vadd.f32 %v2969_v60, %v2520_v8  ;;  %v3227_v51 = vmul.f32 %v4574_v47, %v6690_v40  ;;  %v3035_v49 = vadd.f32 %v2971_v63, %v2522_v6 }
 0x20d   :  { %4313 = vst [vmem:[#allocation8 + $0x290] sm:$0xff] %v4248_v36  ;;  %v3161_v61 = vadd.f32 %v3097_v16, %v2712_v5  ;;  %v3418_v48 = vmul.f32 %v4590_v58, %v6792_v14  ;;  %v3420_v41 = vmul.f32 %v4590_v58, %v6794_v29  ;;  %v3289_v11 = vadd.f32 %v3225_v2, %v2776_v9 }
 0x20e   :  { %v4249_v13 = vadd.f32 %v4185_v55, %v4121_v57  ;;  %v3291_v34 = vadd.f32 %v3227_v51, %v2778_v35  ;;  %v3546_v33 = vmul.f32 %v4602_v4, %v6792_v14  ;;  %v3674_v8 = vmul.f32 %v4618_v15, %v6792_v14 }
 0x20f   :  { %v3482_v30 = vadd.f32 %v3418_v48, %v3033_v31  ;;  %v3484_v17 = vadd.f32 %v3420_v41, %v3035_v49  ;;  %v3676_v44 = vmul.f32 %v4618_v15, %v6794_v29  ;;  %v2521_v21 = vmul.f32 %v4527_v23, %v6620_v45 }
 0x210   :  { %4314 = vst [vmem:[#allocation8 + $0x298] sm:$0xff] %v4249_v13  ;;  %v3610_v6 = vadd.f32 %v3546_v33, %v3161_v61  ;;  %v2523_v57 = vmul.f32 %v4527_v23, %v6628_v37  ;;  %v2649_v9 = vmul.f32 %v4533_v25, %v6620_v45  ;;  %v3738_v62 = vadd.f32 %v3674_v8, %v3289_v11  ;;  %v6828_v61 = vld [vmem:[#allocation3 + $0x2c8] sm:$0xff]  ;;  %v6836_v11 = vld [vmem:[#allocation3 + $0x2d8] sm:$0xff] }
 0x211   :  { %v3740_v0 = vadd.f32 %v3676_v44, %v3291_v34  ;;  %v3792_v35 = vrot.slane %v3482_v30, 7  ;;  %v3824_v60 = vrot.slane %v3484_v17, 7  ;;  %v2777_v5 = vmul.f32 %v4539_v27, %v6620_v45 }
 0x212   :  { %v2713_v36 = vadd.f32 %v2649_v9, %v4521_v19  ;;  %v2779_v63 = vmul.f32 %v4539_v27, %v6628_v37  ;;  %v2970_v16 = vmul.f32 %v4556_v39, %v6724_v52  ;;  %v3984_v31 = vrot.slane %v3738_v62, 1 }
 0x213   :  { %v3888_v55 = vsel %vm1921_vm1, %v3824_v60, %v3792_v35  ;;  %v4016_v2 = vrot.slane %v3740_v0, 1  ;;  %v2972_v51 = vmul.f32 %v4556_v39, %v6732_v20  ;;  %v3098_v45 = vmul.f32 %v4566_v43, %v6724_v52 }
 0x214   :  { %v3930_v49 = vmul.f32 %v4508_v10, %v3888_v55  ;;  %v3034_v48 = vadd.f32 %v2970_v16, %v2521_v21  ;;  %v3226_v41 = vmul.f32 %v4580_v50, %v6724_v52  ;;  %v3228_v33 = vmul.f32 %v4580_v50, %v6732_v20 }
 0x215   :  { %v4048_v13 = vsel %vm2114_vm3, %v3984_v31, %v4016_v2  ;;  %v3036_v34 = vadd.f32 %v2972_v51, %v2523_v57  ;;  %v3419_v30 = vmul.f32 %v4592_v59, %v6828_v61  ;;  %v3162_v8 = vadd.f32 %v3098_v45, %v2713_v36 }
 0x216   :  { %v4186_v17 = vadd.f32 %v3930_v49, %v3610_v6  ;;  %v3290_v44 = vadd.f32 %v3226_v41, %v2777_v5  ;;  %v3421_v21 = vmul.f32 %v4592_v59, %v6836_v11  ;;  %v3292_v9 = vadd.f32 %v3228_v33, %v2779_v63 }
 0x217   :  { %v3483_v62 = vadd.f32 %v3419_v30, %v3034_v48  ;;  %v3547_v0 = vmul.f32 %v4611_v12, %v6828_v61  ;;  %v3675_v57 = vmul.f32 %v4629_v7, %v6828_v61  ;;  %v3677_v51 = vmul.f32 %v4629_v7, %v6836_v11 }
 0x218   :  { %v4250_v16 = vadd.f32 %v4186_v17, %v4048_v13  ;;  %v3485_v55 = vadd.f32 %v3421_v21, %v3036_v34  ;;  %v2650_v6 = vmul.f32 %v4530_v24, %v6586_v53  ;;  %v3099_v63 = vmul.f32 %v4563_v42, %v6690_v40 }
 0x219   :  { %v3611_v36 = vadd.f32 %v3547_v0, %v3162_v8  ;;  %v3739_v5 = vadd.f32 %v3675_v57, %v3290_v44  ;;  %v3793_v49 = vrot.slane %v3483_v62, 7  ;;  %v3741_v48 = vadd.f32 %v3677_v51, %v3292_v9 }
 0x21a   :  { %4315 = vst [vmem:[#allocation8 + $0x2a0] sm:$0xff] %v4250_v16  ;;  %v3825_v45 = vrot.slane %v3485_v55, 7  ;;  %v2714_v41 = vadd.f32 %v2650_v6, %v4518_v18  ;;  %v3548_v13 = vmul.f32 %v4602_v4, %v6794_v29  ;;  %v3856_v33 = vsel %vm1921_vm1, %v3792_v35, %v3824_v60 }
 0x21b   :  { %v3985_v34 = vrot.slane %v3739_v5, 1  ;;  %v4080_v53 = vsel %vm2114_vm3, %v4016_v2, %v3984_v31  ;;  %v2651_v30 = vmul.f32 %v4533_v25, %v6628_v37  ;;  %v4017_v8 = vrot.slane %v3741_v48, 1 }
 0x21c   :  { %v3889_v17 = vsel %vm1921_vm1, %v3825_v45, %v3793_v49  ;;  %v3163_v44 = vadd.f32 %v3099_v63, %v2714_v41  ;;  %v4124_v21 = vmul.f32 %v4678_v46, %v4080_v53  ;;  %v3100_v35 = vmul.f32 %v4566_v43, %v6732_v20 }
 0x21d   :  { %v3931_v9 = vmul.f32 %v4508_v10, %v3889_v17  ;;  %v2715_v62 = vadd.f32 %v2651_v30, %v4521_v19  ;;  %v3549_v60 = vmul.f32 %v4611_v12, %v6836_v11  ;;  %v4049_v37 = vsel %vm2114_vm3, %v3985_v34, %v4017_v8  ;;  %v6898_v17 = vld [vmem:[#allocation3 + $0x2f0] sm:$0xff] }
 0x21e   :  { %v3612_v31 = vadd.f32 %v3548_v13, %v3163_v44  ;;  %v3857_v2 = vsel %vm1921_vm1, %v3793_v49, %v3825_v45  ;;  %v4081_v0 = vsel %vm2114_vm3, %v4017_v8, %v3985_v34  ;;  %v2524_v51 = vmul.f32 %v4525_v22, %v6688_v56 }
 0x21f   :  { %v4187_v57 = vadd.f32 %v3931_v9, %v3611_v36  ;;  %v3164_v16 = vadd.f32 %v3100_v35, %v2715_v62  ;;  %v4125_v55 = vmul.f32 %v4678_v46, %v4081_v0  ;;  %v2526_v5 = vmul.f32 %v4525_v22, %v6690_v40 }
 0x220   :  { %v4188_v6 = vadd.f32 %v3856_v33, %v3612_v31  ;;  %v2652_v63 = vmul.f32 %v4530_v24, %v6688_v56  ;;  %v2780_v49 = vmul.f32 %v4536_v26, %v6688_v56  ;;  %v2782_v36 = vmul.f32 %v4536_v26, %v6690_v40  ;;  %v6896_v56 = vld [vmem:[#allocation3 + $0x2e0] sm:$0xff] }
 0x221   :  { %v4251_v48 = vadd.f32 %v4187_v57, %v4049_v37  ;;  %v3613_v45 = vadd.f32 %v3549_v60, %v3164_v16  ;;  %v2973_v41 = vmul.f32 %v4554_v38, %v6792_v14  ;;  %v2975_v33 = vmul.f32 %v4554_v38, %v6794_v29 }
 0x222   :  { %v4252_v13 = vadd.f32 %v4188_v6, %v4124_v21  ;;  %v2716_v34 = vadd.f32 %v2652_v63, %v4518_v18  ;;  %v3101_v53 = vmul.f32 %v4563_v42, %v6792_v14  ;;  %v3229_v44 = vmul.f32 %v4574_v47, %v6792_v14 }
 0x223   :  { %4316 = vst [vmem:[#allocation8 + $0x2a8] sm:$0xff] %v4251_v48  ;;  %v4189_v30 = vadd.f32 %v3857_v2, %v3613_v45  ;;  %v3037_v8 = vadd.f32 %v2973_v41, %v2524_v51  ;;  %v3231_v21 = vmul.f32 %v4574_v47, %v6794_v29  ;;  %v3039_v9 = vadd.f32 %v2975_v33, %v2526_v5 }
 0x224   :  { %4317 = vst [vmem:[#allocation8 + $0x2b0] sm:$0xff] %v4252_v13  ;;  %v3165_v62 = vadd.f32 %v3101_v53, %v2716_v34  ;;  %v3422_v35 = vmul.f32 %v4590_v58, %v6896_v56  ;;  %v3424_v60 = vmul.f32 %v4590_v58, %v6898_v17  ;;  %v3293_v31 = vadd.f32 %v3229_v44, %v2780_v49 }
 0x225   :  { %v4253_v37 = vadd.f32 %v4189_v30, %v4125_v55  ;;  %v3295_v2 = vadd.f32 %v3231_v21, %v2782_v36  ;;  %v3550_v0 = vmul.f32 %v4602_v4, %v6896_v56  ;;  %v3678_v51 = vmul.f32 %v4618_v15, %v6896_v56 }
 0x226   :  { %v3486_v57 = vadd.f32 %v3422_v35, %v3037_v8  ;;  %v3488_v16 = vadd.f32 %v3424_v60, %v3039_v9  ;;  %v3680_v6 = vmul.f32 %v4618_v15, %v6898_v17  ;;  %v2525_v63 = vmul.f32 %v4527_v23, %v6724_v52 }
 0x227   :  { %4318 = vst [vmem:[#allocation8 + $0x2b8] sm:$0xff] %v4253_v37  ;;  %v3614_v5 = vadd.f32 %v3550_v0, %v3165_v62  ;;  %v2527_v55 = vmul.f32 %v4527_v23, %v6732_v20  ;;  %v2653_v49 = vmul.f32 %v4533_v25, %v6724_v52  ;;  %v3742_v48 = vadd.f32 %v3678_v51, %v3293_v31  ;;  %v6932_v62 = vld [vmem:[#allocation3 + $0x2e8] sm:$0xff]  ;;  %v6940_v31 = vld [vmem:[#allocation3 + $0x2f8] sm:$0xff] }
 0x228   :  { %v3744_v45 = vadd.f32 %v3680_v6, %v3295_v2  ;;  %v3794_v36 = vrot.slane %v3486_v57, 7  ;;  %v3826_v41 = vrot.slane %v3488_v16, 7  ;;  %v2781_v34 = vmul.f32 %v4539_v27, %v6724_v52 }
 0x229   :  { %v2717_v13 = vadd.f32 %v2653_v49, %v4521_v19  ;;  %v2783_v33 = vmul.f32 %v4539_v27, %v6732_v20  ;;  %v2974_v53 = vmul.f32 %v4556_v39, %v6828_v61  ;;  %v3986_v8 = vrot.slane %v3742_v48, 1 }
 0x22a   :  { %v3890_v30 = vsel %vm1921_vm1, %v3826_v41, %v3794_v36  ;;  %v4018_v44 = vrot.slane %v3744_v45, 1  ;;  %v2976_v21 = vmul.f32 %v4556_v39, %v6836_v11  ;;  %v3102_v52 = vmul.f32 %v4566_v43, %v6828_v61 }
 0x22b   :  { %v3934_v9 = vmul.f32 %v4508_v10, %v3890_v30  ;;  %v3038_v35 = vadd.f32 %v2974_v53, %v2525_v63  ;;  %v3230_v60 = vmul.f32 %v4580_v50, %v6828_v61  ;;  %v3232_v0 = vmul.f32 %v4580_v50, %v6836_v11 }
 0x22c   :  { %v4050_v37 = vsel %vm2114_vm3, %v3986_v8, %v4018_v44  ;;  %v3040_v2 = vadd.f32 %v2976_v21, %v2527_v55  ;;  %v3423_v57 = vmul.f32 %v4592_v59, %v6932_v62  ;;  %v3166_v51 = vadd.f32 %v3102_v52, %v2717_v13 }
 0x22d   :  { %v4190_v16 = vadd.f32 %v3934_v9, %v3614_v5  ;;  %v3294_v6 = vadd.f32 %v3230_v60, %v2781_v34  ;;  %v3425_v63 = vmul.f32 %v4592_v59, %v6940_v31  ;;  %v3296_v49 = vadd.f32 %v3232_v0, %v2783_v33 }
 0x22e   :  { %v3487_v48 = vadd.f32 %v3423_v57, %v3038_v35  ;;  %v3551_v45 = vmul.f32 %v4611_v12, %v6932_v62  ;;  %v3679_v55 = vmul.f32 %v4629_v7, %v6932_v62  ;;  %v3681_v21 = vmul.f32 %v4629_v7, %v6940_v31 }
 0x22f   :  { %v4254_v53 = vadd.f32 %v4190_v16, %v4050_v37  ;;  %v3489_v30 = vadd.f32 %v3425_v63, %v3040_v2  ;;  %v2654_v5 = vmul.f32 %v4530_v24, %v6690_v40  ;;  %v3103_v33 = vmul.f32 %v4563_v42, %v6794_v29 }
 0x230   :  { %v3615_v13 = vadd.f32 %v3551_v45, %v3166_v51  ;;  %v3743_v34 = vadd.f32 %v3679_v55, %v3294_v6  ;;  %v3795_v9 = vrot.slane %v3487_v48, 7  ;;  %v3745_v35 = vadd.f32 %v3681_v21, %v3296_v49 }
 0x231   :  { %4319 = vst [vmem:[#allocation8 + $0x2c0] sm:$0xff] %v4254_v53  ;;  %v3827_v52 = vrot.slane %v3489_v30, 7  ;;  %v2718_v60 = vadd.f32 %v2654_v5, %v4518_v18  ;;  %v3552_v37 = vmul.f32 %v4602_v4, %v6898_v17  ;;  %v3858_v0 = vsel %vm1921_vm1, %v3794_v36, %v3826_v41 }
 0x232   :  { %v3987_v2 = vrot.slane %v3743_v34, 1  ;;  %v4082_v40 = vsel %vm2114_vm3, %v4018_v44, %v3986_v8  ;;  %v2655_v57 = vmul.f32 %v4533_v25, %v6732_v20  ;;  %v4019_v51 = vrot.slane %v3745_v35, 1 }
 0x233   :  { %v3891_v16 = vsel %vm1921_vm1, %v3827_v52, %v3795_v9  ;;  %v3167_v6 = vadd.f32 %v3103_v33, %v2718_v60  ;;  %v4128_v63 = vmul.f32 %v4678_v46, %v4082_v40  ;;  %v3104_v36 = vmul.f32 %v4566_v43, %v6836_v11 }
 0x234   :  { %v3935_v49 = vmul.f32 %v4508_v10, %v3891_v16  ;;  %v2719_v48 = vadd.f32 %v2655_v57, %v4521_v19  ;;  %v3553_v41 = vmul.f32 %v4611_v12, %v6940_v31  ;;  %v4051_v20 = vsel %vm2114_vm3, %v3987_v2, %v4019_v51  ;;  %v7002_v16 = vld [vmem:[#allocation3 + $0x310] sm:$0xff] }
 0x235   :  { %v3616_v8 = vadd.f32 %v3552_v37, %v3167_v6  ;;  %v3859_v44 = vsel %vm1921_vm1, %v3795_v9, %v3827_v52  ;;  %v4083_v45 = vsel %vm2114_vm3, %v4019_v51, %v3987_v2  ;;  %v2528_v21 = vmul.f32 %v4525_v22, %v6792_v14 }
 0x236   :  { %v4191_v55 = vadd.f32 %v3935_v49, %v3615_v13  ;;  %v3168_v53 = vadd.f32 %v3104_v36, %v2719_v48  ;;  %v4129_v30 = vmul.f32 %v4678_v46, %v4083_v45  ;;  %v2530_v34 = vmul.f32 %v4525_v22, %v6794_v29 }
 0x237   :  { %v4192_v5 = vadd.f32 %v3858_v0, %v3616_v8  ;;  %v2656_v33 = vmul.f32 %v4530_v24, %v6792_v14  ;;  %v2784_v9 = vmul.f32 %v4536_v26, %v6792_v14  ;;  %v2786_v13 = vmul.f32 %v4536_v26, %v6794_v29  ;;  %v7000_v14 = vld [vmem:[#allocation3 + $0x300] sm:$0xff] }
 0x238   :  { %v4255_v35 = vadd.f32 %v4191_v55, %v4051_v20  ;;  %v3617_v52 = vadd.f32 %v3553_v41, %v3168_v53  ;;  %v2977_v60 = vmul.f32 %v4554_v38, %v6896_v56  ;;  %v2979_v0 = vmul.f32 %v4554_v38, %v6898_v17 }
 0x239   :  { %v4256_v37 = vadd.f32 %v4192_v5, %v4128_v63  ;;  %v2720_v2 = vadd.f32 %v2656_v33, %v4518_v18  ;;  %v3105_v40 = vmul.f32 %v4563_v42, %v6896_v56  ;;  %v3233_v6 = vmul.f32 %v4574_v47, %v6896_v56 }
 0x23a   :  { %4320 = vst [vmem:[#allocation8 + $0x2c8] sm:$0xff] %v4255_v35  ;;  %v4193_v57 = vadd.f32 %v3859_v44, %v3617_v52  ;;  %v3041_v51 = vadd.f32 %v2977_v60, %v2528_v21  ;;  %v3235_v63 = vmul.f32 %v4574_v47, %v6898_v17  ;;  %v3043_v49 = vadd.f32 %v2979_v0, %v2530_v34 }
 0x23b   :  { %4321 = vst [vmem:[#allocation8 + $0x2d0] sm:$0xff] %v4256_v37  ;;  %v3169_v48 = vadd.f32 %v3105_v40, %v2720_v2  ;;  %v3426_v36 = vmul.f32 %v4590_v58, %v7000_v14  ;;  %v3428_v41 = vmul.f32 %v4590_v58, %v7002_v16  ;;  %v3297_v8 = vadd.f32 %v3233_v6, %v2784_v9 }
 0x23c   :  { %v4257_v20 = vadd.f32 %v4193_v57, %v4129_v30  ;;  %v3299_v44 = vadd.f32 %v3235_v63, %v2786_v13  ;;  %v3554_v45 = vmul.f32 %v4602_v4, %v7000_v14  ;;  %v3682_v21 = vmul.f32 %v4618_v15, %v7000_v14 }
 0x23d   :  { %v3490_v55 = vadd.f32 %v3426_v36, %v3041_v51  ;;  %v3492_v53 = vadd.f32 %v3428_v41, %v3043_v49  ;;  %v3684_v5 = vmul.f32 %v4618_v15, %v7002_v16  ;;  %v2529_v33 = vmul.f32 %v4527_v23, %v6828_v61 }
 0x23e   :  { %4322 = vst [vmem:[#allocation8 + $0x2d8] sm:$0xff] %v4257_v20  ;;  %v3618_v34 = vadd.f32 %v3554_v45, %v3169_v48  ;;  %v2531_v30 = vmul.f32 %v4527_v23, %v6836_v11  ;;  %v2657_v9 = vmul.f32 %v4533_v25, %v6828_v61  ;;  %v3746_v35 = vadd.f32 %v3682_v21, %v3297_v8  ;;  %v7036_v48 = vld [vmem:[#allocation3 + $0x308] sm:$0xff]  ;;  %v7044_v8 = vld [vmem:[#allocation3 + $0x318] sm:$0xff] }
 0x23f   :  { %v3748_v52 = vadd.f32 %v3684_v5, %v3299_v44  ;;  %v3796_v13 = vrot.slane %v3490_v55, 7  ;;  %v3828_v60 = vrot.slane %v3492_v53, 7  ;;  %v2785_v2 = vmul.f32 %v4539_v27, %v6828_v61 }
 0x240   :  { %v2721_v37 = vadd.f32 %v2657_v9, %v4521_v19  ;;  %v2787_v0 = vmul.f32 %v4539_v27, %v6836_v11  ;;  %v2978_v40 = vmul.f32 %v4556_v39, %v6932_v62  ;;  %v3988_v51 = vrot.slane %v3746_v35, 1 }
 0x241   :  { %v3892_v57 = vsel %vm1921_vm1, %v3828_v60, %v3796_v13  ;;  %v4020_v6 = vrot.slane %v3748_v52, 1  ;;  %v2980_v63 = vmul.f32 %v4556_v39, %v6940_v31  ;;  %v3106_v61 = vmul.f32 %v4566_v43, %v6932_v62 }
 0x242   :  { %v3938_v49 = vmul.f32 %v4508_v10, %v3892_v57  ;;  %v3042_v36 = vadd.f32 %v2978_v40, %v2529_v33  ;;  %v3234_v41 = vmul.f32 %v4580_v50, %v6932_v62  ;;  %v3236_v45 = vmul.f32 %v4580_v50, %v6940_v31 }
 0x243   :  { %v4052_v20 = vsel %vm2114_vm3, %v3988_v51, %v4020_v6  ;;  %v3044_v44 = vadd.f32 %v2980_v63, %v2531_v30  ;;  %v3427_v55 = vmul.f32 %v4592_v59, %v7036_v48  ;;  %v3170_v21 = vadd.f32 %v3106_v61, %v2721_v37 }
 0x244   :  { %v4194_v53 = vadd.f32 %v3938_v49, %v3618_v34  ;;  %v3298_v5 = vadd.f32 %v3234_v41, %v2785_v2  ;;  %v3429_v33 = vmul.f32 %v4592_v59, %v7044_v8  ;;  %v3300_v9 = vadd.f32 %v3236_v45, %v2787_v0 }
 0x245   :  { %v3491_v35 = vadd.f32 %v3427_v55, %v3042_v36  ;;  %v3555_v52 = vmul.f32 %v4611_v12, %v7036_v48  ;;  %v3683_v30 = vmul.f32 %v4629_v7, %v7036_v48  ;;  %v3685_v63 = vmul.f32 %v4629_v7, %v7044_v8 }
 0x246   :  { %v4258_v40 = vadd.f32 %v4194_v53, %v4052_v20  ;;  %v3493_v57 = vadd.f32 %v3429_v33, %v3044_v44  ;;  %v2658_v34 = vmul.f32 %v4530_v24, %v6794_v29  ;;  %v3107_v0 = vmul.f32 %v4563_v42, %v6898_v17 }
 0x247   :  { %v3619_v37 = vadd.f32 %v3555_v52, %v3170_v21  ;;  %v3747_v2 = vadd.f32 %v3683_v30, %v3298_v5  ;;  %v3797_v49 = vrot.slane %v3491_v35, 7  ;;  %v3749_v36 = vadd.f32 %v3685_v63, %v3300_v9 }
 0x248   :  { %4323 = vst [vmem:[#allocation8 + $0x2e0] sm:$0xff] %v4258_v40  ;;  %v3829_v61 = vrot.slane %v3493_v57, 7  ;;  %v2722_v41 = vadd.f32 %v2658_v34, %v4518_v18  ;;  %v3556_v20 = vmul.f32 %v4602_v4, %v7002_v16  ;;  %v3860_v45 = vsel %vm1921_vm1, %v3796_v13, %v3828_v60 }
 0x249   :  { %v3989_v44 = vrot.slane %v3747_v2, 1  ;;  %v4084_v29 = vsel %vm2114_vm3, %v4020_v6, %v3988_v51  ;;  %v2659_v55 = vmul.f32 %v4533_v25, %v6836_v11  ;;  %v4021_v21 = vrot.slane %v3749_v36, 1 }
 0x24a   :  { %v3893_v53 = vsel %vm1921_vm1, %v3829_v61, %v3797_v49  ;;  %v3171_v5 = vadd.f32 %v3107_v0, %v2722_v41  ;;  %v4132_v33 = vmul.f32 %v4678_v46, %v4084_v29  ;;  %v3108_v13 = vmul.f32 %v4566_v43, %v6940_v31 }
 0x24b   :  { %v3939_v9 = vmul.f32 %v4508_v10, %v3893_v53  ;;  %v2723_v35 = vadd.f32 %v2659_v55, %v4521_v19  ;;  %v3557_v60 = vmul.f32 %v4611_v12, %v7044_v8  ;;  %v4053_v11 = vsel %vm2114_vm3, %v3989_v44, %v4021_v21  ;;  %v7106_v53 = vld [vmem:[#allocation3 + $0x330] sm:$0xff] }
 0x24c   :  { %v3620_v51 = vadd.f32 %v3556_v20, %v3171_v5  ;;  %v3861_v6 = vsel %vm1921_vm1, %v3797_v49, %v3829_v61  ;;  %v4085_v52 = vsel %vm2114_vm3, %v4021_v21, %v3989_v44  ;;  %v2532_v63 = vmul.f32 %v4525_v22, %v6896_v56 }
 0x24d   :  { %v4195_v30 = vadd.f32 %v3939_v9, %v3619_v37  ;;  %v3172_v40 = vadd.f32 %v3108_v13, %v2723_v35  ;;  %v4133_v57 = vmul.f32 %v4678_v46, %v4085_v52  ;;  %v2534_v2 = vmul.f32 %v4525_v22, %v6898_v17 }
 0x24e   :  { %v4196_v34 = vadd.f32 %v3860_v45, %v3620_v51  ;;  %v2660_v0 = vmul.f32 %v4530_v24, %v6896_v56  ;;  %v2788_v49 = vmul.f32 %v4536_v26, %v6896_v56  ;;  %v2790_v37 = vmul.f32 %v4536_v26, %v6898_v17  ;;  %v7104_v56 = vld [vmem:[#allocation3 + $0x320] sm:$0xff] }
 0x24f   :  { %v4259_v36 = vadd.f32 %v4195_v30, %v4053_v11  ;;  %v3621_v61 = vadd.f32 %v3557_v60, %v3172_v40  ;;  %v2981_v41 = vmul.f32 %v4554_v38, %v7000_v14  ;;  %v2983_v45 = vmul.f32 %v4554_v38, %v7002_v16 }
 0x250   :  { %v4260_v20 = vadd.f32 %v4196_v34, %v4132_v33  ;;  %v2724_v44 = vadd.f32 %v2660_v0, %v4518_v18  ;;  %v3109_v29 = vmul.f32 %v4563_v42, %v7000_v14  ;;  %v3237_v5 = vmul.f32 %v4574_v47, %v7000_v14 }
 0x251   :  { %4324 = vst [vmem:[#allocation8 + $0x2e8] sm:$0xff] %v4259_v36  ;;  %v4197_v55 = vadd.f32 %v3861_v6, %v3621_v61  ;;  %v3045_v21 = vadd.f32 %v2981_v41, %v2532_v63  ;;  %v3239_v33 = vmul.f32 %v4574_v47, %v7002_v16  ;;  %v3047_v9 = vadd.f32 %v2983_v45, %v2534_v2 }
 0x252   :  { %4325 = vst [vmem:[#allocation8 + $0x2f0] sm:$0xff] %v4260_v20  ;;  %v3173_v35 = vadd.f32 %v3109_v29, %v2724_v44  ;;  %v3430_v13 = vmul.f32 %v4590_v58, %v7104_v56  ;;  %v3432_v60 = vmul.f32 %v4590_v58, %v7106_v53  ;;  %v3301_v51 = vadd.f32 %v3237_v5, %v2788_v49 }
 0x253   :  { %v4261_v11 = vadd.f32 %v4197_v55, %v4133_v57  ;;  %v3303_v6 = vadd.f32 %v3239_v33, %v2790_v37  ;;  %v3558_v52 = vmul.f32 %v4602_v4, %v7104_v56  ;;  %v3686_v63 = vmul.f32 %v4618_v15, %v7104_v56 }
 0x254   :  { %v3494_v30 = vadd.f32 %v3430_v13, %v3045_v21  ;;  %v3496_v40 = vadd.f32 %v3432_v60, %v3047_v9  ;;  %v3688_v34 = vmul.f32 %v4618_v15, %v7106_v53  ;;  %v2533_v0 = vmul.f32 %v4527_v23, %v6932_v62 }
 0x255   :  { %4326 = vst [vmem:[#allocation8 + $0x2f8] sm:$0xff] %v4261_v11  ;;  %v3622_v2 = vadd.f32 %v3558_v52, %v3173_v35  ;;  %v2535_v57 = vmul.f32 %v4527_v23, %v6940_v31  ;;  %v2661_v49 = vmul.f32 %v4533_v25, %v6932_v62  ;;  %v3750_v36 = vadd.f32 %v3686_v63, %v3301_v51  ;;  %v7140_v35 = vld [vmem:[#allocation3 + $0x328] sm:$0xff]  ;;  %v7148_v51 = vld [vmem:[#allocation3 + $0x338] sm:$0xff] }
 0x256   :  { %v3752_v61 = vadd.f32 %v3688_v34, %v3303_v6  ;;  %v3798_v37 = vrot.slane %v3494_v30, 7  ;;  %v3830_v41 = vrot.slane %v3496_v40, 7  ;;  %v2789_v44 = vmul.f32 %v4539_v27, %v6932_v62 }
 0x257   :  { %v2725_v20 = vadd.f32 %v2661_v49, %v4521_v19  ;;  %v2791_v45 = vmul.f32 %v4539_v27, %v6940_v31  ;;  %v2982_v29 = vmul.f32 %v4556_v39, %v7036_v48  ;;  %v3990_v21 = vrot.slane %v3750_v36, 1 }
 0x258   :  { %v3894_v55 = vsel %vm1921_vm1, %v3830_v41, %v3798_v37  ;;  %v4022_v5 = vrot.slane %v3752_v61, 1  ;;  %v2984_v33 = vmul.f32 %v4556_v39, %v7044_v8  ;;  %v3110_v62 = vmul.f32 %v4566_v43, %v7036_v48 }
 0x259   :  { %v3942_v9 = vmul.f32 %v4508_v10, %v3894_v55  ;;  %v3046_v13 = vadd.f32 %v2982_v29, %v2533_v0  ;;  %v3238_v60 = vmul.f32 %v4580_v50, %v7036_v48  ;;  %v3240_v52 = vmul.f32 %v4580_v50, %v7044_v8 }
 0x25a   :  { %v4054_v11 = vsel %vm2114_vm3, %v3990_v21, %v4022_v5  ;;  %v3048_v6 = vadd.f32 %v2984_v33, %v2535_v57  ;;  %v3431_v30 = vmul.f32 %v4592_v59, %v7140_v35  ;;  %v3174_v63 = vadd.f32 %v3110_v62, %v2725_v20 }
 0x25b   :  { %v4198_v40 = vadd.f32 %v3942_v9, %v3622_v2  ;;  %v3302_v34 = vadd.f32 %v3238_v60, %v2789_v44  ;;  %v3433_v0 = vmul.f32 %v4592_v59, %v7148_v51  ;;  %v3304_v49 = vadd.f32 %v3240_v52, %v2791_v45 }
 0x25c   :  { %v3495_v36 = vadd.f32 %v3431_v30, %v3046_v13  ;;  %v3559_v61 = vmul.f32 %v4611_v12, %v7140_v35  ;;  %v3687_v57 = vmul.f32 %v4629_v7, %v7140_v35  ;;  %v3689_v33 = vmul.f32 %v4629_v7, %v7148_v51 }
 0x25d   :  { %v4262_v29 = vadd.f32 %v4198_v40, %v4054_v11  ;;  %v3497_v55 = vadd.f32 %v3433_v0, %v3048_v6  ;;  %v2662_v2 = vmul.f32 %v4530_v24, %v6898_v17  ;;  %v3111_v45 = vmul.f32 %v4563_v42, %v7002_v16 }
 0x25e   :  { %v3623_v20 = vadd.f32 %v3559_v61, %v3174_v63  ;;  %v3751_v44 = vadd.f32 %v3687_v57, %v3302_v34  ;;  %v3799_v9 = vrot.slane %v3495_v36, 7  ;;  %v3753_v13 = vadd.f32 %v3689_v33, %v3304_v49 }
 0x25f   :  { %4327 = vst [vmem:[#allocation8 + $0x300] sm:$0xff] %v4262_v29  ;;  %v3831_v62 = vrot.slane %v3497_v55, 7  ;;  %v2726_v60 = vadd.f32 %v2662_v2, %v4518_v18  ;;  %v3560_v11 = vmul.f32 %v4602_v4, %v7106_v53  ;;  %v3862_v52 = vsel %vm1921_vm1, %v3798_v37, %v3830_v41 }
 0x260   :  { %v3991_v6 = vrot.slane %v3751_v44, 1  ;;  %v4086_v17 = vsel %vm2114_vm3, %v4022_v5, %v3990_v21  ;;  %v2663_v30 = vmul.f32 %v4533_v25, %v6940_v31  ;;  %v4023_v63 = vrot.slane %v3753_v13, 1 }
 0x261   :  { %v3895_v40 = vsel %vm1921_vm1, %v3831_v62, %v3799_v9  ;;  %v3175_v34 = vadd.f32 %v3111_v45, %v2726_v60  ;;  %v4136_v0 = vmul.f32 %v4678_v46, %v4086_v17  ;;  %v3112_v37 = vmul.f32 %v4566_v43, %v7044_v8 }
 0x262   :  { %v3943_v49 = vmul.f32 %v4508_v10, %v3895_v40  ;;  %v2727_v36 = vadd.f32 %v2663_v30, %v4521_v19  ;;  %v3561_v41 = vmul.f32 %v4611_v12, %v7148_v51  ;;  %v4055_v31 = vsel %vm2114_vm3, %v3991_v6, %v4023_v63  ;;  %v7210_v40 = vld [vmem:[#allocation3 + $0x350] sm:$0xff] }
 0x263   :  { %v3624_v21 = vadd.f32 %v3560_v11, %v3175_v34  ;;  %v3863_v5 = vsel %vm1921_vm1, %v3799_v9, %v3831_v62  ;;  %v4087_v61 = vsel %vm2114_vm3, %v4023_v63, %v3991_v6  ;;  %v2536_v33 = vmul.f32 %v4525_v22, %v7000_v14 }
 0x264   :  { %v4199_v57 = vadd.f32 %v3943_v49, %v3623_v20  ;;  %v3176_v29 = vadd.f32 %v3112_v37, %v2727_v36  ;;  %v4137_v55 = vmul.f32 %v4678_v46, %v4087_v61  ;;  %v2538_v44 = vmul.f32 %v4525_v22, %v7002_v16 }
 0x265   :  { %v4200_v2 = vadd.f32 %v3862_v52, %v3624_v21  ;;  %v2664_v45 = vmul.f32 %v4530_v24, %v7000_v14  ;;  %v2792_v9 = vmul.f32 %v4536_v26, %v7000_v14  ;;  %v2794_v20 = vmul.f32 %v4536_v26, %v7002_v16  ;;  %v7208_v14 = vld [vmem:[#allocation3 + $0x340] sm:$0xff] }
 0x266   :  { %v4263_v13 = vadd.f32 %v4199_v57, %v4055_v31  ;;  %v3625_v62 = vadd.f32 %v3561_v41, %v3176_v29  ;;  %v2985_v60 = vmul.f32 %v4554_v38, %v7104_v56  ;;  %v2987_v52 = vmul.f32 %v4554_v38, %v7106_v53 }
 0x267   :  { %v4264_v11 = vadd.f32 %v4200_v2, %v4136_v0  ;;  %v2728_v6 = vadd.f32 %v2664_v45, %v4518_v18  ;;  %v3113_v17 = vmul.f32 %v4563_v42, %v7104_v56  ;;  %v3241_v34 = vmul.f32 %v4574_v47, %v7104_v56 }
 0x268   :  { %4328 = vst [vmem:[#allocation8 + $0x308] sm:$0xff] %v4263_v13  ;;  %v4201_v30 = vadd.f32 %v3863_v5, %v3625_v62  ;;  %v3049_v63 = vadd.f32 %v2985_v60, %v2536_v33  ;;  %v3243_v0 = vmul.f32 %v4574_v47, %v7106_v53  ;;  %v3051_v49 = vadd.f32 %v2987_v52, %v2538_v44 }
 0x269   :  { %4329 = vst [vmem:[#allocation8 + $0x310] sm:$0xff] %v4264_v11  ;;  %v3177_v36 = vadd.f32 %v3113_v17, %v2728_v6  ;;  %v3434_v37 = vmul.f32 %v4590_v58, %v7208_v14  ;;  %v3436_v41 = vmul.f32 %v4590_v58, %v7210_v40  ;;  %v3305_v21 = vadd.f32 %v3241_v34, %v2792_v9 }
 0x26a   :  { %v4265_v31 = vadd.f32 %v4201_v30, %v4137_v55  ;;  %v3307_v5 = vadd.f32 %v3243_v0, %v2794_v20  ;;  %v3562_v61 = vmul.f32 %v4602_v4, %v7208_v14  ;;  %v3690_v33 = vmul.f32 %v4618_v15, %v7208_v14 }
 0x26b   :  { %v3498_v57 = vadd.f32 %v3434_v37, %v3049_v63  ;;  %v3500_v29 = vadd.f32 %v3436_v41, %v3051_v49  ;;  %v3692_v2 = vmul.f32 %v4618_v15, %v7210_v40  ;;  %v2537_v45 = vmul.f32 %v4527_v23, %v7036_v48 }
 0x26c   :  { %4330 = vst [vmem:[#allocation8 + $0x318] sm:$0xff] %v4265_v31  ;;  %v3626_v44 = vadd.f32 %v3562_v61, %v3177_v36  ;;  %v2539_v55 = vmul.f32 %v4527_v23, %v7044_v8  ;;  %v2665_v9 = vmul.f32 %v4533_v25, %v7036_v48  ;;  %v3754_v13 = vadd.f32 %v3690_v33, %v3305_v21  ;;  %v7244_v36 = vld [vmem:[#allocation3 + $0x348] sm:$0xff]  ;;  %v7252_v21 = vld [vmem:[#allocation3 + $0x358] sm:$0xff] }
 0x26d   :  { %v3756_v62 = vadd.f32 %v3692_v2, %v3307_v5  ;;  %v3800_v20 = vrot.slane %v3498_v57, 7  ;;  %v3832_v60 = vrot.slane %v3500_v29, 7  ;;  %v2793_v6 = vmul.f32 %v4539_v27, %v7036_v48 }
 0x26e   :  { %v2729_v11 = vadd.f32 %v2665_v9, %v4521_v19  ;;  %v2795_v52 = vmul.f32 %v4539_v27, %v7044_v8  ;;  %v2986_v17 = vmul.f32 %v4556_v39, %v7140_v35  ;;  %v3992_v63 = vrot.slane %v3754_v13, 1 }
 0x26f   :  { %v3896_v30 = vsel %vm1921_vm1, %v3832_v60, %v3800_v20  ;;  %v4024_v34 = vrot.slane %v3756_v62, 1  ;;  %v2988_v0 = vmul.f32 %v4556_v39, %v7148_v51  ;;  %v3114_v48 = vmul.f32 %v4566_v43, %v7140_v35 }
 0x270   :  { %v3946_v49 = vmul.f32 %v4508_v10, %v3896_v30  ;;  %v3050_v37 = vadd.f32 %v2986_v17, %v2537_v45  ;;  %v3242_v41 = vmul.f32 %v4580_v50, %v7140_v35  ;;  %v3244_v61 = vmul.f32 %v4580_v50, %v7148_v51 }
 0x271   :  { %v4056_v31 = vsel %vm2114_vm3, %v3992_v63, %v4024_v34  ;;  %v3052_v5 = vadd.f32 %v2988_v0, %v2539_v55  ;;  %v3435_v57 = vmul.f32 %v4592_v59, %v7244_v36  ;;  %v3178_v33 = vadd.f32 %v3114_v48, %v2729_v11 }
 0x272   :  { %v4202_v29 = vadd.f32 %v3946_v49, %v3626_v44  ;;  %v3306_v2 = vadd.f32 %v3242_v41, %v2793_v6  ;;  %v3437_v45 = vmul.f32 %v4592_v59, %v7252_v21  ;;  %v3308_v9 = vadd.f32 %v3244_v61, %v2795_v52 }
 0x273   :  { %v3499_v13 = vadd.f32 %v3435_v57, %v3050_v37  ;;  %v3563_v62 = vmul.f32 %v4611_v12, %v7244_v36  ;;  %v3691_v55 = vmul.f32 %v4629_v7, %v7244_v36  ;;  %v3693_v0 = vmul.f32 %v4629_v7, %v7252_v21 }
 0x274   :  { %v4266_v17 = vadd.f32 %v4202_v29, %v4056_v31  ;;  %v3501_v30 = vadd.f32 %v3437_v45, %v3052_v5  ;;  %v2666_v44 = vmul.f32 %v4530_v24, %v7002_v16  ;;  %v3115_v52 = vmul.f32 %v4563_v42, %v7106_v53 }
 0x275   :  { %v3627_v11 = vadd.f32 %v3563_v62, %v3178_v33  ;;  %v3755_v6 = vadd.f32 %v3691_v55, %v3306_v2  ;;  %v3801_v49 = vrot.slane %v3499_v13, 7  ;;  %v3757_v37 = vadd.f32 %v3693_v0, %v3308_v9 }
 0x276   :  { %4331 = vst [vmem:[#allocation8 + $0x320] sm:$0xff] %v4266_v17  ;;  %v3833_v48 = vrot.slane %v3501_v30, 7  ;;  %v2730_v41 = vadd.f32 %v2666_v44, %v4518_v18  ;;  %v3564_v31 = vmul.f32 %v4602_v4, %v7210_v40  ;;  %v3864_v61 = vsel %vm1921_vm1, %v3800_v20, %v3832_v60 }
 0x277   :  { %v3993_v5 = vrot.slane %v3755_v6, 1  ;;  %v4088_v16 = vsel %vm2114_vm3, %v4024_v34, %v3992_v63  ;;  %v2667_v57 = vmul.f32 %v4533_v25, %v7044_v8  ;;  %v4025_v33 = vrot.slane %v3757_v37, 1 }
 0x278   :  { %v3897_v29 = vsel %vm1921_vm1, %v3833_v48, %v3801_v49  ;;  %v3179_v2 = vadd.f32 %v3115_v52, %v2730_v41  ;;  %v4140_v45 = vmul.f32 %v4678_v46, %v4088_v16  ;;  %v3116_v20 = vmul.f32 %v4566_v43, %v7148_v51 }
 0x279   :  { %v3947_v9 = vmul.f32 %v4508_v10, %v3897_v29  ;;  %v2731_v13 = vadd.f32 %v2667_v57, %v4521_v19  ;;  %v3565_v60 = vmul.f32 %v4611_v12, %v7252_v21  ;;  %v4057_v8 = vsel %vm2114_vm3, %v3993_v5, %v4025_v33  ;;  %v7314_v29 = vld [vmem:[#allocation3 + $0x370] sm:$0xff] }
 0x27a   :  { %v3628_v63 = vadd.f32 %v3564_v31, %v3179_v2  ;;  %v3865_v34 = vsel %vm1921_vm1, %v3801_v49, %v3833_v48  ;;  %v4089_v62 = vsel %vm2114_vm3, %v4025_v33, %v3993_v5  ;;  %v2540_v0 = vmul.f32 %v4525_v22, %v7104_v56 }
 0x27b   :  { %v4203_v55 = vadd.f32 %v3947_v9, %v3627_v11  ;;  %v3180_v17 = vadd.f32 %v3116_v20, %v2731_v13  ;;  %v4141_v30 = vmul.f32 %v4678_v46, %v4089_v62  ;;  %v2542_v6 = vmul.f32 %v4525_v22, %v7106_v53 }
 0x27c   :  { %v4204_v44 = vadd.f32 %v3864_v61, %v3628_v63  ;;  %v2668_v52 = vmul.f32 %v4530_v24, %v7104_v56  ;;  %v2796_v49 = vmul.f32 %v4536_v26, %v7104_v56  ;;  %v2798_v11 = vmul.f32 %v4536_v26, %v7106_v53  ;;  %v7312_v56 = vld [vmem:[#allocation3 + $0x360] sm:$0xff] }
 0x27d   :  { %v4267_v37 = vadd.f32 %v4203_v55, %v4057_v8  ;;  %v3629_v48 = vadd.f32 %v3565_v60, %v3180_v17  ;;  %v2989_v41 = vmul.f32 %v4554_v38, %v7208_v14  ;;  %v2991_v61 = vmul.f32 %v4554_v38, %v7210_v40 }
 0x27e   :  { %v4268_v31 = vadd.f32 %v4204_v44, %v4140_v45  ;;  %v2732_v5 = vadd.f32 %v2668_v52, %v4518_v18  ;;  %v3117_v16 = vmul.f32 %v4563_v42, %v7208_v14  ;;  %v3245_v2 = vmul.f32 %v4574_v47, %v7208_v14 }
 0x27f   :  { %4332 = vst [vmem:[#allocation8 + $0x328] sm:$0xff] %v4267_v37  ;;  %v4205_v57 = vadd.f32 %v3865_v34, %v3629_v48  ;;  %v3053_v33 = vadd.f32 %v2989_v41, %v2540_v0  ;;  %v3247_v45 = vmul.f32 %v4574_v47, %v7210_v40  ;;  %v3055_v9 = vadd.f32 %v2991_v61, %v2542_v6 }
 0x280   :  { %4333 = vst [vmem:[#allocation8 + $0x330] sm:$0xff] %v4268_v31  ;;  %v3181_v13 = vadd.f32 %v3117_v16, %v2732_v5  ;;  %v3438_v20 = vmul.f32 %v4590_v58, %v7312_v56  ;;  %v3440_v60 = vmul.f32 %v4590_v58, %v7314_v29  ;;  %v3309_v63 = vadd.f32 %v3245_v2, %v2796_v49 }
 0x281   :  { %v4269_v8 = vadd.f32 %v4205_v57, %v4141_v30  ;;  %v3311_v34 = vadd.f32 %v3247_v45, %v2798_v11  ;;  %v3566_v62 = vmul.f32 %v4602_v4, %v7312_v56  ;;  %v3694_v0 = vmul.f32 %v4618_v15, %v7312_v56 }
 0x282   :  { %v3502_v55 = vadd.f32 %v3438_v20, %v3053_v33  ;;  %v3504_v17 = vadd.f32 %v3440_v60, %v3055_v9  ;;  %v3696_v44 = vmul.f32 %v4618_v15, %v7314_v29  ;;  %v2541_v52 = vmul.f32 %v4527_v23, %v7140_v35 }
 0x283   :  { %4334 = vst [vmem:[#allocation8 + $0x338] sm:$0xff] %v4269_v8  ;;  %v3630_v6 = vadd.f32 %v3566_v62, %v3181_v13  ;;  %v2543_v30 = vmul.f32 %v4527_v23, %v7148_v51  ;;  %v2669_v49 = vmul.f32 %v4533_v25, %v7140_v35  ;;  %v3758_v37 = vadd.f32 %v3694_v0, %v3309_v63  ;;  %v7348_v13 = vld [vmem:[#allocation3 + $0x368] sm:$0xff]  ;;  %v7356_v63 = vld [vmem:[#allocation3 + $0x378] sm:$0xff] }
 0x284   :  { %v3760_v48 = vadd.f32 %v3696_v44, %v3311_v34  ;;  %v3802_v11 = vrot.slane %v3502_v55, 7  ;;  %v3834_v41 = vrot.slane %v3504_v17, 7  ;;  %v2797_v5 = vmul.f32 %v4539_v27, %v7140_v35 }
 0x285   :  { %v2733_v31 = vadd.f32 %v2669_v49, %v4521_v19  ;;  %v2799_v61 = vmul.f32 %v4539_v27, %v7148_v51  ;;  %v2990_v16 = vmul.f32 %v4556_v39, %v7244_v36  ;;  %v3994_v33 = vrot.slane %v3758_v37, 1 }
 0x286   :  { %v3898_v57 = vsel %vm1921_vm1, %v3834_v41, %v3802_v11  ;;  %v4026_v2 = vrot.slane %v3760_v48, 1  ;;  %v2992_v45 = vmul.f32 %v4556_v39, %v7252_v21  ;;  %v3118_v35 = vmul.f32 %v4566_v43, %v7244_v36 }
 0x287   :  { %v3950_v9 = vmul.f32 %v4508_v10, %v3898_v57  ;;  %v3054_v20 = vadd.f32 %v2990_v16, %v2541_v52  ;;  %v3246_v60 = vmul.f32 %v4580_v50, %v7244_v36  ;;  %v3248_v62 = vmul.f32 %v4580_v50, %v7252_v21 }
 0x288   :  { %v4058_v8 = vsel %vm2114_vm3, %v3994_v33, %v4026_v2  ;;  %v3056_v34 = vadd.f32 %v2992_v45, %v2543_v30  ;;  %v3439_v55 = vmul.f32 %v4592_v59, %v7348_v13  ;;  %v3182_v0 = vadd.f32 %v3118_v35, %v2733_v31 }
 0x289   :  { %v4206_v17 = vadd.f32 %v3950_v9, %v3630_v6  ;;  %v3310_v44 = vadd.f32 %v3246_v60, %v2797_v5  ;;  %v3441_v52 = vmul.f32 %v4592_v59, %v7356_v63  ;;  %v3312_v49 = vadd.f32 %v3248_v62, %v2799_v61 }
 0x28a   :  { %v3503_v37 = vadd.f32 %v3439_v55, %v3054_v20  ;;  %v3567_v48 = vmul.f32 %v4611_v12, %v7348_v13  ;;  %v3695_v30 = vmul.f32 %v4629_v7, %v7348_v13  ;;  %v3697_v45 = vmul.f32 %v4629_v7, %v7356_v63 }
 0x28b   :  { %v4270_v16 = vadd.f32 %v4206_v17, %v4058_v8  ;;  %v3505_v57 = vadd.f32 %v3441_v52, %v3056_v34  ;;  %v2670_v6 = vmul.f32 %v4530_v24, %v7106_v53  ;;  %v3119_v61 = vmul.f32 %v4563_v42, %v7210_v40 }
 0x28c   :  { %v3631_v31 = vadd.f32 %v3567_v48, %v3182_v0  ;;  %v3759_v5 = vadd.f32 %v3695_v30, %v3310_v44  ;;  %v3803_v9 = vrot.slane %v3503_v37, 7  ;;  %v3761_v20 = vadd.f32 %v3697_v45, %v3312_v49 }
 0x28d   :  { %4335 = vst [vmem:[#allocation8 + $0x340] sm:$0xff] %v4270_v16  ;;  %v3835_v35 = vrot.slane %v3505_v57, 7  ;;  %v2734_v60 = vadd.f32 %v2670_v6, %v4518_v18  ;;  %v3568_v8 = vmul.f32 %v4602_v4, %v7314_v29  ;;  %v3866_v62 = vsel %vm1921_vm1, %v3802_v11, %v3834_v41 }
 0x28e   :  { %v3995_v34 = vrot.slane %v3759_v5, 1  ;;  %v4090_v53 = vsel %vm2114_vm3, %v4026_v2, %v3994_v33  ;;  %v2671_v55 = vmul.f32 %v4533_v25, %v7148_v51  ;;  %v4027_v0 = vrot.slane %v3761_v20, 1 }
 0x28f   :  { %v3899_v17 = vsel %vm1921_vm1, %v3835_v35, %v3803_v9  ;;  %v3183_v44 = vadd.f32 %v3119_v61, %v2734_v60  ;;  %v4144_v52 = vmul.f32 %v4678_v46, %v4090_v53  ;;  %v3120_v11 = vmul.f32 %v4566_v43, %v7252_v21 }
 0x290   :  { %v3951_v49 = vmul.f32 %v4508_v10, %v3899_v17  ;;  %v2735_v37 = vadd.f32 %v2671_v55, %v4521_v19  ;;  %v3569_v41 = vmul.f32 %v4611_v12, %v7356_v63  ;;  %v4059_v51 = vsel %vm2114_vm3, %v3995_v34, %v4027_v0  ;;  %v7418_v17 = vld [vmem:[#allocation3 + $0x390] sm:$0xff] }
 0x291   :  { %v3632_v33 = vadd.f32 %v3568_v8, %v3183_v44  ;;  %v3867_v2 = vsel %vm1921_vm1, %v3803_v9, %v3835_v35  ;;  %v4091_v48 = vsel %vm2114_vm3, %v4027_v0, %v3995_v34  ;;  %v2544_v45 = vmul.f32 %v4525_v22, %v7208_v14 }
 0x292   :  { %v4207_v30 = vadd.f32 %v3951_v49, %v3631_v31  ;;  %v3184_v16 = vadd.f32 %v3120_v11, %v2735_v37  ;;  %v4145_v57 = vmul.f32 %v4678_v46, %v4091_v48  ;;  %v2546_v5 = vmul.f32 %v4525_v22, %v7210_v40 }
 0x293   :  { %v4208_v6 = vadd.f32 %v3866_v62, %v3632_v33  ;;  %v2672_v61 = vmul.f32 %v4530_v24, %v7208_v14  ;;  %v2800_v9 = vmul.f32 %v4536_v26, %v7208_v14  ;;  %v2802_v31 = vmul.f32 %v4536_v26, %v7210_v40  ;;  %v7416_v14 = vld [vmem:[#allocation3 + $0x380] sm:$0xff] }
 0x294   :  { %v4271_v20 = vadd.f32 %v4207_v30, %v4059_v51  ;;  %v3633_v35 = vadd.f32 %v3569_v41, %v3184_v16  ;;  %v2993_v60 = vmul.f32 %v4554_v38, %v7312_v56  ;;  %v2995_v62 = vmul.f32 %v4554_v38, %v7314_v29 }
 0x295   :  { %v4272_v8 = vadd.f32 %v4208_v6, %v4144_v52  ;;  %v2736_v34 = vadd.f32 %v2672_v61, %v4518_v18  ;;  %v3121_v53 = vmul.f32 %v4563_v42, %v7312_v56  ;;  %v3249_v44 = vmul.f32 %v4574_v47, %v7312_v56 }
 0x296   :  { %4336 = vst [vmem:[#allocation8 + $0x348] sm:$0xff] %v4271_v20  ;;  %v4209_v55 = vadd.f32 %v3867_v2, %v3633_v35  ;;  %v3057_v0 = vadd.f32 %v2993_v60, %v2544_v45  ;;  %v3251_v52 = vmul.f32 %v4574_v47, %v7314_v29  ;;  %v3059_v49 = vadd.f32 %v2995_v62, %v2546_v5 }
 0x297   :  { %4337 = vst [vmem:[#allocation8 + $0x350] sm:$0xff] %v4272_v8  ;;  %v3185_v37 = vadd.f32 %v3121_v53, %v2736_v34  ;;  %v3442_v11 = vmul.f32 %v4590_v58, %v7416_v14  ;;  %v3444_v41 = vmul.f32 %v4590_v58, %v7418_v17  ;;  %v3313_v33 = vadd.f32 %v3249_v44, %v2800_v9 }
 0x298   :  { %v4273_v51 = vadd.f32 %v4209_v55, %v4145_v57  ;;  %v3315_v2 = vadd.f32 %v3251_v52, %v2802_v31  ;;  %v3570_v48 = vmul.f32 %v4602_v4, %v7416_v14  ;;  %v3698_v45 = vmul.f32 %v4618_v15, %v7416_v14 }
 0x299   :  { %v3506_v30 = vadd.f32 %v3442_v11, %v3057_v0  ;;  %v3508_v16 = vadd.f32 %v3444_v41, %v3059_v49  ;;  %v3700_v6 = vmul.f32 %v4618_v15, %v7418_v17  ;;  %v2545_v61 = vmul.f32 %v4527_v23, %v7244_v36 }
 0x29a   :  { %4338 = vst [vmem:[#allocation8 + $0x358] sm:$0xff] %v4273_v51  ;;  %v3634_v5 = vadd.f32 %v3570_v48, %v3185_v37  ;;  %v2547_v57 = vmul.f32 %v4527_v23, %v7252_v21  ;;  %v2673_v9 = vmul.f32 %v4533_v25, %v7244_v36  ;;  %v3762_v20 = vadd.f32 %v3698_v45, %v3313_v33  ;;  %v7452_v37 = vld [vmem:[#allocation3 + $0x388] sm:$0xff]  ;;  %v7460_v33 = vld [vmem:[#allocation3 + $0x398] sm:$0xff] }
 0x29b   :  { %v3764_v35 = vadd.f32 %v3700_v6, %v3315_v2  ;;  %v3804_v31 = vrot.slane %v3506_v30, 7  ;;  %v3836_v60 = vrot.slane %v3508_v16, 7  ;;  %v2801_v34 = vmul.f32 %v4539_v27, %v7244_v36 }
 0x29c   :  { %v2737_v8 = vadd.f32 %v2673_v9, %v4521_v19  ;;  %v2803_v62 = vmul.f32 %v4539_v27, %v7252_v21  ;;  %v2994_v53 = vmul.f32 %v4556_v39, %v7348_v13  ;;  %v3996_v0 = vrot.slane %v3762_v20, 1 }
 0x29d   :  { %v3900_v55 = vsel %vm1921_vm1, %v3836_v60, %v3804_v31  ;;  %v4028_v44 = vrot.slane %v3764_v35, 1  ;;  %v2996_v52 = vmul.f32 %v4556_v39, %v7356_v63  ;;  %v3122_v36 = vmul.f32 %v4566_v43, %v7348_v13 }
 0x29e   :  { %v3954_v49 = vmul.f32 %v4508_v10, %v3900_v55  ;;  %v3058_v11 = vadd.f32 %v2994_v53, %v2545_v61  ;;  %v3250_v41 = vmul.f32 %v4580_v50, %v7348_v13  ;;  %v3252_v48 = vmul.f32 %v4580_v50, %v7356_v63 }
 0x29f   :  { %v4060_v51 = vsel %vm2114_vm3, %v3996_v0, %v4028_v44  ;;  %v3060_v2 = vadd.f32 %v2996_v52, %v2547_v57  ;;  %v3443_v30 = vmul.f32 %v4592_v59, %v7452_v37  ;;  %v3186_v45 = vadd.f32 %v3122_v36, %v2737_v8 }
 0x2a0   :  { %v4210_v16 = vadd.f32 %v3954_v49, %v3634_v5  ;;  %v3314_v6 = vadd.f32 %v3250_v41, %v2801_v34  ;;  %v3445_v61 = vmul.f32 %v4592_v59, %v7460_v33  ;;  %v3316_v9 = vadd.f32 %v3252_v48, %v2803_v62 }
 0x2a1   :  { %v3507_v20 = vadd.f32 %v3443_v30, %v3058_v11  ;;  %v3571_v35 = vmul.f32 %v4611_v12, %v7452_v37  ;;  %v3699_v57 = vmul.f32 %v4629_v7, %v7452_v37  ;;  %v3701_v52 = vmul.f32 %v4629_v7, %v7460_v33 }
 0x2a2   :  { %v4274_v53 = vadd.f32 %v4210_v16, %v4060_v51  ;;  %v3509_v55 = vadd.f32 %v3445_v61, %v3060_v2  ;;  %v2674_v5 = vmul.f32 %v4530_v24, %v7210_v40  ;;  %v3123_v62 = vmul.f32 %v4563_v42, %v7314_v29 }
 0x2a3   :  { %v3635_v8 = vadd.f32 %v3571_v35, %v3186_v45  ;;  %v3763_v34 = vadd.f32 %v3699_v57, %v3314_v6  ;;  %v3805_v49 = vrot.slane %v3507_v20, 7  ;;  %v3765_v11 = vadd.f32 %v3701_v52, %v3316_v9 }
 0x2a4   :  { %4339 = vst [vmem:[#allocation8 + $0x360] sm:$0xff] %v4274_v53  ;;  %v3837_v36 = vrot.slane %v3509_v55, 7  ;;  %v2738_v41 = vadd.f32 %v2674_v5, %v4518_v18  ;;  %v3572_v51 = vmul.f32 %v4602_v4, %v7418_v17  ;;  %v3868_v48 = vsel %vm1921_vm1, %v3804_v31, %v3836_v60 }
 0x2a5   :  { %v3997_v2 = vrot.slane %v3763_v34, 1  ;;  %v4092_v40 = vsel %vm2114_vm3, %v4028_v44, %v3996_v0  ;;  %v2675_v30 = vmul.f32 %v4533_v25, %v7252_v21  ;;  %v4029_v45 = vrot.slane %v3765_v11, 1 }
 0x2a6   :  { %v3901_v16 = vsel %vm1921_vm1, %v3837_v36, %v3805_v49  ;;  %v3187_v6 = vadd.f32 %v3123_v62, %v2738_v41  ;;  %v4148_v61 = vmul.f32 %v4678_v46, %v4092_v40  ;;  %v3124_v31 = vmul.f32 %v4566_v43, %v7356_v63 }
 0x2a7   :  { %v3955_v9 = vmul.f32 %v4508_v10, %v3901_v16  ;;  %v2739_v20 = vadd.f32 %v2675_v30, %v4521_v19  ;;  %v3573_v60 = vmul.f32 %v4611_v12, %v7460_v33  ;;  %v4061_v21 = vsel %vm2114_vm3, %v3997_v2, %v4029_v45  ;;  %v7522_v16 = vld [vmem:[#allocation3 + $0x3b0] sm:$0xff] }
 0x2a8   :  { %v3636_v0 = vadd.f32 %v3572_v51, %v3187_v6  ;;  %v3869_v44 = vsel %vm1921_vm1, %v3805_v49, %v3837_v36  ;;  %v4093_v35 = vsel %vm2114_vm3, %v4029_v45, %v3997_v2  ;;  %v2548_v52 = vmul.f32 %v4525_v22, %v7312_v56 }
 0x2a9   :  { %v4211_v57 = vadd.f32 %v3955_v9, %v3635_v8  ;;  %v3188_v53 = vadd.f32 %v3124_v31, %v2739_v20  ;;  %v4149_v55 = vmul.f32 %v4678_v46, %v4093_v35  ;;  %v2550_v34 = vmul.f32 %v4525_v22, %v7314_v29 }
 0x2aa   :  { %v4212_v5 = vadd.f32 %v3868_v48, %v3636_v0  ;;  %v2676_v62 = vmul.f32 %v4530_v24, %v7312_v56  ;;  %v2804_v49 = vmul.f32 %v4536_v26, %v7312_v56  ;;  %v2806_v8 = vmul.f32 %v4536_v26, %v7314_v29  ;;  %v7520_v56 = vld [vmem:[#allocation3 + $0x3a0] sm:$0xff] }
 0x2ab   :  { %v4275_v11 = vadd.f32 %v4211_v57, %v4061_v21  ;;  %v3637_v36 = vadd.f32 %v3573_v60, %v3188_v53  ;;  %v2997_v41 = vmul.f32 %v4554_v38, %v7416_v14  ;;  %v2999_v48 = vmul.f32 %v4554_v38, %v7418_v17 }
 0x2ac   :  { %v4276_v51 = vadd.f32 %v4212_v5, %v4148_v61  ;;  %v2740_v2 = vadd.f32 %v2676_v62, %v4518_v18  ;;  %v3125_v40 = vmul.f32 %v4563_v42, %v7416_v14  ;;  %v3253_v6 = vmul.f32 %v4574_v47, %v7416_v14 }
 0x2ad   :  { %4340 = vst [vmem:[#allocation8 + $0x368] sm:$0xff] %v4275_v11  ;;  %v4213_v30 = vadd.f32 %v3869_v44, %v3637_v36  ;;  %v3061_v45 = vadd.f32 %v2997_v41, %v2548_v52  ;;  %v3255_v61 = vmul.f32 %v4574_v47, %v7418_v17  ;;  %v3063_v9 = vadd.f32 %v2999_v48, %v2550_v34 }
 0x2ae   :  { %4341 = vst [vmem:[#allocation8 + $0x370] sm:$0xff] %v4276_v51  ;;  %v3189_v20 = vadd.f32 %v3125_v40, %v2740_v2  ;;  %v3446_v31 = vmul.f32 %v4590_v58, %v7520_v56  ;;  %v3448_v60 = vmul.f32 %v4590_v58, %v7522_v16  ;;  %v3317_v0 = vadd.f32 %v3253_v6, %v2804_v49 }
 0x2af   :  { %v4277_v21 = vadd.f32 %v4213_v30, %v4149_v55  ;;  %v3319_v44 = vadd.f32 %v3255_v61, %v2806_v8  ;;  %v3574_v35 = vmul.f32 %v4602_v4, %v7520_v56  ;;  %v3702_v52 = vmul.f32 %v4618_v15, %v7520_v56 }
 0x2b0   :  { %v3510_v57 = vadd.f32 %v3446_v31, %v3061_v45  ;;  %v3512_v53 = vadd.f32 %v3448_v60, %v3063_v9  ;;  %v3704_v5 = vmul.f32 %v4618_v15, %v7522_v16  ;;  %v2549_v62 = vmul.f32 %v4527_v23, %v7348_v13 }
 0x2b1   :  { %4342 = vst [vmem:[#allocation8 + $0x378] sm:$0xff] %v4277_v21  ;;  %v3638_v34 = vadd.f32 %v3574_v35, %v3189_v20  ;;  %v2551_v55 = vmul.f32 %v4527_v23, %v7356_v63  ;;  %v2677_v49 = vmul.f32 %v4533_v25, %v7348_v13  ;;  %v3766_v11 = vadd.f32 %v3702_v52, %v3317_v0  ;;  %v7556_v20 = vld [vmem:[#allocation3 + $0x3a8] sm:$0xff]  ;;  %v7564_v0 = vld [vmem:[#allocation3 + $0x3b8] sm:$0xff] }
 0x2b2   :  { %v3768_v36 = vadd.f32 %v3704_v5, %v3319_v44  ;;  %v3806_v8 = vrot.slane %v3510_v57, 7  ;;  %v3838_v41 = vrot.slane %v3512_v53, 7  ;;  %v2805_v2 = vmul.f32 %v4539_v27, %v7348_v13 }
 0x2b3   :  { %v2741_v51 = vadd.f32 %v2677_v49, %v4521_v19  ;;  %v2807_v48 = vmul.f32 %v4539_v27, %v7356_v63  ;;  %v2998_v40 = vmul.f32 %v4556_v39, %v7452_v37  ;;  %v3998_v45 = vrot.slane %v3766_v11, 1 }
 0x2b4   :  { %v3902_v30 = vsel %vm1921_vm1, %v3838_v41, %v3806_v8  ;;  %v4030_v6 = vrot.slane %v3768_v36, 1  ;;  %v3000_v61 = vmul.f32 %v4556_v39, %v7460_v33  ;;  %v3126_v13 = vmul.f32 %v4566_v43, %v7452_v37 }
 0x2b5   :  { %v3958_v9 = vmul.f32 %v4508_v10, %v3902_v30  ;;  %v3062_v31 = vadd.f32 %v2998_v40, %v2549_v62  ;;  %v3254_v60 = vmul.f32 %v4580_v50, %v7452_v37  ;;  %v3256_v35 = vmul.f32 %v4580_v50, %v7460_v33 }
 0x2b6   :  { %v4062_v21 = vsel %vm2114_vm3, %v3998_v45, %v4030_v6  ;;  %v3064_v44 = vadd.f32 %v3000_v61, %v2551_v55  ;;  %v3447_v57 = vmul.f32 %v4592_v59, %v7556_v20  ;;  %v3190_v52 = vadd.f32 %v3126_v13, %v2741_v51 }
 0x2b7   :  { %v4214_v53 = vadd.f32 %v3958_v9, %v3638_v34  ;;  %v3318_v5 = vadd.f32 %v3254_v60, %v2805_v2  ;;  %v3449_v62 = vmul.f32 %v4592_v59, %v7564_v0  ;;  %v3320_v49 = vadd.f32 %v3256_v35, %v2807_v48 }
 0x2b8   :  { %v3511_v11 = vadd.f32 %v3447_v57, %v3062_v31  ;;  %v3575_v36 = vmul.f32 %v4611_v12, %v7556_v20  ;;  %v3703_v55 = vmul.f32 %v4629_v7, %v7556_v20  ;;  %v3705_v61 = vmul.f32 %v4629_v7, %v7564_v0 }
 0x2b9   :  { %v4278_v40 = vadd.f32 %v4214_v53, %v4062_v21  ;;  %v3513_v30 = vadd.f32 %v3449_v62, %v3064_v44  ;;  %v2678_v34 = vmul.f32 %v4530_v24, %v7314_v29  ;;  %v3127_v48 = vmul.f32 %v4563_v42, %v7418_v17 }
 0x2ba   :  { %v3639_v51 = vadd.f32 %v3575_v36, %v3190_v52  ;;  %v3767_v2 = vadd.f32 %v3703_v55, %v3318_v5  ;;  %v3807_v9 = vrot.slane %v3511_v11, 7  ;;  %v3769_v31 = vadd.f32 %v3705_v61, %v3320_v49 }
 0x2bb   :  { %4343 = vst [vmem:[#allocation8 + $0x380] sm:$0xff] %v4278_v40  ;;  %v3839_v13 = vrot.slane %v3513_v30, 7  ;;  %v2742_v60 = vadd.f32 %v2678_v34, %v4518_v18  ;;  %v3576_v21 = vmul.f32 %v4602_v4, %v7522_v16  ;;  %v3870_v35 = vsel %vm1921_vm1, %v3806_v8, %v3838_v41 }
 0x2bc   :  { %v3999_v44 = vrot.slane %v3767_v2, 1  ;;  %v4094_v29 = vsel %vm2114_vm3, %v4030_v6, %v3998_v45  ;;  %v2679_v57 = vmul.f32 %v4533_v25, %v7356_v63  ;;  %v4031_v52 = vrot.slane %v3769_v31, 1 }
 0x2bd   :  { %v3903_v53 = vsel %vm1921_vm1, %v3839_v13, %v3807_v9  ;;  %v3191_v5 = vadd.f32 %v3127_v48, %v2742_v60  ;;  %v4152_v62 = vmul.f32 %v4678_v46, %v4094_v29  ;;  %v3128_v8 = vmul.f32 %v4566_v43, %v7460_v33 }
 0x2be   :  { %v3959_v49 = vmul.f32 %v4508_v10, %v3903_v53  ;;  %v2743_v11 = vadd.f32 %v2679_v57, %v4521_v19  ;;  %v3577_v41 = vmul.f32 %v4611_v12, %v7564_v0  ;;  %v4063_v63 = vsel %vm2114_vm3, %v3999_v44, %v4031_v52  ;;  %v7626_v53 = vld [vmem:[#allocation3 + $0x3d0] sm:$0xff] }
 0x2bf   :  { %v3640_v45 = vadd.f32 %v3576_v21, %v3191_v5  ;;  %v3871_v6 = vsel %vm1921_vm1, %v3807_v9, %v3839_v13  ;;  %v4095_v36 = vsel %vm2114_vm3, %v4031_v52, %v3999_v44  ;;  %v2552_v61 = vmul.f32 %v4525_v22, %v7416_v14 }
 0x2c0   :  { %v4215_v55 = vadd.f32 %v3959_v49, %v3639_v51  ;;  %v3192_v40 = vadd.f32 %v3128_v8, %v2743_v11  ;;  %v4153_v30 = vmul.f32 %v4678_v46, %v4095_v36  ;;  %v2554_v2 = vmul.f32 %v4525_v22, %v7418_v17 }
 0x2c1   :  { %v4216_v34 = vadd.f32 %v3870_v35, %v3640_v45  ;;  %v2680_v48 = vmul.f32 %v4530_v24, %v7416_v14  ;;  %v2808_v9 = vmul.f32 %v4536_v26, %v7416_v14  ;;  %v2810_v51 = vmul.f32 %v4536_v26, %v7418_v17  ;;  %v7624_v14 = vld [vmem:[#allocation3 + $0x3c0] sm:$0xff] }
 0x2c2   :  { %v4279_v31 = vadd.f32 %v4215_v55, %v4063_v63  ;;  %v3641_v13 = vadd.f32 %v3577_v41, %v3192_v40  ;;  %v3001_v60 = vmul.f32 %v4554_v38, %v7520_v56  ;;  %v3003_v35 = vmul.f32 %v4554_v38, %v7522_v16 }
 0x2c3   :  { %v4280_v21 = vadd.f32 %v4216_v34, %v4152_v62  ;;  %v2744_v44 = vadd.f32 %v2680_v48, %v4518_v18  ;;  %v3129_v29 = vmul.f32 %v4563_v42, %v7520_v56  ;;  %v3257_v5 = vmul.f32 %v4574_v47, %v7520_v56 }
 0x2c4   :  { %4344 = vst [vmem:[#allocation8 + $0x388] sm:$0xff] %v4279_v31  ;;  %v4217_v57 = vadd.f32 %v3871_v6, %v3641_v13  ;;  %v3065_v52 = vadd.f32 %v3001_v60, %v2552_v61  ;;  %v3259_v62 = vmul.f32 %v4574_v47, %v7522_v16  ;;  %v3067_v49 = vadd.f32 %v3003_v35, %v2554_v2 }
 0x2c5   :  { %4345 = vst [vmem:[#allocation8 + $0x390] sm:$0xff] %v4280_v21  ;;  %v3193_v11 = vadd.f32 %v3129_v29, %v2744_v44  ;;  %v3450_v8 = vmul.f32 %v4590_v58, %v7624_v14  ;;  %v3452_v41 = vmul.f32 %v4590_v58, %v7626_v53  ;;  %v3321_v45 = vadd.f32 %v3257_v5, %v2808_v9 }
 0x2c6   :  { %v4281_v63 = vadd.f32 %v4217_v57, %v4153_v30  ;;  %v3323_v6 = vadd.f32 %v3259_v62, %v2810_v51  ;;  %v3578_v36 = vmul.f32 %v4602_v4, %v7624_v14  ;;  %v3706_v61 = vmul.f32 %v4618_v15, %v7624_v14 }
 0x2c7   :  { %v3514_v55 = vadd.f32 %v3450_v8, %v3065_v52  ;;  %v3516_v40 = vadd.f32 %v3452_v41, %v3067_v49  ;;  %v3708_v34 = vmul.f32 %v4618_v15, %v7626_v53  ;;  %v2553_v48 = vmul.f32 %v4527_v23, %v7452_v37 }
 0x2c8   :  { %4346 = vst [vmem:[#allocation8 + $0x398] sm:$0xff] %v4281_v63  ;;  %v3642_v2 = vadd.f32 %v3578_v36, %v3193_v11  ;;  %v2555_v30 = vmul.f32 %v4527_v23, %v7460_v33  ;;  %v2681_v9 = vmul.f32 %v4533_v25, %v7452_v37  ;;  %v3770_v31 = vadd.f32 %v3706_v61, %v3321_v45  ;;  %v7660_v11 = vld [vmem:[#allocation3 + $0x3c8] sm:$0xff]  ;;  %v7668_v45 = vld [vmem:[#allocation3 + $0x3d8] sm:$0xff] }
 0x2c9   :  { %v3772_v13 = vadd.f32 %v3708_v34, %v3323_v6  ;;  %v3808_v51 = vrot.slane %v3514_v55, 7  ;;  %v3840_v60 = vrot.slane %v3516_v40, 7  ;;  %v2809_v44 = vmul.f32 %v4539_v27, %v7452_v37 }
 0x2ca   :  { %v2745_v21 = vadd.f32 %v2681_v9, %v4521_v19  ;;  %v2811_v35 = vmul.f32 %v4539_v27, %v7460_v33  ;;  %v3002_v29 = vmul.f32 %v4556_v39, %v7556_v20  ;;  %v4000_v52 = vrot.slane %v3770_v31, 1 }
 0x2cb   :  { %v3904_v57 = vsel %vm1921_vm1, %v3840_v60, %v3808_v51  ;;  %v4032_v5 = vrot.slane %v3772_v13, 1  ;;  %v3004_v62 = vmul.f32 %v4556_v39, %v7564_v0  ;;  %v3130_v37 = vmul.f32 %v4566_v43, %v7556_v20 }
 0x2cc   :  { %v3962_v49 = vmul.f32 %v4508_v10, %v3904_v57  ;;  %v3066_v8 = vadd.f32 %v3002_v29, %v2553_v48  ;;  %v3258_v41 = vmul.f32 %v4580_v50, %v7556_v20  ;;  %v3260_v36 = vmul.f32 %v4580_v50, %v7564_v0 }
 0x2cd   :  { %v4064_v63 = vsel %vm2114_vm3, %v4000_v52, %v4032_v5  ;;  %v3068_v6 = vadd.f32 %v3004_v62, %v2555_v30  ;;  %v3451_v55 = vmul.f32 %v4592_v59, %v7660_v11  ;;  %v3194_v61 = vadd.f32 %v3130_v37, %v2745_v21 }
 0x2ce   :  { %v4218_v40 = vadd.f32 %v3962_v49, %v3642_v2  ;;  %v3322_v34 = vadd.f32 %v3258_v41, %v2809_v44  ;;  %v3453_v48 = vmul.f32 %v4592_v59, %v7668_v45  ;;  %v3324_v9 = vadd.f32 %v3260_v36, %v2811_v35 }
 0x2cf   :  { %v3515_v31 = vadd.f32 %v3451_v55, %v3066_v8  ;;  %v3579_v13 = vmul.f32 %v4611_v12, %v7660_v11  ;;  %v3707_v30 = vmul.f32 %v4629_v7, %v7660_v11  ;;  %v3709_v62 = vmul.f32 %v4629_v7, %v7668_v45 }
 0x2d0   :  { %v4282_v29 = vadd.f32 %v4218_v40, %v4064_v63  ;;  %v3517_v57 = vadd.f32 %v3453_v48, %v3068_v6  ;;  %v2682_v2 = vmul.f32 %v4530_v24, %v7418_v17  ;;  %v3131_v35 = vmul.f32 %v4563_v42, %v7522_v16 }
 0x2d1   :  { %v3643_v21 = vadd.f32 %v3579_v13, %v3194_v61  ;;  %v3771_v44 = vadd.f32 %v3707_v30, %v3322_v34  ;;  %v3809_v49 = vrot.slane %v3515_v31, 7  ;;  %v3773_v8 = vadd.f32 %v3709_v62, %v3324_v9 }
 0x2d2   :  { %4347 = vst [vmem:[#allocation8 + $0x3a0] sm:$0xff] %v4282_v29  ;;  %v3841_v37 = vrot.slane %v3517_v57, 7  ;;  %v2746_v41 = vadd.f32 %v2682_v2, %v4518_v18  ;;  %v3580_v63 = vmul.f32 %v4602_v4, %v7626_v53  ;;  %v3872_v36 = vsel %vm1921_vm1, %v3808_v51, %v3840_v60 }
 0x2d3   :  { %v4001_v6 = vrot.slane %v3771_v44, 1  ;;  %v4096_v17 = vsel %vm2114_vm3, %v4032_v5, %v4000_v52  ;;  %v2683_v55 = vmul.f32 %v4533_v25, %v7460_v33  ;;  %v4033_v61 = vrot.slane %v3773_v8, 1 }
 0x2d4   :  { %v3905_v40 = vsel %vm1921_vm1, %v3841_v37, %v3809_v49  ;;  %v3195_v34 = vadd.f32 %v3131_v35, %v2746_v41  ;;  %v4156_v48 = vmul.f32 %v4678_v46, %v4096_v17  ;;  %v3132_v51 = vmul.f32 %v4566_v43, %v7564_v0 }
 0x2d5   :  { %v3963_v9 = vmul.f32 %v4508_v10, %v3905_v40  ;;  %v2747_v31 = vadd.f32 %v2683_v55, %v4521_v19  ;;  %v3581_v60 = vmul.f32 %v4611_v12, %v7668_v45  ;;  %v4065_v33 = vsel %vm2114_vm3, %v4001_v6, %v4033_v61  ;;  %v7730_v40 = vld [vmem:[#allocation3 + $0x3f0] sm:$0xff] }
 0x2d6   :  { %v3644_v52 = vadd.f32 %v3580_v63, %v3195_v34  ;;  %v3873_v5 = vsel %vm1921_vm1, %v3809_v49, %v3841_v37  ;;  %v4097_v13 = vsel %vm2114_vm3, %v4033_v61, %v4001_v6  ;;  %v2556_v62 = vmul.f32 %v4525_v22, %v7520_v56 }
 0x2d7   :  { %v4219_v30 = vadd.f32 %v3963_v9, %v3643_v21  ;;  %v3196_v29 = vadd.f32 %v3132_v51, %v2747_v31  ;;  %v4157_v57 = vmul.f32 %v4678_v46, %v4097_v13  ;;  %v2558_v44 = vmul.f32 %v4525_v22, %v7522_v16 }
 0x2d8   :  { %v4220_v2 = vadd.f32 %v3872_v36, %v3644_v52  ;;  %v2684_v35 = vmul.f32 %v4530_v24, %v7520_v56  ;;  %v2812_v49 = vmul.f32 %v4536_v26, %v7520_v56  ;;  %v2814_v21 = vmul.f32 %v4536_v26, %v7522_v16  ;;  %v7728_v56 = vld [vmem:[#allocation3 + $0x3e0] sm:$0xff] }
 0x2d9   :  { %v4283_v8 = vadd.f32 %v4219_v30, %v4065_v33  ;;  %v3645_v37 = vadd.f32 %v3581_v60, %v3196_v29  ;;  %v3005_v41 = vmul.f32 %v4554_v38, %v7624_v14  ;;  %v3007_v36 = vmul.f32 %v4554_v38, %v7626_v53 }
 0x2da   :  { %v4284_v63 = vadd.f32 %v4220_v2, %v4156_v48  ;;  %v2748_v6 = vadd.f32 %v2684_v35, %v4518_v18  ;;  %v3133_v17 = vmul.f32 %v4563_v42, %v7624_v14  ;;  %v3261_v34 = vmul.f32 %v4574_v47, %v7624_v14 }
 0x2db   :  { %4348 = vst [vmem:[#allocation8 + $0x3a8] sm:$0xff] %v4283_v8  ;;  %v4221_v55 = vadd.f32 %v3873_v5, %v3645_v37  ;;  %v3069_v61 = vadd.f32 %v3005_v41, %v2556_v62  ;;  %v3263_v48 = vmul.f32 %v4574_v47, %v7626_v53  ;;  %v3071_v9 = vadd.f32 %v3007_v36, %v2558_v44 }
 0x2dc   :  { %4349 = vst [vmem:[#allocation8 + $0x3b0] sm:$0xff] %v4284_v63  ;;  %v3197_v31 = vadd.f32 %v3133_v17, %v2748_v6  ;;  %v3454_v51 = vmul.f32 %v4590_v58, %v7728_v56  ;;  %v3456_v60 = vmul.f32 %v4590_v58, %v7730_v40  ;;  %v3325_v52 = vadd.f32 %v3261_v34, %v2812_v49 }
 0x2dd   :  { %v4285_v33 = vadd.f32 %v4221_v55, %v4157_v57  ;;  %v3327_v5 = vadd.f32 %v3263_v48, %v2814_v21  ;;  %v3582_v13 = vmul.f32 %v4602_v4, %v7728_v56  ;;  %v3710_v62 = vmul.f32 %v4618_v15, %v7728_v56  ;;  %v7764_v48 = vld [vmem:[#allocation3 + $0x3e8] sm:$0xff] }
 0x2de   :  { %v3518_v30 = vadd.f32 %v3454_v51, %v3069_v61  ;;  %v3520_v29 = vadd.f32 %v3456_v60, %v3071_v9  ;;  %v3712_v2 = vmul.f32 %v4618_v15, %v7730_v40  ;;  %v2557_v35 = vmul.f32 %v4527_v23, %v7556_v20  ;;  %v7772_v60 = vld [vmem:[#allocation3 + $0x3f8] sm:$0xff] }
 0x2df   :  { %4350 = vst [vmem:[#allocation8 + $0x3b8] sm:$0xff] %v4285_v33  ;;  %v3646_v44 = vadd.f32 %v3582_v13, %v3197_v31  ;;  %v2559_v58 = vmul.f32 %v4527_v23, %v7564_v0  ;;  %v2685_v57 = vmul.f32 %v4533_v25, %v7556_v20  ;;  %v3774_v49 = vadd.f32 %v3710_v62, %v3325_v52 }
 0x2e0   :  { %v3776_v8 = vadd.f32 %v3712_v2, %v3327_v5  ;;  %v3810_v37 = vrot.slane %v3518_v30, 7  ;;  %v3842_v21 = vrot.slane %v3520_v29, 7  ;;  %v2813_v15 = vmul.f32 %v4539_v27, %v7556_v20 }
 0x2e1   :  { %v2749_v41 = vadd.f32 %v2685_v57, %v4521_v19  ;;  %v2815_v63 = vmul.f32 %v4539_v27, %v7564_v0  ;;  %v3006_v6 = vmul.f32 %v4556_v39, %v7660_v11  ;;  %v4002_v17 = vrot.slane %v3774_v49, 1 }
 0x2e2   :  { %v3906_v36 = vsel %vm1921_vm1, %v3842_v21, %v3810_v37  ;;  %v4034_v55 = vrot.slane %v3776_v8, 1  ;;  %v3008_v61 = vmul.f32 %v4556_v39, %v7668_v45  ;;  %v3134_v20 = vmul.f32 %v4566_v43, %v7660_v11 }
 0x2e3   :  { %v3966_v34 = vmul.f32 %v4508_v10, %v3906_v36  ;;  %v3070_v9 = vadd.f32 %v3006_v6, %v2557_v35  ;;  %v3262_v31 = vmul.f32 %v4580_v50, %v7660_v11  ;;  %v3264_v52 = vmul.f32 %v4580_v50, %v7668_v45 }
 0x2e4   :  { %v4066_v51 = vsel %vm2114_vm3, %v4002_v17, %v4034_v55  ;;  %v3072_v33 = vadd.f32 %v3008_v61, %v2559_v58  ;;  %v3455_v5 = vmul.f32 %v4592_v59, %v7764_v48  ;;  %v3198_v30 = vadd.f32 %v3134_v20, %v2749_v41 }
 0x2e5   :  { %v4222_v13 = vadd.f32 %v3966_v34, %v3646_v44  ;;  %v3326_v29 = vadd.f32 %v3262_v31, %v2813_v15  ;;  %v3457_v62 = vmul.f32 %v4592_v59, %v7772_v60  ;;  %v3328_v2 = vadd.f32 %v3264_v52, %v2815_v63 }
 0x2e6   :  { %v3519_v35 = vadd.f32 %v3455_v5, %v3070_v9  ;;  %v3583_v57 = vmul.f32 %v4611_v12, %v7764_v48  ;;  %v3711_v58 = vmul.f32 %v4629_v7, %v7764_v48  ;;  %v3713_v6 = vmul.f32 %v4629_v7, %v7772_v60 }
 0x2e7   :  { %v4286_v49 = vadd.f32 %v4222_v13, %v4066_v51  ;;  %v3521_v8 = vadd.f32 %v3457_v62, %v3072_v33  ;;  %v2686_v44 = vmul.f32 %v4530_v24, %v7522_v16  ;;  %v3135_v59 = vmul.f32 %v4563_v42, %v7626_v53 }
 0x2e8   :  { %v3647_v41 = vadd.f32 %v3583_v57, %v3198_v30  ;;  %v3775_v15 = vadd.f32 %v3711_v58, %v3326_v29  ;;  %v3811_v36 = vrot.slane %v3519_v35, 7  ;;  %v3777_v63 = vadd.f32 %v3713_v6, %v3328_v2 }
 0x2e9   :  { %4351 = vst [vmem:[#allocation8 + $0x3c0] sm:$0xff] %v4286_v49  ;;  %v3843_v61 = vrot.slane %v3521_v8, 7  ;;  %v2750_v34 = vadd.f32 %v2686_v44, %v4518_v18  ;;  %v3584_v9 = vmul.f32 %v4602_v4, %v7730_v40  ;;  %v3874_v7 = vsel %vm1921_vm1, %v3810_v37, %v3842_v21 }
 0x2ea   :  { %v4003_v20 = vrot.slane %v3775_v15, 1  ;;  %v4098_v16 = vsel %vm2114_vm3, %v4034_v55, %v4002_v17  ;;  %v2687_v31 = vmul.f32 %v4533_v25, %v7564_v0  ;;  %v4035_v33 = vrot.slane %v3777_v63, 1 }
 0x2eb   :  { %v3907_v51 = vsel %vm1921_vm1, %v3843_v61, %v3811_v36  ;;  %v3199_v52 = vadd.f32 %v3135_v59, %v2750_v34  ;;  %v4160_v5 = vmul.f32 %v4678_v46, %v4098_v16  ;;  %v3136_v37 = vmul.f32 %v4566_v43, %v7668_v45 }
 0x2ec   :  { %v3967_v13 = vmul.f32 %v4508_v10, %v3907_v51  ;;  %v2751_v4 = vadd.f32 %v2687_v31, %v4521_v19  ;;  %v3585_v21 = vmul.f32 %v4611_v12, %v7772_v60  ;;  %v4067_v0 = vsel %vm2114_vm3, %v4003_v20, %v4035_v33 }
 0x2ed   :  { %v3648_v17 = vadd.f32 %v3584_v9, %v3199_v52  ;;  %v3875_v55 = vsel %vm1921_vm1, %v3811_v36, %v3843_v61  ;;  %v4099_v30 = vsel %vm2114_vm3, %v4035_v33, %v4003_v20  ;;  %v2560_v35 = vmul.f32 %v4525_v22, %v7624_v14 }
 0x2ee   :  { %v4223_v29 = vadd.f32 %v3967_v13, %v3647_v41  ;;  %v3200_v62 = vadd.f32 %v3136_v37, %v2751_v4  ;;  %v4161_v2 = vmul.f32 %v4678_v46, %v4099_v30  ;;  %v2562_v12 = vmul.f32 %v4525_v22, %v7626_v53 }
 0x2ef   :  { %v4224_v57 = vadd.f32 %v3874_v7, %v3648_v17  ;;  %v2688_v58 = vmul.f32 %v4530_v24, %v7624_v14  ;;  %v2816_v49 = vmul.f32 %v4536_v26, %v7624_v14  ;;  %v2818_v44 = vmul.f32 %v4536_v26, %v7626_v53 }
 0x2f0   :  { %v4287_v8 = vadd.f32 %v4223_v29, %v4067_v0  ;;  %v3649_v6 = vadd.f32 %v3585_v21, %v3200_v62  ;;  %v3009_v41 = vmul.f32 %v4554_v38, %v7728_v56  ;;  %v3011_v22 = vmul.f32 %v4554_v38, %v7730_v40 }
 0x2f1   :  { %v4288_v15 = vadd.f32 %v4224_v57, %v4160_v5  ;;  %v2752_v36 = vadd.f32 %v2688_v58, %v4518_v18  ;;  %v3137_v59 = vmul.f32 %v4563_v42, %v7728_v56  ;;  %v3265_v61 = vmul.f32 %v4574_v47, %v7728_v56 }
 0x2f2   :  { %4352 = vst [vmem:[#allocation8 + $0x3c8] sm:$0xff] %v4287_v8  ;;  %v4225_v63 = vadd.f32 %v3875_v55, %v3649_v6  ;;  %v3073_v14 = vadd.f32 %v3009_v41, %v2560_v35  ;;  %v3267_v26 = vmul.f32 %v4574_v47, %v7730_v40  ;;  %v3075_v34 = vadd.f32 %v3011_v22, %v2562_v12  ;;  %v7923_v6 = vld [vmem:[#allocation15_spill] sm:$0xff] }
 0x2f3   :  { %4353 = vst [vmem:[#allocation8 + $0x3d0] sm:$0xff] %v4288_v15  ;;  %v3201_v9 = vadd.f32 %v3137_v59, %v2752_v36  ;;  %v2561_v20 = vmul.f32 %v4527_v23, %v7660_v11  ;;  %v2563_v38 = vmul.f32 %v4527_v23, %v7668_v45  ;;  %v3329_v16 = vadd.f32 %v3265_v61, %v2816_v49 }
 0x2f4   :  { %v4289_v7 = vadd.f32 %v4225_v63, %v4161_v2  ;;  %v3331_v31 = vadd.f32 %v3267_v26, %v2818_v44  ;;  %v3522_v51 = vadd.f32 %v3073_v14, %v6183_v54  ;;  %v3524_v33 = vadd.f32 %v3075_v34, %v6183_v54  ;;  %v7924_v63 = vld [vmem:[#allocation14_spill] sm:$0xff] }
 0x2f5   :  { %v3650_v56 = vadd.f32 %v3201_v9, %v6186_v32  ;;  %v2689_v47 = vmul.f32 %v4533_v25, %v7660_v11  ;;  %v2817_v52 = vmul.f32 %v4539_v27, %v7660_v11  ;;  %v3778_v5 = vadd.f32 %v3329_v16, %v6189_v28 }
 0x2f6   :  { %4354 = vst [vmem:[#allocation8 + $0x3d8] sm:$0xff] %v4289_v7  ;;  %v3780_v23 = vadd.f32 %v3331_v31, %v6189_v28  ;;  %v3812_v13 = vrot.slane %v3522_v51, 7  ;;  %v2819_v4 = vmul.f32 %v4539_v27, %v7668_v45  ;;  %v3844_v37 = vrot.slane %v3524_v33, 7 }
 0x2f7   :  { %v2753_v54 = vadd.f32 %v2689_v47, %v4521_v19  ;;  %v3010_v21 = vmul.f32 %v4556_v39, %v7764_v48  ;;  %v3012_v0 = vmul.f32 %v4556_v39, %v7772_v60  ;;  %v4004_v17 = vrot.slane %v3778_v5, 1 }
 0x2f8   :  { %v4036_v11 = vrot.slane %v3780_v23, 1  ;;  %v3138_v55 = vmul.f32 %v4566_v43, %v7764_v48  ;;  %v3266_v28 = vmul.f32 %v4580_v50, %v7764_v48  ;;  %v3908_v27 = vsel %vm1921_vm1, %v3844_v37, %v3812_v13 }
 0x2f9   :  { %v3074_v30 = vadd.f32 %v3010_v21, %v2561_v20  ;;  %v3076_v29 = vadd.f32 %v3012_v0, %v2563_v38  ;;  %v3268_v62 = vmul.f32 %v4580_v50, %v7772_v60  ;;  %v3970_v2 = vmul.f32 %v4508_v10, %v3908_v27 }
 0x2fa   :  { %v4068_v39 = vsel %vm2114_vm3, %v4004_v17, %v4036_v11  ;;  %v3202_v35 = vadd.f32 %v3138_v55, %v2753_v54  ;;  %v3330_v57 = vadd.f32 %v3266_v28, %v2817_v52  ;;  %v2690_v49 = vmul.f32 %v4530_v24, %v7626_v53 }
 0x2fb   :  { %v3332_v12 = vadd.f32 %v3268_v62, %v2819_v4  ;;  %v3523_v58 = vadd.f32 %v3074_v30, %v6223_v3  ;;  %v3525_v48 = vadd.f32 %v3076_v29, %v6223_v3  ;;  %v4226_v8 = vadd.f32 %v3970_v2, %v3650_v56 }
 0x2fc   :  { %v3779_v44 = vadd.f32 %v3330_v57, %v7923_v6  ;;  %v3139_v50 = vmul.f32 %v4563_v42, %v7730_v40  ;;  %v2754_v22 = vadd.f32 %v2690_v49, %v4518_v18  ;;  %v3651_v14 = vadd.f32 %v3202_v35, %v7924_v63 }
 0x2fd   :  { %v3781_v41 = vadd.f32 %v3332_v12, %v7923_v6  ;;  %v3813_v15 = vrot.slane %v3523_v58, 7  ;;  %v3845_v36 = vrot.slane %v3525_v48, 7  ;;  %v4290_v59 = vadd.f32 %v4226_v8, %v4068_v39 }
 0x2fe   :  { %v4100_v3 = vsel %vm2114_vm3, %v4036_v11, %v4004_v17  ;;  %v4005_v53 = vrot.slane %v3779_v44, 1  ;;  %v3203_v26 = vadd.f32 %v3139_v50, %v2754_v22  ;;  %v3876_v40 = vsel %vm1921_vm1, %v3812_v13, %v3844_v37 }
 0x2ff   :  { %v3909_v24 = vsel %vm1921_vm1, %v3845_v36, %v3813_v15  ;;  %v4037_v61 = vrot.slane %v3781_v41, 1  ;;  %4355 = vst [vmem:[#allocation8 + $0x3e0] sm:$0xff] %v4290_v59  ;;  %v2691_v18 = vmul.f32 %v4533_v25, %v7668_v45  ;;  %v3140_v34 = vmul.f32 %v4566_v43, %v7772_v60 }
 0x300   :  { %v3971_v42 = vmul.f32 %v4508_v10, %v3909_v24  ;;  %v3652_v20 = vadd.f32 %v3203_v26, %v6186_v32  ;;  %v4164_v38 = vmul.f32 %v4678_v46, %v4100_v3  ;;  %v3877_v43 = vsel %vm1921_vm1, %v3813_v15, %v3845_v36 }
 0x301   :  { %v4069_v9 = vsel %vm2114_vm3, %v4005_v53, %v4037_v61  ;;  %v2755_v16 = vadd.f32 %v2691_v18, %v4521_v19  ;;  %v4101_v31 = vsel %vm2114_vm3, %v4037_v61, %v4005_v53 }
 0x302   :  { %v4227_v7 = vadd.f32 %v3971_v42, %v3651_v14  ;;  %v4228_v10 = vadd.f32 %v3876_v40, %v3652_v20  ;;  %v4165_v32 = vmul.f32 %v4678_v46, %v4101_v31 }
 0x303   :  { %v3204_v33 = vadd.f32 %v3140_v34, %v2755_v16 }
 0x304   :  { %v4291_v51 = vadd.f32 %v4227_v7, %v4069_v9  ;;  %v4292_v25 = vadd.f32 %v4228_v10, %v4164_v38 }
 0x305   :  { %v3653_v45 = vadd.f32 %v3204_v33, %v7924_v63 }
 0x306   :  { %4356 = vst [vmem:[#allocation8 + $0x3e8] sm:$0xff] %v4291_v51  ;;  %4357 = vst [vmem:[#allocation8 + $0x3f0] sm:$0xff] %v4292_v25 }
 0x307   :  { %v4229_v60 = vadd.f32 %v3877_v43, %v3653_v45 }
 0x309   :  { %v4293_v19 = vadd.f32 %v4229_v60, %v4165_v32 }
 0x30b   :  { %4358 = vst [vmem:[#allocation8 + $0x3f8] sm:$0xff] %v4293_v19 }
 0x30c   :  { %4438 = shalt.err (!%p4435_p0)
}
 0x30d   :  { %4370 = dma.vmem_to_hbm [thread:$0]  %s4365_s26, 16384, %s7908_s3, [#allocation5], %s4454_s15, %s4454_s15, %s4455_s16  }
 0x30e   :  { %4451 = dma.done.wait [#allocation5], 16384  }
 0x30f   :  { %4452 = vsyncadd [#allocation5], 4294950912 }
 0x310   :  { %4374 = vsyncpa [#allocation4], 1 }
 0x311   :  { %4375 = vsyncpa [#allocation7], 1 }
 0x312   :  { %4376 = vsyncpa [#allocation5], 1 }

</bundles_post_ra>
